<compile_context>
chip_gen: v7x
topology: tpu7x:2x2x1
jax: 0.10.0
libtpu: 0.0.40
codegen_flags: <defaults>
</compile_context>

<pallas_src>
import jax
import jax.numpy as jnp
from jax import lax
from jax.experimental import pallas as pl
from jax.experimental.pallas import tpu as pltpu


def _round_up(x, m):
    return (x + m - 1) // m * m


# ----------------------------- Pallas kernel -----------------------------
def _lstm_kernel(emb_ref,                  # (S, Bp, Hp)  time-major embedded input
                 wih0_ref,                 # (Hp, 4Hp)    layer-0 input weights
                 whh0_ref,                 # (Hp, 4Hp)    layer-0 recurrent weights
                 b0_ref,                   # (1, 4Hp)     layer-0 bias (b_ih + b_hh)
                 w1_ref,                   # (2Hp, 4Hp)   layer-1 fused [Wih; Whh]
                 b1_ref,                   # (1, 4Hp)     layer-1 bias
                 wfc_ref,                  # (1, Hp)      fc_output weight row
                 bfc_ref,                  # (1, 1)       fc_output bias
                 logit_ref,                # (Bp, 1)      output logits
                 gih0_scratch):            # VMEM (S, Bp, 4Hp) hoisted layer-0 gates
    S, Bp, Hp = emb_ref.shape

    # ---- hoisted, time-independent layer-0 input projection: one big MXU matmul
    x2d = emb_ref[...].reshape(S * Bp, Hp)
    gih0 = (jnp.dot(x2d, wih0_ref[...], preferred_element_type=jnp.float32)
            + b0_ref[...])
    gih0_scratch[...] = gih0.reshape(S, Bp, 4 * Hp)

    def gates_to_hc(gates, c):
        # PyTorch gate order: i, f, g, o. Hp is a multiple of 128, so every gate
        # slice is lane-tile aligned (pure VPU/EUP work, no cross-lane relayout).
        i_g = jax.nn.sigmoid(gates[:, 0 * Hp:1 * Hp])
        f_g = jax.nn.sigmoid(gates[:, 1 * Hp:2 * Hp])
        g_g = jnp.tanh(gates[:, 2 * Hp:3 * Hp])
        o_g = jax.nn.sigmoid(gates[:, 3 * Hp:4 * Hp])
        c_new = f_g * c + i_g * g_g
        h_new = o_g * jnp.tanh(c_new)
        return h_new, c_new

    def step(t, carry):
        h0, c0, h1, c1 = carry
        # layer 0: only the recurrent matmul remains on the serial chain.
        g0 = gih0_scratch[t] + jnp.dot(h0, whh0_ref[...],
                                       preferred_element_type=jnp.float32)
        h0n, c0n = gates_to_hc(g0, c0)
        # TODO(synk): nn.LSTM applies dropout(p=0.4) between layers only in
        # training mode; eval semantics (no dropout) used for determinism.
        # layer 1: single fused [x, h] @ [Wih; Whh] matmul.
        xh = jnp.concatenate([h0n, h1], axis=-1)
        g1 = (jnp.dot(xh, w1_ref[...], preferred_element_type=jnp.float32)
              + b1_ref[...])
        h1n, c1n = gates_to_hc(g1, c1)
        return (h0n, c0n, h1n, c1n)

    zero = jnp.zeros((Bp, Hp), jnp.float32)
    _, _, h1_last, _ = lax.fori_loop(0, S, step, (zero, zero, zero, zero),
                                     unroll=True)

    # final projection (Linear(H, 1)) on output[-1]: VPU multiply + lane reduce,
    # avoids an N=1 MXU matmul.
    logit_ref[...] = (jnp.sum(h1_last * wfc_ref[...], axis=-1, keepdims=True)
                      + bfc_ref[...])


# ----------------------------- wrapper -----------------------------------
def _pad_gate_cols(a, H, Hp):
    """(..., 4*H) -> (..., 4*Hp): zero-pad each of the 4 gate blocks to Hp lanes."""
    lead = a.shape[:-1]
    a4 = a.reshape(lead + (4, H))
    a4 = jnp.pad(a4, [(0, 0)] * (a.ndim - 1) + [(0, 0), (0, Hp - H)])
    return a4.reshape(lead + (4 * Hp,))


def _pad_rows(a, Kp):
    return jnp.pad(a, [(0, Kp - a.shape[0])] + [(0, 0)] * (a.ndim - 1))


def lstm_forward_pallas(embed, params):
    """embed: (B, S, H) float32 (embedding lookup output). Returns logits (B,)."""
    B, S, H = embed.shape
    wih0, whh0, b0, wih1, whh1, b1, wfc, bfc = params

    Hp = _round_up(H, 128)    # lane-aligned hidden / per-gate width
    Bp = _round_up(B, 8)      # sublane-aligned batch

    # --- weight padding / fusion (zero padding => numerically exact) ---
    wih0_p = _pad_rows(_pad_gate_cols(wih0, H, Hp), Hp)            # (Hp, 4Hp)
    whh0_p = _pad_rows(_pad_gate_cols(whh0, H, Hp), Hp)            # (Hp, 4Hp)
    b0_p = _pad_gate_cols(b0, H, Hp)                               # (1, 4Hp)
    w1_p = jnp.concatenate(
        [_pad_rows(_pad_gate_cols(wih1, H, Hp), Hp),
         _pad_rows(_pad_gate_cols(whh1, H, Hp), Hp)], axis=0)      # (2Hp, 4Hp)
    b1_p = _pad_gate_cols(b1, H, Hp)                               # (1, 4Hp)
    wfc_row = jnp.pad(jnp.transpose(wfc), ((0, 0), (0, Hp - H)))   # (1, Hp)

    # time-major, padded input block; whole sequence fits in one VMEM block.
    x = jnp.transpose(embed, (1, 0, 2))                            # (S, B, H)
    x = jnp.pad(x, ((0, 0), (0, Bp - B), (0, Hp - H)))             # (S, Bp, Hp)

    in_specs = [pl.BlockSpec(memory_space=pltpu.MemorySpace.VMEM)
                for _ in range(8)]
    logits = pl.pallas_call(
        _lstm_kernel,
        out_shape=jax.ShapeDtypeStruct((Bp, 1), jnp.float32),
        in_specs=in_specs,
        out_specs=pl.BlockSpec(memory_space=pltpu.MemorySpace.VMEM),
        scratch_shapes=[pltpu.VMEM((S, Bp, 4 * Hp), jnp.float32)],
        compiler_params=pltpu.CompilerParams(
            vmem_limit_bytes=32 * 1024 * 1024),
    )(x, wih0_p, whh0_p, b0_p, w1_p, b1_p, wfc_row, bfc)
    return logits[:B, 0]


def bce_with_logits(logits, targets):
    # matches torch.nn.BCEWithLogitsLoss (mean reduction)
    return jnp.mean(jnp.maximum(logits, 0.0) - logits * targets
                    + jnp.log1p(jnp.exp(-jnp.abs(logits))))


def lstm_model_forward(X, t_targets, weights):
    """Full LSTM_model.forward: returns (loss, logits[:, 0])."""
    emb_table = weights["embedding"]
    embed = emb_table[X]                                   # (B, S, H) == nn.Embedding(X)
    logits = lstm_forward_pallas(embed, weights["lstm_fc"])
    return bce_with_logits(logits, t_targets), logits


# ---------------- pure-JAX reference (for sanity check) ----------------
def _reference_forward(X, t_targets, weights):
    emb = weights["embedding"][X]                # (B, S, H)
    x = jnp.transpose(emb, (1, 0, 2))            # (S, B, H)
    wih0, whh0, b0, wih1, whh1, b1, wfc, bfc = weights["lstm_fc"]
    S, B, H = x.shape

    def cell(xt, h, c, wih, whh, b):
        g = xt @ wih + h @ whh + b
        i = jax.nn.sigmoid(g[:, :H]); f = jax.nn.sigmoid(g[:, H:2 * H])
        gg = jnp.tanh(g[:, 2 * H:3 * H]); o = jax.nn.sigmoid(g[:, 3 * H:])
        c = f * c + i * gg
        return o * jnp.tanh(c), c

    h0 = c0 = h1 = c1 = jnp.zeros((B, H), jnp.float32)
    for s in range(S):
        h0, c0 = cell(x[s], h0, c0, wih0, whh0, b0)
        h1, c1 = cell(h0, h1, c1, wih1, whh1, b1)
    logits = (h1 @ wfc + bfc)[:, 0]
    return bce_with_logits(logits, t_targets), logits


if __name__ == "__main__":
    vocab_size = 64
    n_hidden = 32
    batch = 4
    seq = 8

    key = jax.random.PRNGKey(0)
    keys = jax.random.split(key, 12)

    H = n_hidden
    scale = 0.1
    emb_table = scale * jax.random.normal(keys[0], (vocab_size, H), jnp.float32)

    # LSTM weights, pre-transposed so the kernel computes x @ W (shape (H, 4H)).
    # Gate order i, f, g, o as in PyTorch. b = b_ih + b_hh folded together.
    wih0 = scale * jax.random.normal(keys[1], (H, 4 * H), jnp.float32)
    whh0 = scale * jax.random.normal(keys[2], (H, 4 * H), jnp.float32)
    b0 = (scale * jax.random.normal(keys[3], (1, 4 * H), jnp.float32)
          + scale * jax.random.normal(keys[4], (1, 4 * H), jnp.float32))
    wih1 = scale * jax.random.normal(keys[5], (H, 4 * H), jnp.float32)
    whh1 = scale * jax.random.normal(keys[6], (H, 4 * H), jnp.float32)
    b1 = (scale * jax.random.normal(keys[7], (1, 4 * H), jnp.float32)
          + scale * jax.random.normal(keys[8], (1, 4 * H), jnp.float32))
    wfc = scale * jax.random.normal(keys[9], (H, 1), jnp.float32)   # Linear(H, 1) weight^T
    bfc = scale * jax.random.normal(keys[10], (1, 1), jnp.float32)

    weights = {
        "embedding": emb_table,
        "lstm_fc": (wih0, whh0, b0, wih1, whh1, b1, wfc, bfc),
    }

    X = jax.random.randint(keys[11], (batch, seq), 0, vocab_size, jnp.int32)
    t_targets = jnp.array([0.0, 1.0, 1.0, 0.0], jnp.float32)

    loss, logits = jax.block_until_ready(
        jax.jit(lstm_model_forward)(X, t_targets, weights))

    ref_loss, ref_logits = _reference_forward(X, t_targets, weights)
    assert jnp.allclose(logits, ref_logits, atol=1e-5, rtol=1e-5)
    assert jnp.allclose(loss, ref_loss, atol=1e-5, rtol=1e-5)

    print("KERNEL_OK")
</pallas_src>

<mosaic_0001>
module attributes {stable_mosaic.version = 11 : i64} {
  func.func @_lstm_kernel(%arg0: memref<8x8x128xf32, #tpu.memory_space<vmem>>, %arg1: memref<128x512xf32, #tpu.memory_space<vmem>>, %arg2: memref<128x512xf32, #tpu.memory_space<vmem>>, %arg3: memref<1x512xf32, #tpu.memory_space<vmem>>, %arg4: memref<256x512xf32, #tpu.memory_space<vmem>>, %arg5: memref<1x512xf32, #tpu.memory_space<vmem>>, %arg6: memref<1x128xf32, #tpu.memory_space<vmem>>, %arg7: memref<1x1xf32, #tpu.memory_space<vmem>>, %arg8: memref<8x1xf32, #tpu.memory_space<vmem>>, %arg9: memref<8x8x512xf32, #tpu.memory_space<vmem>>) attributes {dimension_semantics = [], scalar_prefetch = 0 : i64, scratch_operands = 1 : i64, tpu.core_type = #tpu.core_type<tc>} {
    %c0 = arith.constant 0 : index
    %c0_0 = arith.constant 0 : index
    %c0_1 = arith.constant 0 : index
    %0 = vector.load %arg0[%c0, %c0_0, %c0_1] : memref<8x8x128xf32, #tpu.memory_space<vmem>>, vector<8x8x128xf32>
    %1 = vector.shape_cast %0 : vector<8x8x128xf32> to vector<64x128xf32>
    %c0_2 = arith.constant 0 : index
    %c0_3 = arith.constant 0 : index
    %2 = vector.load %arg1[%c0_2, %c0_3] : memref<128x512xf32, #tpu.memory_space<vmem>>, vector<128x512xf32>
    %cst = arith.constant dense<0.000000e+00> : vector<64x512xf32>
    %3 = tpu.matmul %1, %2, %cst {dimension_numbers = #tpu.dot_dimension_numbers<[1], [0], [0], [1], [0, 0, 1, 1], [], []>} : vector<64x128xf32>, vector<128x512xf32>, vector<64x512xf32> -> vector<64x512xf32>
    %c0_4 = arith.constant 0 : index
    %c0_5 = arith.constant 0 : index
    %4 = vector.load %arg3[%c0_4, %c0_5] : memref<1x512xf32, #tpu.memory_space<vmem>>, vector<1x512xf32>
    %5 = vector.broadcast %4 : vector<1x512xf32> to vector<64x512xf32>
    %6 = arith.addf %3, %5 : vector<64x512xf32>
    %7 = vector.shape_cast %6 : vector<64x512xf32> to vector<8x8x512xf32>
    %c0_6 = arith.constant 0 : index
    %c0_7 = arith.constant 0 : index
    %c0_8 = arith.constant 0 : index
    %8 = vector.load %arg9[%c0_6, %c0_7, %c0_8] : memref<8x8x512xf32, #tpu.memory_space<vmem>>, vector<8x8x512xf32>
    tpu.vector_store %arg9[%c0_6, %c0_7, %c0_8], %7 {strides = array<i32>} : memref<8x8x512xf32, #tpu.memory_space<vmem>>, vector<8x8x512xf32>,
    %cst_9 = arith.constant 0.000000e+00 : f32
    %9 = vector.broadcast %cst_9 : f32 to vector<8x128xf32>
    %c0_i32 = arith.constant 0 : i32
    %10 = arith.index_cast %c0_i32 : i32 to index
    %c0_10 = arith.constant 0 : index
    %c0_11 = arith.constant 0 : index
    %11 = vector.load %arg9[%10, %c0_10, %c0_11] : memref<8x8x512xf32, #tpu.memory_space<vmem>>, vector<1x8x512xf32>
    %12 = vector.shape_cast %11 : vector<1x8x512xf32> to vector<8x512xf32>
    %c0_12 = arith.constant 0 : index
    %c0_13 = arith.constant 0 : index
    %13 = vector.load %arg2[%c0_12, %c0_13] : memref<128x512xf32, #tpu.memory_space<vmem>>, vector<128x512xf32>
    %cst_14 = arith.constant dense<0.000000e+00> : vector<8x512xf32>
    %14 = tpu.matmul %9, %13, %cst_14 {dimension_numbers = #tpu.dot_dimension_numbers<[1], [0], [0], [1], [0, 0, 1, 1], [], []>} : vector<8x128xf32>, vector<128x512xf32>, vector<8x512xf32> -> vector<8x512xf32>
    %15 = arith.addf %12, %14 : vector<8x512xf32>
    %16 = vector.extract_strided_slice %15 {offsets = [0, 0], sizes = [8, 128], strides = [1, 1]} : vector<8x512xf32> to vector<8x128xf32>
    %17 = arith.negf %16 : vector<8x128xf32>
    %18 = math.exp %17 : vector<8x128xf32>
    %cst_15 = arith.constant 1.000000e+00 : f32
    %19 = vector.broadcast %cst_15 : f32 to vector<8x128xf32>
    %20 = arith.addf %19, %18 : vector<8x128xf32>
    %21 = arith.divf %19, %20 : vector<8x128xf32>
    %22 = vector.extract_strided_slice %15 {offsets = [0, 128], sizes = [8, 128], strides = [1, 1]} : vector<8x512xf32> to vector<8x128xf32>
    %23 = arith.negf %22 : vector<8x128xf32>
    %24 = math.exp %23 : vector<8x128xf32>
    %cst_16 = arith.constant 1.000000e+00 : f32
    %25 = vector.broadcast %cst_16 : f32 to vector<8x128xf32>
    %26 = arith.addf %25, %24 : vector<8x128xf32>
    %27 = arith.divf %25, %26 : vector<8x128xf32>
    %28 = vector.extract_strided_slice %15 {offsets = [0, 256], sizes = [8, 128], strides = [1, 1]} : vector<8x512xf32> to vector<8x128xf32>
    %29 = math.tanh %28 : vector<8x128xf32>
    %30 = vector.extract_strided_slice %15 {offsets = [0, 384], sizes = [8, 128], strides = [1, 1]} : vector<8x512xf32> to vector<8x128xf32>
    %31 = arith.negf %30 : vector<8x128xf32>
    %32 = math.exp %31 : vector<8x128xf32>
    %cst_17 = arith.constant 1.000000e+00 : f32
    %33 = vector.broadcast %cst_17 : f32 to vector<8x128xf32>
    %34 = arith.addf %33, %32 : vector<8x128xf32>
    %35 = arith.divf %33, %34 : vector<8x128xf32>
    %36 = arith.mulf %27, %9 : vector<8x128xf32>
    %37 = arith.mulf %21, %29 : vector<8x128xf32>
    %38 = arith.addf %36, %37 : vector<8x128xf32>
    %39 = math.tanh %38 : vector<8x128xf32>
    %40 = arith.mulf %35, %39 : vector<8x128xf32>
    %41 = tpu.concatenate %40, %9 in 1 : vector<8x128xf32>, vector<8x128xf32> -> vector<8x256xf32>
    %c0_18 = arith.constant 0 : index
    %c0_19 = arith.constant 0 : index
    %42 = vector.load %arg4[%c0_18, %c0_19] : memref<256x512xf32, #tpu.memory_space<vmem>>, vector<256x512xf32>
    %cst_20 = arith.constant dense<0.000000e+00> : vector<8x512xf32>
    %43 = tpu.matmul %41, %42, %cst_20 {dimension_numbers = #tpu.dot_dimension_numbers<[1], [0], [0], [1], [0, 0, 1, 1], [], []>} : vector<8x256xf32>, vector<256x512xf32>, vector<8x512xf32> -> vector<8x512xf32>
    %c0_21 = arith.constant 0 : index
    %c0_22 = arith.constant 0 : index
    %44 = vector.load %arg5[%c0_21, %c0_22] : memref<1x512xf32, #tpu.memory_space<vmem>>, vector<1x512xf32>
    %45 = vector.broadcast %44 : vector<1x512xf32> to vector<8x512xf32>
    %46 = arith.addf %43, %45 : vector<8x512xf32>
    %47 = vector.extract_strided_slice %46 {offsets = [0, 0], sizes = [8, 128], strides = [1, 1]} : vector<8x512xf32> to vector<8x128xf32>
    %48 = arith.negf %47 : vector<8x128xf32>
    %49 = math.exp %48 : vector<8x128xf32>
    %cst_23 = arith.constant 1.000000e+00 : f32
    %50 = vector.broadcast %cst_23 : f32 to vector<8x128xf32>
    %51 = arith.addf %50, %49 : vector<8x128xf32>
    %52 = arith.divf %50, %51 : vector<8x128xf32>
    %53 = vector.extract_strided_slice %46 {offsets = [0, 128], sizes = [8, 128], strides = [1, 1]} : vector<8x512xf32> to vector<8x128xf32>
    %54 = arith.negf %53 : vector<8x128xf32>
    %55 = math.exp %54 : vector<8x128xf32>
    %cst_24 = arith.constant 1.000000e+00 : f32
    %56 = vector.broadcast %cst_24 : f32 to vector<8x128xf32>
    %57 = arith.addf %56, %55 : vector<8x128xf32>
    %58 = arith.divf %56, %57 : vector<8x128xf32>
    %59 = vector.extract_strided_slice %46 {offsets = [0, 256], sizes = [8, 128], strides = [1, 1]} : vector<8x512xf32> to vector<8x128xf32>
    %60 = math.tanh %59 : vector<8x128xf32>
    %61 = vector.extract_strided_slice %46 {offsets = [0, 384], sizes = [8, 128], strides = [1, 1]} : vector<8x512xf32> to vector<8x128xf32>
    %62 = arith.negf %61 : vector<8x128xf32>
    %63 = math.exp %62 : vector<8x128xf32>
    %cst_25 = arith.constant 1.000000e+00 : f32
    %64 = vector.broadcast %cst_25 : f32 to vector<8x128xf32>
    %65 = arith.addf %64, %63 : vector<8x128xf32>
    %66 = arith.divf %64, %65 : vector<8x128xf32>
    %67 = arith.mulf %58, %9 : vector<8x128xf32>
    %68 = arith.mulf %52, %60 : vector<8x128xf32>
    %69 = arith.addf %67, %68 : vector<8x128xf32>
    %70 = math.tanh %69 : vector<8x128xf32>
    %71 = arith.mulf %66, %70 : vector<8x128xf32>
    %c1_i32 = arith.constant 1 : i32
    %72 = arith.index_cast %c1_i32 : i32 to index
    %c0_26 = arith.constant 0 : index
    %c0_27 = arith.constant 0 : index
    %73 = vector.load %arg9[%72, %c0_26, %c0_27] : memref<8x8x512xf32, #tpu.memory_space<vmem>>, vector<1x8x512xf32>
    %74 = vector.shape_cast %73 : vector<1x8x512xf32> to vector<8x512xf32>
    %c0_28 = arith.constant 0 : index
    %c0_29 = arith.constant 0 : index
    %75 = vector.load %arg2[%c0_28, %c0_29] : memref<128x512xf32, #tpu.memory_space<vmem>>, vector<128x512xf32>
    %cst_30 = arith.constant dense<0.000000e+00> : vector<8x512xf32>
    %76 = tpu.matmul %40, %75, %cst_30 {dimension_numbers = #tpu.dot_dimension_numbers<[1], [0], [0], [1], [0, 0, 1, 1], [], []>} : vector<8x128xf32>, vector<128x512xf32>, vector<8x512xf32> -> vector<8x512xf32>
    %77 = arith.addf %74, %76 : vector<8x512xf32>
    %78 = vector.extract_strided_slice %77 {offsets = [0, 0], sizes = [8, 128], strides = [1, 1]} : vector<8x512xf32> to vector<8x128xf32>
    %79 = arith.negf %78 : vector<8x128xf32>
    %80 = math.exp %79 : vector<8x128xf32>
    %cst_31 = arith.constant 1.000000e+00 : f32
    %81 = vector.broadcast %cst_31 : f32 to vector<8x128xf32>
    %82 = arith.addf %81, %80 : vector<8x128xf32>
    %83 = arith.divf %81, %82 : vector<8x128xf32>
    %84 = vector.extract_strided_slice %77 {offsets = [0, 128], sizes = [8, 128], strides = [1, 1]} : vector<8x512xf32> to vector<8x128xf32>
    %85 = arith.negf %84 : vector<8x128xf32>
    %86 = math.exp %85 : vector<8x128xf32>
    %cst_32 = arith.constant 1.000000e+00 : f32
    %87 = vector.broadcast %cst_32 : f32 to vector<8x128xf32>
    %88 = arith.addf %87, %86 : vector<8x128xf32>
    %89 = arith.divf %87, %88 : vector<8x128xf32>
    %90 = vector.extract_strided_slice %77 {offsets = [0, 256], sizes = [8, 128], strides = [1, 1]} : vector<8x512xf32> to vector<8x128xf32>
    %91 = math.tanh %90 : vector<8x128xf32>
    %92 = vector.extract_strided_slice %77 {offsets = [0, 384], sizes = [8, 128], strides = [1, 1]} : vector<8x512xf32> to vector<8x128xf32>
    %93 = arith.negf %92 : vector<8x128xf32>
    %94 = math.exp %93 : vector<8x128xf32>
    %cst_33 = arith.constant 1.000000e+00 : f32
    %95 = vector.broadcast %cst_33 : f32 to vector<8x128xf32>
    %96 = arith.addf %95, %94 : vector<8x128xf32>
    %97 = arith.divf %95, %96 : vector<8x128xf32>
    %98 = arith.mulf %89, %38 : vector<8x128xf32>
    %99 = arith.mulf %83, %91 : vector<8x128xf32>
    %100 = arith.addf %98, %99 : vector<8x128xf32>
    %101 = math.tanh %100 : vector<8x128xf32>
    %102 = arith.mulf %97, %101 : vector<8x128xf32>
    %103 = tpu.concatenate %102, %71 in 1 : vector<8x128xf32>, vector<8x128xf32> -> vector<8x256xf32>
    %c0_34 = arith.constant 0 : index
    %c0_35 = arith.constant 0 : index
    %104 = vector.load %arg4[%c0_34, %c0_35] : memref<256x512xf32, #tpu.memory_space<vmem>>, vector<256x512xf32>
    %cst_36 = arith.constant dense<0.000000e+00> : vector<8x512xf32>
    %105 = tpu.matmul %103, %104, %cst_36 {dimension_numbers = #tpu.dot_dimension_numbers<[1], [0], [0], [1], [0, 0, 1, 1], [], []>} : vector<8x256xf32>, vector<256x512xf32>, vector<8x512xf32> -> vector<8x512xf32>
    %c0_37 = arith.constant 0 : index
    %c0_38 = arith.constant 0 : index
    %106 = vector.load %arg5[%c0_37, %c0_38] : memref<1x512xf32, #tpu.memory_space<vmem>>, vector<1x512xf32>
    %107 = vector.broadcast %106 : vector<1x512xf32> to vector<8x512xf32>
    %108 = arith.addf %105, %107 : vector<8x512xf32>
    %109 = vector.extract_strided_slice %108 {offsets = [0, 0], sizes = [8, 128], strides = [1, 1]} : vector<8x512xf32> to vector<8x128xf32>
    %110 = arith.negf %109 : vector<8x128xf32>
    %111 = math.exp %110 : vector<8x128xf32>
    %cst_39 = arith.constant 1.000000e+00 : f32
    %112 = vector.broadcast %cst_39 : f32 to vector<8x128xf32>
    %113 = arith.addf %112, %111 : vector<8x128xf32>
    %114 = arith.divf %112, %113 : vector<8x128xf32>
    %115 = vector.extract_strided_slice %108 {offsets = [0, 128], sizes = [8, 128], strides = [1, 1]} : vector<8x512xf32> to vector<8x128xf32>
    %116 = arith.negf %115 : vector<8x128xf32>
    %117 = math.exp %116 : vector<8x128xf32>
    %cst_40 = arith.constant 1.000000e+00 : f32
    %118 = vector.broadcast %cst_40 : f32 to vector<8x128xf32>
    %119 = arith.addf %118, %117 : vector<8x128xf32>
    %120 = arith.divf %118, %119 : vector<8x128xf32>
    %121 = vector.extract_strided_slice %108 {offsets = [0, 256], sizes = [8, 128], strides = [1, 1]} : vector<8x512xf32> to vector<8x128xf32>
    %122 = math.tanh %121 : vector<8x128xf32>
    %123 = vector.extract_strided_slice %108 {offsets = [0, 384], sizes = [8, 128], strides = [1, 1]} : vector<8x512xf32> to vector<8x128xf32>
    %124 = arith.negf %123 : vector<8x128xf32>
    %125 = math.exp %124 : vector<8x128xf32>
    %cst_41 = arith.constant 1.000000e+00 : f32
    %126 = vector.broadcast %cst_41 : f32 to vector<8x128xf32>
    %127 = arith.addf %126, %125 : vector<8x128xf32>
    %128 = arith.divf %126, %127 : vector<8x128xf32>
    %129 = arith.mulf %120, %69 : vector<8x128xf32>
    %130 = arith.mulf %114, %122 : vector<8x128xf32>
    %131 = arith.addf %129, %130 : vector<8x128xf32>
    %132 = math.tanh %131 : vector<8x128xf32>
    %133 = arith.mulf %128, %132 : vector<8x128xf32>
    %c2_i32 = arith.constant 2 : i32
    %134 = arith.index_cast %c2_i32 : i32 to index
    %c0_42 = arith.constant 0 : index
    %c0_43 = arith.constant 0 : index
    %135 = vector.load %arg9[%134, %c0_42, %c0_43] : memref<8x8x512xf32, #tpu.memory_space<vmem>>, vector<1x8x512xf32>
    %136 = vector.shape_cast %135 : vector<1x8x512xf32> to vector<8x512xf32>
    %c0_44 = arith.constant 0 : index
    %c0_45 = arith.constant 0 : index
    %137 = vector.load %arg2[%c0_44, %c0_45] : memref<128x512xf32, #tpu.memory_space<vmem>>, vector<128x512xf32>
    %cst_46 = arith.constant dense<0.000000e+00> : vector<8x512xf32>
    %138 = tpu.matmul %102, %137, %cst_46 {dimension_numbers = #tpu.dot_dimension_numbers<[1], [0], [0], [1], [0, 0, 1, 1], [], []>} : vector<8x128xf32>, vector<128x512xf32>, vector<8x512xf32> -> vector<8x512xf32>
    %139 = arith.addf %136, %138 : vector<8x512xf32>
    %140 = vector.extract_strided_slice %139 {offsets = [0, 0], sizes = [8, 128], strides = [1, 1]} : vector<8x512xf32> to vector<8x128xf32>
    %141 = arith.negf %140 : vector<8x128xf32>
    %142 = math.exp %141 : vector<8x128xf32>
    %cst_47 = arith.constant 1.000000e+00 : f32
    %143 = vector.broadcast %cst_47 : f32 to vector<8x128xf32>
    %144 = arith.addf %143, %142 : vector<8x128xf32>
    %145 = arith.divf %143, %144 : vector<8x128xf32>
    %146 = vector.extract_strided_slice %139 {offsets = [0, 128], sizes = [8, 128], strides = [1, 1]} : vector<8x512xf32> to vector<8x128xf32>
    %147 = arith.negf %146 : vector<8x128xf32>
    %148 = math.exp %147 : vector<8x128xf32>
    %cst_48 = arith.constant 1.000000e+00 : f32
    %149 = vector.broadcast %cst_48 : f32 to vector<8x128xf32>
    %150 = arith.addf %149, %148 : vector<8x128xf32>
    %151 = arith.divf %149, %150 : vector<8x128xf32>
    %152 = vector.extract_strided_slice %139 {offsets = [0, 256], sizes = [8, 128], strides = [1, 1]} : vector<8x512xf32> to vector<8x128xf32>
    %153 = math.tanh %152 : vector<8x128xf32>
    %154 = vector.extract_strided_slice %139 {offsets = [0, 384], sizes = [8, 128], strides = [1, 1]} : vector<8x512xf32> to vector<8x128xf32>
    %155 = arith.negf %154 : vector<8x128xf32>
    %156 = math.exp %155 : vector<8x128xf32>
    %cst_49 = arith.constant 1.000000e+00 : f32
    %157 = vector.broadcast %cst_49 : f32 to vector<8x128xf32>
    %158 = arith.addf %157, %156 : vector<8x128xf32>
    %159 = arith.divf %157, %158 : vector<8x128xf32>
    %160 = arith.mulf %151, %100 : vector<8x128xf32>
    %161 = arith.mulf %145, %153 : vector<8x128xf32>
    %162 = arith.addf %160, %161 : vector<8x128xf32>
    %163 = math.tanh %162 : vector<8x128xf32>
    %164 = arith.mulf %159, %163 : vector<8x128xf32>
    %165 = tpu.concatenate %164, %133 in 1 : vector<8x128xf32>, vector<8x128xf32> -> vector<8x256xf32>
    %c0_50 = arith.constant 0 : index
    %c0_51 = arith.constant 0 : index
    %166 = vector.load %arg4[%c0_50, %c0_51] : memref<256x512xf32, #tpu.memory_space<vmem>>, vector<256x512xf32>
    %cst_52 = arith.constant dense<0.000000e+00> : vector<8x512xf32>
    %167 = tpu.matmul %165, %166, %cst_52 {dimension_numbers = #tpu.dot_dimension_numbers<[1], [0], [0], [1], [0, 0, 1, 1], [], []>} : vector<8x256xf32>, vector<256x512xf32>, vector<8x512xf32> -> vector<8x512xf32>
    %c0_53 = arith.constant 0 : index
    %c0_54 = arith.constant 0 : index
    %168 = vector.load %arg5[%c0_53, %c0_54] : memref<1x512xf32, #tpu.memory_space<vmem>>, vector<1x512xf32>
    %169 = vector.broadcast %168 : vector<1x512xf32> to vector<8x512xf32>
    %170 = arith.addf %167, %169 : vector<8x512xf32>
    %171 = vector.extract_strided_slice %170 {offsets = [0, 0], sizes = [8, 128], strides = [1, 1]} : vector<8x512xf32> to vector<8x128xf32>
    %172 = arith.negf %171 : vector<8x128xf32>
    %173 = math.exp %172 : vector<8x128xf32>
    %cst_55 = arith.constant 1.000000e+00 : f32
    %174 = vector.broadcast %cst_55 : f32 to vector<8x128xf32>
    %175 = arith.addf %174, %173 : vector<8x128xf32>
    %176 = arith.divf %174, %175 : vector<8x128xf32>
    %177 = vector.extract_strided_slice %170 {offsets = [0, 128], sizes = [8, 128], strides = [1, 1]} : vector<8x512xf32> to vector<8x128xf32>
    %178 = arith.negf %177 : vector<8x128xf32>
    %179 = math.exp %178 : vector<8x128xf32>
    %cst_56 = arith.constant 1.000000e+00 : f32
    %180 = vector.broadcast %cst_56 : f32 to vector<8x128xf32>
    %181 = arith.addf %180, %179 : vector<8x128xf32>
    %182 = arith.divf %180, %181 : vector<8x128xf32>
    %183 = vector.extract_strided_slice %170 {offsets = [0, 256], sizes = [8, 128], strides = [1, 1]} : vector<8x512xf32> to vector<8x128xf32>
    %184 = math.tanh %183 : vector<8x128xf32>
    %185 = vector.extract_strided_slice %170 {offsets = [0, 384], sizes = [8, 128], strides = [1, 1]} : vector<8x512xf32> to vector<8x128xf32>
    %186 = arith.negf %185 : vector<8x128xf32>
    %187 = math.exp %186 : vector<8x128xf32>
    %cst_57 = arith.constant 1.000000e+00 : f32
    %188 = vector.broadcast %cst_57 : f32 to vector<8x128xf32>
    %189 = arith.addf %188, %187 : vector<8x128xf32>
    %190 = arith.divf %188, %189 : vector<8x128xf32>
    %191 = arith.mulf %182, %131 : vector<8x128xf32>
    %192 = arith.mulf %176, %184 : vector<8x128xf32>
    %193 = arith.addf %191, %192 : vector<8x128xf32>
    %194 = math.tanh %193 : vector<8x128xf32>
    %195 = arith.mulf %190, %194 : vector<8x128xf32>
    %c3_i32 = arith.constant 3 : i32
    %196 = arith.index_cast %c3_i32 : i32 to index
    %c0_58 = arith.constant 0 : index
    %c0_59 = arith.constant 0 : index
    %197 = vector.load %arg9[%196, %c0_58, %c0_59] : memref<8x8x512xf32, #tpu.memory_space<vmem>>, vector<1x8x512xf32>
    %198 = vector.shape_cast %197 : vector<1x8x512xf32> to vector<8x512xf32>
    %c0_60 = arith.constant 0 : index
    %c0_61 = arith.constant 0 : index
    %199 = vector.load %arg2[%c0_60, %c0_61] : memref<128x512xf32, #tpu.memory_space<vmem>>, vector<128x512xf32>
    %cst_62 = arith.constant dense<0.000000e+00> : vector<8x512xf32>
    %200 = tpu.matmul %164, %199, %cst_62 {dimension_numbers = #tpu.dot_dimension_numbers<[1], [0], [0], [1], [0, 0, 1, 1], [], []>} : vector<8x128xf32>, vector<128x512xf32>, vector<8x512xf32> -> vector<8x512xf32>
    %201 = arith.addf %198, %200 : vector<8x512xf32>
    %202 = vector.extract_strided_slice %201 {offsets = [0, 0], sizes = [8, 128], strides = [1, 1]} : vector<8x512xf32> to vector<8x128xf32>
    %203 = arith.negf %202 : vector<8x128xf32>
    %204 = math.exp %203 : vector<8x128xf32>
    %cst_63 = arith.constant 1.000000e+00 : f32
    %205 = vector.broadcast %cst_63 : f32 to vector<8x128xf32>
    %206 = arith.addf %205, %204 : vector<8x128xf32>
    %207 = arith.divf %205, %206 : vector<8x128xf32>
    %208 = vector.extract_strided_slice %201 {offsets = [0, 128], sizes = [8, 128], strides = [1, 1]} : vector<8x512xf32> to vector<8x128xf32>
    %209 = arith.negf %208 : vector<8x128xf32>
    %210 = math.exp %209 : vector<8x128xf32>
    %cst_64 = arith.constant 1.000000e+00 : f32
    %211 = vector.broadcast %cst_64 : f32 to vector<8x128xf32>
    %212 = arith.addf %211, %210 : vector<8x128xf32>
    %213 = arith.divf %211, %212 : vector<8x128xf32>
    %214 = vector.extract_strided_slice %201 {offsets = [0, 256], sizes = [8, 128], strides = [1, 1]} : vector<8x512xf32> to vector<8x128xf32>
    %215 = math.tanh %214 : vector<8x128xf32>
    %216 = vector.extract_strided_slice %201 {offsets = [0, 384], sizes = [8, 128], strides = [1, 1]} : vector<8x512xf32> to vector<8x128xf32>
    %217 = arith.negf %216 : vector<8x128xf32>
    %218 = math.exp %217 : vector<8x128xf32>
    %cst_65 = arith.constant 1.000000e+00 : f32
    %219 = vector.broadcast %cst_65 : f32 to vector<8x128xf32>
    %220 = arith.addf %219, %218 : vector<8x128xf32>
    %221 = arith.divf %219, %220 : vector<8x128xf32>
    %222 = arith.mulf %213, %162 : vector<8x128xf32>
    %223 = arith.mulf %207, %215 : vector<8x128xf32>
    %224 = arith.addf %222, %223 : vector<8x128xf32>
    %225 = math.tanh %224 : vector<8x128xf32>
    %226 = arith.mulf %221, %225 : vector<8x128xf32>
    %227 = tpu.concatenate %226, %195 in 1 : vector<8x128xf32>, vector<8x128xf32> -> vector<8x256xf32>
    %c0_66 = arith.constant 0 : index
    %c0_67 = arith.constant 0 : index
    %228 = vector.load %arg4[%c0_66, %c0_67] : memref<256x512xf32, #tpu.memory_space<vmem>>, vector<256x512xf32>
    %cst_68 = arith.constant dense<0.000000e+00> : vector<8x512xf32>
    %229 = tpu.matmul %227, %228, %cst_68 {dimension_numbers = #tpu.dot_dimension_numbers<[1], [0], [0], [1], [0, 0, 1, 1], [], []>} : vector<8x256xf32>, vector<256x512xf32>, vector<8x512xf32> -> vector<8x512xf32>
    %c0_69 = arith.constant 0 : index
    %c0_70 = arith.constant 0 : index
    %230 = vector.load %arg5[%c0_69, %c0_70] : memref<1x512xf32, #tpu.memory_space<vmem>>, vector<1x512xf32>
    %231 = vector.broadcast %230 : vector<1x512xf32> to vector<8x512xf32>
    %232 = arith.addf %229, %231 : vector<8x512xf32>
    %233 = vector.extract_strided_slice %232 {offsets = [0, 0], sizes = [8, 128], strides = [1, 1]} : vector<8x512xf32> to vector<8x128xf32>
    %234 = arith.negf %233 : vector<8x128xf32>
    %235 = math.exp %234 : vector<8x128xf32>
    %cst_71 = arith.constant 1.000000e+00 : f32
    %236 = vector.broadcast %cst_71 : f32 to vector<8x128xf32>
    %237 = arith.addf %236, %235 : vector<8x128xf32>
    %238 = arith.divf %236, %237 : vector<8x128xf32>
    %239 = vector.extract_strided_slice %232 {offsets = [0, 128], sizes = [8, 128], strides = [1, 1]} : vector<8x512xf32> to vector<8x128xf32>
    %240 = arith.negf %239 : vector<8x128xf32>
    %241 = math.exp %240 : vector<8x128xf32>
    %cst_72 = arith.constant 1.000000e+00 : f32
    %242 = vector.broadcast %cst_72 : f32 to vector<8x128xf32>
    %243 = arith.addf %242, %241 : vector<8x128xf32>
    %244 = arith.divf %242, %243 : vector<8x128xf32>
    %245 = vector.extract_strided_slice %232 {offsets = [0, 256], sizes = [8, 128], strides = [1, 1]} : vector<8x512xf32> to vector<8x128xf32>
    %246 = math.tanh %245 : vector<8x128xf32>
    %247 = vector.extract_strided_slice %232 {offsets = [0, 384], sizes = [8, 128], strides = [1, 1]} : vector<8x512xf32> to vector<8x128xf32>
    %248 = arith.negf %247 : vector<8x128xf32>
    %249 = math.exp %248 : vector<8x128xf32>
    %cst_73 = arith.constant 1.000000e+00 : f32
    %250 = vector.broadcast %cst_73 : f32 to vector<8x128xf32>
    %251 = arith.addf %250, %249 : vector<8x128xf32>
    %252 = arith.divf %250, %251 : vector<8x128xf32>
    %253 = arith.mulf %244, %193 : vector<8x128xf32>
    %254 = arith.mulf %238, %246 : vector<8x128xf32>
    %255 = arith.addf %253, %254 : vector<8x128xf32>
    %256 = math.tanh %255 : vector<8x128xf32>
    %257 = arith.mulf %252, %256 : vector<8x128xf32>
    %c4_i32 = arith.constant 4 : i32
    %258 = arith.index_cast %c4_i32 : i32 to index
    %c0_74 = arith.constant 0 : index
    %c0_75 = arith.constant 0 : index
    %259 = vector.load %arg9[%258, %c0_74, %c0_75] : memref<8x8x512xf32, #tpu.memory_space<vmem>>, vector<1x8x512xf32>
    %260 = vector.shape_cast %259 : vector<1x8x512xf32> to vector<8x512xf32>
    %c0_76 = arith.constant 0 : index
    %c0_77 = arith.constant 0 : index
    %261 = vector.load %arg2[%c0_76, %c0_77] : memref<128x512xf32, #tpu.memory_space<vmem>>, vector<128x512xf32>
    %cst_78 = arith.constant dense<0.000000e+00> : vector<8x512xf32>
    %262 = tpu.matmul %226, %261, %cst_78 {dimension_numbers = #tpu.dot_dimension_numbers<[1], [0], [0], [1], [0, 0, 1, 1], [], []>} : vector<8x128xf32>, vector<128x512xf32>, vector<8x512xf32> -> vector<8x512xf32>
    %263 = arith.addf %260, %262 : vector<8x512xf32>
    %264 = vector.extract_strided_slice %263 {offsets = [0, 0], sizes = [8, 128], strides = [1, 1]} : vector<8x512xf32> to vector<8x128xf32>
    %265 = arith.negf %264 : vector<8x128xf32>
    %266 = math.exp %265 : vector<8x128xf32>
    %cst_79 = arith.constant 1.000000e+00 : f32
    %267 = vector.broadcast %cst_79 : f32 to vector<8x128xf32>
    %268 = arith.addf %267, %266 : vector<8x128xf32>
    %269 = arith.divf %267, %268 : vector<8x128xf32>
    %270 = vector.extract_strided_slice %263 {offsets = [0, 128], sizes = [8, 128], strides = [1, 1]} : vector<8x512xf32> to vector<8x128xf32>
    %271 = arith.negf %270 : vector<8x128xf32>
    %272 = math.exp %271 : vector<8x128xf32>
    %cst_80 = arith.constant 1.000000e+00 : f32
    %273 = vector.broadcast %cst_80 : f32 to vector<8x128xf32>
    %274 = arith.addf %273, %272 : vector<8x128xf32>
    %275 = arith.divf %273, %274 : vector<8x128xf32>
    %276 = vector.extract_strided_slice %263 {offsets = [0, 256], sizes = [8, 128], strides = [1, 1]} : vector<8x512xf32> to vector<8x128xf32>
    %277 = math.tanh %276 : vector<8x128xf32>
    %278 = vector.extract_strided_slice %263 {offsets = [0, 384], sizes = [8, 128], strides = [1, 1]} : vector<8x512xf32> to vector<8x128xf32>
    %279 = arith.negf %278 : vector<8x128xf32>
    %280 = math.exp %279 : vector<8x128xf32>
    %cst_81 = arith.constant 1.000000e+00 : f32
    %281 = vector.broadcast %cst_81 : f32 to vector<8x128xf32>
    %282 = arith.addf %281, %280 : vector<8x128xf32>
    %283 = arith.divf %281, %282 : vector<8x128xf32>
    %284 = arith.mulf %275, %224 : vector<8x128xf32>
    %285 = arith.mulf %269, %277 : vector<8x128xf32>
    %286 = arith.addf %284, %285 : vector<8x128xf32>
    %287 = math.tanh %286 : vector<8x128xf32>
    %288 = arith.mulf %283, %287 : vector<8x128xf32>
    %289 = tpu.concatenate %288, %257 in 1 : vector<8x128xf32>, vector<8x128xf32> -> vector<8x256xf32>
    %c0_82 = arith.constant 0 : index
    %c0_83 = arith.constant 0 : index
    %290 = vector.load %arg4[%c0_82, %c0_83] : memref<256x512xf32, #tpu.memory_space<vmem>>, vector<256x512xf32>
    %cst_84 = arith.constant dense<0.000000e+00> : vector<8x512xf32>
    %291 = tpu.matmul %289, %290, %cst_84 {dimension_numbers = #tpu.dot_dimension_numbers<[1], [0], [0], [1], [0, 0, 1, 1], [], []>} : vector<8x256xf32>, vector<256x512xf32>, vector<8x512xf32> -> vector<8x512xf32>
    %c0_85 = arith.constant 0 : index
    %c0_86 = arith.constant 0 : index
    %292 = vector.load %arg5[%c0_85, %c0_86] : memref<1x512xf32, #tpu.memory_space<vmem>>, vector<1x512xf32>
    %293 = vector.broadcast %292 : vector<1x512xf32> to vector<8x512xf32>
    %294 = arith.addf %291, %293 : vector<8x512xf32>
    %295 = vector.extract_strided_slice %294 {offsets = [0, 0], sizes = [8, 128], strides = [1, 1]} : vector<8x512xf32> to vector<8x128xf32>
    %296 = arith.negf %295 : vector<8x128xf32>
    %297 = math.exp %296 : vector<8x128xf32>
    %cst_87 = arith.constant 1.000000e+00 : f32
    %298 = vector.broadcast %cst_87 : f32 to vector<8x128xf32>
    %299 = arith.addf %298, %297 : vector<8x128xf32>
    %300 = arith.divf %298, %299 : vector<8x128xf32>
    %301 = vector.extract_strided_slice %294 {offsets = [0, 128], sizes = [8, 128], strides = [1, 1]} : vector<8x512xf32> to vector<8x128xf32>
    %302 = arith.negf %301 : vector<8x128xf32>
    %303 = math.exp %302 : vector<8x128xf32>
    %cst_88 = arith.constant 1.000000e+00 : f32
    %304 = vector.broadcast %cst_88 : f32 to vector<8x128xf32>
    %305 = arith.addf %304, %303 : vector<8x128xf32>
    %306 = arith.divf %304, %305 : vector<8x128xf32>
    %307 = vector.extract_strided_slice %294 {offsets = [0, 256], sizes = [8, 128], strides = [1, 1]} : vector<8x512xf32> to vector<8x128xf32>
    %308 = math.tanh %307 : vector<8x128xf32>
    %309 = vector.extract_strided_slice %294 {offsets = [0, 384], sizes = [8, 128], strides = [1, 1]} : vector<8x512xf32> to vector<8x128xf32>
    %310 = arith.negf %309 : vector<8x128xf32>
    %311 = math.exp %310 : vector<8x128xf32>
    %cst_89 = arith.constant 1.000000e+00 : f32
    %312 = vector.broadcast %cst_89 : f32 to vector<8x128xf32>
    %313 = arith.addf %312, %311 : vector<8x128xf32>
    %314 = arith.divf %312, %313 : vector<8x128xf32>
    %315 = arith.mulf %306, %255 : vector<8x128xf32>
    %316 = arith.mulf %300, %308 : vector<8x128xf32>
    %317 = arith.addf %315, %316 : vector<8x128xf32>
    %318 = math.tanh %317 : vector<8x128xf32>
    %319 = arith.mulf %314, %318 : vector<8x128xf32>
    %c5_i32 = arith.constant 5 : i32
    %320 = arith.index_cast %c5_i32 : i32 to index
    %c0_90 = arith.constant 0 : index
    %c0_91 = arith.constant 0 : index
    %321 = vector.load %arg9[%320, %c0_90, %c0_91] : memref<8x8x512xf32, #tpu.memory_space<vmem>>, vector<1x8x512xf32>
    %322 = vector.shape_cast %321 : vector<1x8x512xf32> to vector<8x512xf32>
    %c0_92 = arith.constant 0 : index
    %c0_93 = arith.constant 0 : index
    %323 = vector.load %arg2[%c0_92, %c0_93] : memref<128x512xf32, #tpu.memory_space<vmem>>, vector<128x512xf32>
    %cst_94 = arith.constant dense<0.000000e+00> : vector<8x512xf32>
    %324 = tpu.matmul %288, %323, %cst_94 {dimension_numbers = #tpu.dot_dimension_numbers<[1], [0], [0], [1], [0, 0, 1, 1], [], []>} : vector<8x128xf32>, vector<128x512xf32>, vector<8x512xf32> -> vector<8x512xf32>
    %325 = arith.addf %322, %324 : vector<8x512xf32>
    %326 = vector.extract_strided_slice %325 {offsets = [0, 0], sizes = [8, 128], strides = [1, 1]} : vector<8x512xf32> to vector<8x128xf32>
    %327 = arith.negf %326 : vector<8x128xf32>
    %328 = math.exp %327 : vector<8x128xf32>
    %cst_95 = arith.constant 1.000000e+00 : f32
    %329 = vector.broadcast %cst_95 : f32 to vector<8x128xf32>
    %330 = arith.addf %329, %328 : vector<8x128xf32>
    %331 = arith.divf %329, %330 : vector<8x128xf32>
    %332 = vector.extract_strided_slice %325 {offsets = [0, 128], sizes = [8, 128], strides = [1, 1]} : vector<8x512xf32> to vector<8x128xf32>
    %333 = arith.negf %332 : vector<8x128xf32>
    %334 = math.exp %333 : vector<8x128xf32>
    %cst_96 = arith.constant 1.000000e+00 : f32
    %335 = vector.broadcast %cst_96 : f32 to vector<8x128xf32>
    %336 = arith.addf %335, %334 : vector<8x128xf32>
    %337 = arith.divf %335, %336 : vector<8x128xf32>
    %338 = vector.extract_strided_slice %325 {offsets = [0, 256], sizes = [8, 128], strides = [1, 1]} : vector<8x512xf32> to vector<8x128xf32>
    %339 = math.tanh %338 : vector<8x128xf32>
    %340 = vector.extract_strided_slice %325 {offsets = [0, 384], sizes = [8, 128], strides = [1, 1]} : vector<8x512xf32> to vector<8x128xf32>
    %341 = arith.negf %340 : vector<8x128xf32>
    %342 = math.exp %341 : vector<8x128xf32>
    %cst_97 = arith.constant 1.000000e+00 : f32
    %343 = vector.broadcast %cst_97 : f32 to vector<8x128xf32>
    %344 = arith.addf %343, %342 : vector<8x128xf32>
    %345 = arith.divf %343, %344 : vector<8x128xf32>
    %346 = arith.mulf %337, %286 : vector<8x128xf32>
    %347 = arith.mulf %331, %339 : vector<8x128xf32>
    %348 = arith.addf %346, %347 : vector<8x128xf32>
    %349 = math.tanh %348 : vector<8x128xf32>
    %350 = arith.mulf %345, %349 : vector<8x128xf32>
    %351 = tpu.concatenate %350, %319 in 1 : vector<8x128xf32>, vector<8x128xf32> -> vector<8x256xf32>
    %c0_98 = arith.constant 0 : index
    %c0_99 = arith.constant 0 : index
    %352 = vector.load %arg4[%c0_98, %c0_99] : memref<256x512xf32, #tpu.memory_space<vmem>>, vector<256x512xf32>
    %cst_100 = arith.constant dense<0.000000e+00> : vector<8x512xf32>
    %353 = tpu.matmul %351, %352, %cst_100 {dimension_numbers = #tpu.dot_dimension_numbers<[1], [0], [0], [1], [0, 0, 1, 1], [], []>} : vector<8x256xf32>, vector<256x512xf32>, vector<8x512xf32> -> vector<8x512xf32>
    %c0_101 = arith.constant 0 : index
    %c0_102 = arith.constant 0 : index
    %354 = vector.load %arg5[%c0_101, %c0_102] : memref<1x512xf32, #tpu.memory_space<vmem>>, vector<1x512xf32>
    %355 = vector.broadcast %354 : vector<1x512xf32> to vector<8x512xf32>
    %356 = arith.addf %353, %355 : vector<8x512xf32>
    %357 = vector.extract_strided_slice %356 {offsets = [0, 0], sizes = [8, 128], strides = [1, 1]} : vector<8x512xf32> to vector<8x128xf32>
    %358 = arith.negf %357 : vector<8x128xf32>
    %359 = math.exp %358 : vector<8x128xf32>
    %cst_103 = arith.constant 1.000000e+00 : f32
    %360 = vector.broadcast %cst_103 : f32 to vector<8x128xf32>
    %361 = arith.addf %360, %359 : vector<8x128xf32>
    %362 = arith.divf %360, %361 : vector<8x128xf32>
    %363 = vector.extract_strided_slice %356 {offsets = [0, 128], sizes = [8, 128], strides = [1, 1]} : vector<8x512xf32> to vector<8x128xf32>
    %364 = arith.negf %363 : vector<8x128xf32>
    %365 = math.exp %364 : vector<8x128xf32>
    %cst_104 = arith.constant 1.000000e+00 : f32
    %366 = vector.broadcast %cst_104 : f32 to vector<8x128xf32>
    %367 = arith.addf %366, %365 : vector<8x128xf32>
    %368 = arith.divf %366, %367 : vector<8x128xf32>
    %369 = vector.extract_strided_slice %356 {offsets = [0, 256], sizes = [8, 128], strides = [1, 1]} : vector<8x512xf32> to vector<8x128xf32>
    %370 = math.tanh %369 : vector<8x128xf32>
    %371 = vector.extract_strided_slice %356 {offsets = [0, 384], sizes = [8, 128], strides = [1, 1]} : vector<8x512xf32> to vector<8x128xf32>
    %372 = arith.negf %371 : vector<8x128xf32>
    %373 = math.exp %372 : vector<8x128xf32>
    %cst_105 = arith.constant 1.000000e+00 : f32
    %374 = vector.broadcast %cst_105 : f32 to vector<8x128xf32>
    %375 = arith.addf %374, %373 : vector<8x128xf32>
    %376 = arith.divf %374, %375 : vector<8x128xf32>
    %377 = arith.mulf %368, %317 : vector<8x128xf32>
    %378 = arith.mulf %362, %370 : vector<8x128xf32>
    %379 = arith.addf %377, %378 : vector<8x128xf32>
    %380 = math.tanh %379 : vector<8x128xf32>
    %381 = arith.mulf %376, %380 : vector<8x128xf32>
    %c6_i32 = arith.constant 6 : i32
    %382 = arith.index_cast %c6_i32 : i32 to index
    %c0_106 = arith.constant 0 : index
    %c0_107 = arith.constant 0 : index
    %383 = vector.load %arg9[%382, %c0_106, %c0_107] : memref<8x8x512xf32, #tpu.memory_space<vmem>>, vector<1x8x512xf32>
    %384 = vector.shape_cast %383 : vector<1x8x512xf32> to vector<8x512xf32>
    %c0_108 = arith.constant 0 : index
    %c0_109 = arith.constant 0 : index
    %385 = vector.load %arg2[%c0_108, %c0_109] : memref<128x512xf32, #tpu.memory_space<vmem>>, vector<128x512xf32>
    %cst_110 = arith.constant dense<0.000000e+00> : vector<8x512xf32>
    %386 = tpu.matmul %350, %385, %cst_110 {dimension_numbers = #tpu.dot_dimension_numbers<[1], [0], [0], [1], [0, 0, 1, 1], [], []>} : vector<8x128xf32>, vector<128x512xf32>, vector<8x512xf32> -> vector<8x512xf32>
    %387 = arith.addf %384, %386 : vector<8x512xf32>
    %388 = vector.extract_strided_slice %387 {offsets = [0, 0], sizes = [8, 128], strides = [1, 1]} : vector<8x512xf32> to vector<8x128xf32>
    %389 = arith.negf %388 : vector<8x128xf32>
    %390 = math.exp %389 : vector<8x128xf32>
    %cst_111 = arith.constant 1.000000e+00 : f32
    %391 = vector.broadcast %cst_111 : f32 to vector<8x128xf32>
    %392 = arith.addf %391, %390 : vector<8x128xf32>
    %393 = arith.divf %391, %392 : vector<8x128xf32>
    %394 = vector.extract_strided_slice %387 {offsets = [0, 128], sizes = [8, 128], strides = [1, 1]} : vector<8x512xf32> to vector<8x128xf32>
    %395 = arith.negf %394 : vector<8x128xf32>
    %396 = math.exp %395 : vector<8x128xf32>
    %cst_112 = arith.constant 1.000000e+00 : f32
    %397 = vector.broadcast %cst_112 : f32 to vector<8x128xf32>
    %398 = arith.addf %397, %396 : vector<8x128xf32>
    %399 = arith.divf %397, %398 : vector<8x128xf32>
    %400 = vector.extract_strided_slice %387 {offsets = [0, 256], sizes = [8, 128], strides = [1, 1]} : vector<8x512xf32> to vector<8x128xf32>
    %401 = math.tanh %400 : vector<8x128xf32>
    %402 = vector.extract_strided_slice %387 {offsets = [0, 384], sizes = [8, 128], strides = [1, 1]} : vector<8x512xf32> to vector<8x128xf32>
    %403 = arith.negf %402 : vector<8x128xf32>
    %404 = math.exp %403 : vector<8x128xf32>
    %cst_113 = arith.constant 1.000000e+00 : f32
    %405 = vector.broadcast %cst_113 : f32 to vector<8x128xf32>
    %406 = arith.addf %405, %404 : vector<8x128xf32>
    %407 = arith.divf %405, %406 : vector<8x128xf32>
    %408 = arith.mulf %399, %348 : vector<8x128xf32>
    %409 = arith.mulf %393, %401 : vector<8x128xf32>
    %410 = arith.addf %408, %409 : vector<8x128xf32>
    %411 = math.tanh %410 : vector<8x128xf32>
    %412 = arith.mulf %407, %411 : vector<8x128xf32>
    %413 = tpu.concatenate %412, %381 in 1 : vector<8x128xf32>, vector<8x128xf32> -> vector<8x256xf32>
    %c0_114 = arith.constant 0 : index
    %c0_115 = arith.constant 0 : index
    %414 = vector.load %arg4[%c0_114, %c0_115] : memref<256x512xf32, #tpu.memory_space<vmem>>, vector<256x512xf32>
    %cst_116 = arith.constant dense<0.000000e+00> : vector<8x512xf32>
    %415 = tpu.matmul %413, %414, %cst_116 {dimension_numbers = #tpu.dot_dimension_numbers<[1], [0], [0], [1], [0, 0, 1, 1], [], []>} : vector<8x256xf32>, vector<256x512xf32>, vector<8x512xf32> -> vector<8x512xf32>
    %c0_117 = arith.constant 0 : index
    %c0_118 = arith.constant 0 : index
    %416 = vector.load %arg5[%c0_117, %c0_118] : memref<1x512xf32, #tpu.memory_space<vmem>>, vector<1x512xf32>
    %417 = vector.broadcast %416 : vector<1x512xf32> to vector<8x512xf32>
    %418 = arith.addf %415, %417 : vector<8x512xf32>
    %419 = vector.extract_strided_slice %418 {offsets = [0, 0], sizes = [8, 128], strides = [1, 1]} : vector<8x512xf32> to vector<8x128xf32>
    %420 = arith.negf %419 : vector<8x128xf32>
    %421 = math.exp %420 : vector<8x128xf32>
    %cst_119 = arith.constant 1.000000e+00 : f32
    %422 = vector.broadcast %cst_119 : f32 to vector<8x128xf32>
    %423 = arith.addf %422, %421 : vector<8x128xf32>
    %424 = arith.divf %422, %423 : vector<8x128xf32>
    %425 = vector.extract_strided_slice %418 {offsets = [0, 128], sizes = [8, 128], strides = [1, 1]} : vector<8x512xf32> to vector<8x128xf32>
    %426 = arith.negf %425 : vector<8x128xf32>
    %427 = math.exp %426 : vector<8x128xf32>
    %cst_120 = arith.constant 1.000000e+00 : f32
    %428 = vector.broadcast %cst_120 : f32 to vector<8x128xf32>
    %429 = arith.addf %428, %427 : vector<8x128xf32>
    %430 = arith.divf %428, %429 : vector<8x128xf32>
    %431 = vector.extract_strided_slice %418 {offsets = [0, 256], sizes = [8, 128], strides = [1, 1]} : vector<8x512xf32> to vector<8x128xf32>
    %432 = math.tanh %431 : vector<8x128xf32>
    %433 = vector.extract_strided_slice %418 {offsets = [0, 384], sizes = [8, 128], strides = [1, 1]} : vector<8x512xf32> to vector<8x128xf32>
    %434 = arith.negf %433 : vector<8x128xf32>
    %435 = math.exp %434 : vector<8x128xf32>
    %cst_121 = arith.constant 1.000000e+00 : f32
    %436 = vector.broadcast %cst_121 : f32 to vector<8x128xf32>
    %437 = arith.addf %436, %435 : vector<8x128xf32>
    %438 = arith.divf %436, %437 : vector<8x128xf32>
    %439 = arith.mulf %430, %379 : vector<8x128xf32>
    %440 = arith.mulf %424, %432 : vector<8x128xf32>
    %441 = arith.addf %439, %440 : vector<8x128xf32>
    %442 = math.tanh %441 : vector<8x128xf32>
    %443 = arith.mulf %438, %442 : vector<8x128xf32>
    %c7_i32 = arith.constant 7 : i32
    %444 = arith.index_cast %c7_i32 : i32 to index
    %c0_122 = arith.constant 0 : index
    %c0_123 = arith.constant 0 : index
    %445 = vector.load %arg9[%444, %c0_122, %c0_123] : memref<8x8x512xf32, #tpu.memory_space<vmem>>, vector<1x8x512xf32>
    %446 = vector.shape_cast %445 : vector<1x8x512xf32> to vector<8x512xf32>
    %c0_124 = arith.constant 0 : index
    %c0_125 = arith.constant 0 : index
    %447 = vector.load %arg2[%c0_124, %c0_125] : memref<128x512xf32, #tpu.memory_space<vmem>>, vector<128x512xf32>
    %cst_126 = arith.constant dense<0.000000e+00> : vector<8x512xf32>
    %448 = tpu.matmul %412, %447, %cst_126 {dimension_numbers = #tpu.dot_dimension_numbers<[1], [0], [0], [1], [0, 0, 1, 1], [], []>} : vector<8x128xf32>, vector<128x512xf32>, vector<8x512xf32> -> vector<8x512xf32>
    %449 = arith.addf %446, %448 : vector<8x512xf32>
    %450 = vector.extract_strided_slice %449 {offsets = [0, 0], sizes = [8, 128], strides = [1, 1]} : vector<8x512xf32> to vector<8x128xf32>
    %451 = arith.negf %450 : vector<8x128xf32>
    %452 = math.exp %451 : vector<8x128xf32>
    %cst_127 = arith.constant 1.000000e+00 : f32
    %453 = vector.broadcast %cst_127 : f32 to vector<8x128xf32>
    %454 = arith.addf %453, %452 : vector<8x128xf32>
    %455 = arith.divf %453, %454 : vector<8x128xf32>
    %456 = vector.extract_strided_slice %449 {offsets = [0, 128], sizes = [8, 128], strides = [1, 1]} : vector<8x512xf32> to vector<8x128xf32>
    %457 = arith.negf %456 : vector<8x128xf32>
    %458 = math.exp %457 : vector<8x128xf32>
    %cst_128 = arith.constant 1.000000e+00 : f32
    %459 = vector.broadcast %cst_128 : f32 to vector<8x128xf32>
    %460 = arith.addf %459, %458 : vector<8x128xf32>
    %461 = arith.divf %459, %460 : vector<8x128xf32>
    %462 = vector.extract_strided_slice %449 {offsets = [0, 256], sizes = [8, 128], strides = [1, 1]} : vector<8x512xf32> to vector<8x128xf32>
    %463 = math.tanh %462 : vector<8x128xf32>
    %464 = vector.extract_strided_slice %449 {offsets = [0, 384], sizes = [8, 128], strides = [1, 1]} : vector<8x512xf32> to vector<8x128xf32>
    %465 = arith.negf %464 : vector<8x128xf32>
    %466 = math.exp %465 : vector<8x128xf32>
    %cst_129 = arith.constant 1.000000e+00 : f32
    %467 = vector.broadcast %cst_129 : f32 to vector<8x128xf32>
    %468 = arith.addf %467, %466 : vector<8x128xf32>
    %469 = arith.divf %467, %468 : vector<8x128xf32>
    %470 = arith.mulf %461, %410 : vector<8x128xf32>
    %471 = arith.mulf %455, %463 : vector<8x128xf32>
    %472 = arith.addf %470, %471 : vector<8x128xf32>
    %473 = math.tanh %472 : vector<8x128xf32>
    %474 = arith.mulf %469, %473 : vector<8x128xf32>
    %475 = tpu.concatenate %474, %443 in 1 : vector<8x128xf32>, vector<8x128xf32> -> vector<8x256xf32>
    %c0_130 = arith.constant 0 : index
    %c0_131 = arith.constant 0 : index
    %476 = vector.load %arg4[%c0_130, %c0_131] : memref<256x512xf32, #tpu.memory_space<vmem>>, vector<256x512xf32>
    %cst_132 = arith.constant dense<0.000000e+00> : vector<8x512xf32>
    %477 = tpu.matmul %475, %476, %cst_132 {dimension_numbers = #tpu.dot_dimension_numbers<[1], [0], [0], [1], [0, 0, 1, 1], [], []>} : vector<8x256xf32>, vector<256x512xf32>, vector<8x512xf32> -> vector<8x512xf32>
    %c0_133 = arith.constant 0 : index
    %c0_134 = arith.constant 0 : index
    %478 = vector.load %arg5[%c0_133, %c0_134] : memref<1x512xf32, #tpu.memory_space<vmem>>, vector<1x512xf32>
    %479 = vector.broadcast %478 : vector<1x512xf32> to vector<8x512xf32>
    %480 = arith.addf %477, %479 : vector<8x512xf32>
    %481 = vector.extract_strided_slice %480 {offsets = [0, 0], sizes = [8, 128], strides = [1, 1]} : vector<8x512xf32> to vector<8x128xf32>
    %482 = arith.negf %481 : vector<8x128xf32>
    %483 = math.exp %482 : vector<8x128xf32>
    %cst_135 = arith.constant 1.000000e+00 : f32
    %484 = vector.broadcast %cst_135 : f32 to vector<8x128xf32>
    %485 = arith.addf %484, %483 : vector<8x128xf32>
    %486 = arith.divf %484, %485 : vector<8x128xf32>
    %487 = vector.extract_strided_slice %480 {offsets = [0, 128], sizes = [8, 128], strides = [1, 1]} : vector<8x512xf32> to vector<8x128xf32>
    %488 = arith.negf %487 : vector<8x128xf32>
    %489 = math.exp %488 : vector<8x128xf32>
    %cst_136 = arith.constant 1.000000e+00 : f32
    %490 = vector.broadcast %cst_136 : f32 to vector<8x128xf32>
    %491 = arith.addf %490, %489 : vector<8x128xf32>
    %492 = arith.divf %490, %491 : vector<8x128xf32>
    %493 = vector.extract_strided_slice %480 {offsets = [0, 256], sizes = [8, 128], strides = [1, 1]} : vector<8x512xf32> to vector<8x128xf32>
    %494 = math.tanh %493 : vector<8x128xf32>
    %495 = vector.extract_strided_slice %480 {offsets = [0, 384], sizes = [8, 128], strides = [1, 1]} : vector<8x512xf32> to vector<8x128xf32>
    %496 = arith.negf %495 : vector<8x128xf32>
    %497 = math.exp %496 : vector<8x128xf32>
    %cst_137 = arith.constant 1.000000e+00 : f32
    %498 = vector.broadcast %cst_137 : f32 to vector<8x128xf32>
    %499 = arith.addf %498, %497 : vector<8x128xf32>
    %500 = arith.divf %498, %499 : vector<8x128xf32>
    %501 = arith.mulf %492, %441 : vector<8x128xf32>
    %502 = arith.mulf %486, %494 : vector<8x128xf32>
    %503 = arith.addf %501, %502 : vector<8x128xf32>
    %504 = math.tanh %503 : vector<8x128xf32>
    %505 = arith.mulf %500, %504 : vector<8x128xf32>
    %c8_i32 = arith.constant 8 : i32
    %c0_138 = arith.constant 0 : index
    %c0_139 = arith.constant 0 : index
    %506 = vector.load %arg6[%c0_138, %c0_139] : memref<1x128xf32, #tpu.memory_space<vmem>>, vector<1x128xf32>
    %507 = vector.broadcast %506 : vector<1x128xf32> to vector<8x128xf32>
    %508 = arith.mulf %505, %507 : vector<8x128xf32>
    %cst_140 = arith.constant dense<0.000000e+00> : vector<8xf32>
    %509 = vector.multi_reduction <add>, %508, %cst_140 [1] : vector<8x128xf32> to vector<8xf32>
    %510 = vector.shape_cast %509 : vector<8xf32> to vector<8x1xf32>
    %c0_141 = arith.constant 0 : index
    %c0_142 = arith.constant 0 : index
    %511 = vector.load %arg7[%c0_141, %c0_142] : memref<1x1xf32, #tpu.memory_space<vmem>>, vector<1x1xf32>
    %512 = vector.broadcast %511 : vector<1x1xf32> to vector<8x1xf32>
    %513 = arith.addf %510, %512 : vector<8x1xf32>
    %c0_143 = arith.constant 0 : index
    %c0_144 = arith.constant 0 : index
    %514 = vector.load %arg8[%c0_143, %c0_144] : memref<8x1xf32, #tpu.memory_space<vmem>>, vector<8x1xf32>
    tpu.vector_store %arg8[%c0_143, %c0_144], %513 {strides = array<i32>} : memref<8x1xf32, #tpu.memory_space<vmem>>, vector<8x1xf32>,
    return
  }
}

</mosaic_0001>

<bundles_post_ra>
// kernel: lstm_model_forward.1
= control target key start
LH: loop header
LB: loop body
LE: loop exit
PB: predicated region body
PF: predicated region fallthrough
CT: control target
= control target key end

     0   :  { %v7335_v3 = vmov 0.0   ;;  %vm3342_vm0 = vcmask 7168   ;;  %s7326_s1 = inlined_call_operand.vmem [shape: f32[128,512], index: 1, kind: input, shape index: {}]   ;;  %s7327_s2 = inlined_call_operand.vmem [shape: f32[128,512], index: 2, kind: input, shape index: {}]   ;;  %s7328_s0 = inlined_call_operand.vmem [shape: f32[8,8,128], index: 0, kind: input, shape index: {}]   ;;  %s7329_s4 = inlined_call_operand.vmem [shape: f32[256,512], index: 4, kind: input, shape index: {}]   ;;  %s7330_s3 = inlined_call_operand.vmem [shape: f32[1,512], index: 3, kind: input, shape index: {}]   ;;  %s7331_s5 = inlined_call_operand.vmem [shape: f32[1,512], index: 5, kind: input, shape index: {}]   ;;  %s7332_s7 = inlined_call_operand.<no memory space> [shape: f32[1,1], index: 7, kind: input, shape index: {}]   ;;  %s7333_s6 = inlined_call_operand.vmem [shape: f32[1,128], index: 6, kind: input, shape index: {}]   ;;  %s7334_s8 = inlined_call_operand.vmem [shape: f32[8,1], index: 8, kind: output, shape index: {}]  }
   0x1   :  { %v40_v0 = vld [vmem:[%s7326_s1 + $0x8] sm:$0xff]  ;;  %v42_v2 = vld [vmem:[%s7326_s1 + $0x18] sm:$0xff]  ;;  %189 = vmatprep.mubr.f32.mxu0 %v7335_v3  ;;  %302 = vmatprep.mubr.f32.mxu1 %v7335_v3  ;;  %v39_v6 = vld [vmem:[%s7326_s1] sm:$0xff] }
   0x2   :  { %v44_v1 = vld [vmem:[%s7326_s1 + $0x28] sm:$0xff]  ;;  %v46_v5 = vld [vmem:[%s7326_s1 + $0x38] sm:$0xff]  ;;  %v43_v7 = vld [vmem:[%s7326_s1 + $0x20] sm:$0xff] }
   0x3   :  { %v3398_v4 = vpack.c.bf16 %v44_v1, %v40_v0  ;;  %v3430_v8 = vpack.c.bf16 %v46_v5, %v42_v2  ;;  %v3400_v9 = vpack.c.bf16 %v43_v7, %v39_v6  ;;  %v41_v10 = vld [vmem:[%s7326_s1 + $0x10] sm:$0xff]  ;;  %v48_v12 = vld [vmem:[%s7326_s1 + $0x48] sm:$0xff]  ;;  %v50_v15 = vld [vmem:[%s7326_s1 + $0x58] sm:$0xff] }
   0x4   :  { %v45_v11 = vld [vmem:[%s7326_s1 + $0x30] sm:$0xff]  ;;  %v52_v14 = vld [vmem:[%s7326_s1 + $0x68] sm:$0xff]  ;;  %v54_v16 = vld [vmem:[%s7326_s1 + $0x78] sm:$0xff] }
   0x5   :  { %3399 = vmatprep.subr.bf16.mxu0 %v3398_v4  ;;  %v3432_v13 = vpack.c.bf16 %v45_v11, %v41_v10  ;;  %3431 = vmatprep.subr.bf16.mxu1 %v3430_v8  ;;  %v3402_v17 = vpack.c.bf16 %v52_v14, %v48_v12  ;;  %v3434_v18 = vpack.c.bf16 %v54_v16, %v50_v15  ;;  %v47_v19 = vld [vmem:[%s7326_s1 + $0x40] sm:$0xff]  ;;  %v49_v21 = vld [vmem:[%s7326_s1 + $0x50] sm:$0xff]  ;;  %v56_v24 = vld [vmem:[%s7326_s1 + $0x88] sm:$0xff] }
   0x6   :  { %3401 = vmatpush1.bf16.msra.mxu0 %v3400_v9  ;;  %v51_v20 = vld [vmem:[%s7326_s1 + $0x60] sm:$0xff]  ;;  %v53_v23 = vld [vmem:[%s7326_s1 + $0x70] sm:$0xff]  ;;  %v60_v25 = vld [vmem:[%s7326_s1 + $0xa8] sm:$0xff] }
   0x7   :  { %3433 = vmatpush1.bf16.msra.mxu1 %v3432_v13  ;;  %v3404_v22 = vpack.c.bf16 %v51_v20, %v47_v19  ;;  %3403 = vmatprep.subr.bf16.mxu0 %v3402_v17  ;;  %v3436_v26 = vpack.c.bf16 %v53_v23, %v49_v21  ;;  %v3406_v27 = vpack.c.bf16 %v60_v25, %v56_v24  ;;  %v58_v28 = vld [vmem:[%s7326_s1 + $0x98] sm:$0xff]  ;;  %v55_v30 = vld [vmem:[%s7326_s1 + $0x80] sm:$0xff]  ;;  %v57_v33 = vld [vmem:[%s7326_s1 + $0x90] sm:$0xff] }
   0x8   :  { %3435 = vmatprep.subr.bf16.mxu1 %v3434_v18  ;;  %v62_v29 = vld [vmem:[%s7326_s1 + $0xb8] sm:$0xff]  ;;  %v59_v32 = vld [vmem:[%s7326_s1 + $0xa0] sm:$0xff]  ;;  %v61_v34 = vld [vmem:[%s7326_s1 + $0xb0] sm:$0xff] }
   0x9   :  { %v3438_v31 = vpack.c.bf16 %v62_v29, %v58_v28  ;;  %v3408_v35 = vpack.c.bf16 %v59_v32, %v55_v30  ;;  %v64_v36 = vld [vmem:[%s7326_s1 + $0xc8] sm:$0xff]  ;;  %v66_v38 = vld [vmem:[%s7326_s1 + $0xd8] sm:$0xff]  ;;  %v3440_v39 = vpack.c.bf16 %v61_v34, %v57_v33  ;;  %v63_v42 = vld [vmem:[%s7326_s1 + $0xc0] sm:$0xff] }
   0xa   :  { %3405 = vmatpush1.bf16.msra.mxu0 %v3404_v22  ;;  %v68_v37 = vld [vmem:[%s7326_s1 + $0xe8] sm:$0xff]  ;;  %v70_v41 = vld [vmem:[%s7326_s1 + $0xf8] sm:$0xff]  ;;  %v67_v43 = vld [vmem:[%s7326_s1 + $0xe0] sm:$0xff] }
   0xb   :  { %3437 = vmatpush1.bf16.msra.mxu1 %v3436_v26  ;;  %3407 = vmatprep.subr.bf16.mxu0 %v3406_v27  ;;  %v3410_v40 = vpack.c.bf16 %v68_v37, %v64_v36  ;;  %v3442_v44 = vpack.c.bf16 %v70_v41, %v66_v38  ;;  %v65_v45 = vld [vmem:[%s7326_s1 + $0xd0] sm:$0xff]  ;;  %v72_v47 = vld [vmem:[%s7326_s1 + $0x108] sm:$0xff]  ;;  %v74_v49 = vld [vmem:[%s7326_s1 + $0x118] sm:$0xff]  ;;  %v3412_v51 = vpack.c.bf16 %v67_v43, %v63_v42 }
   0xc   :  { %3439 = vmatprep.subr.bf16.mxu1 %v3438_v31  ;;  %v69_v46 = vld [vmem:[%s7326_s1 + $0xf0] sm:$0xff]  ;;  %v76_v48 = vld [vmem:[%s7326_s1 + $0x128] sm:$0xff]  ;;  %v78_v50 = vld [vmem:[%s7326_s1 + $0x138] sm:$0xff] }
   0xd   :  { %v3444_v52 = vpack.c.bf16 %v69_v46, %v65_v45  ;;  %v3414_v53 = vpack.c.bf16 %v76_v48, %v72_v47  ;;  %v71_v54 = vld [vmem:[%s7326_s1 + $0x100] sm:$0xff]  ;;  %v73_v56 = vld [vmem:[%s7326_s1 + $0x110] sm:$0xff]  ;;  %v3446_v57 = vpack.c.bf16 %v78_v50, %v74_v49  ;;  %v80_v59 = vld [vmem:[%s7326_s1 + $0x148] sm:$0xff] }
   0xe   :  { %3409 = vmatpush1.bf16.msra.mxu0 %v3408_v35  ;;  %v75_v55 = vld [vmem:[%s7326_s1 + $0x120] sm:$0xff]  ;;  %v77_v58 = vld [vmem:[%s7326_s1 + $0x130] sm:$0xff]  ;;  %v84_v60 = vld [vmem:[%s7326_s1 + $0x168] sm:$0xff] }
   0xf   :  { %3441 = vmatpush1.bf16.msra.mxu1 %v3440_v39  ;;  %3411 = vmatprep.subr.bf16.mxu0 %v3410_v40  ;;  %v82_v61 = vld [vmem:[%s7326_s1 + $0x158] sm:$0xff]  ;;  %v3416_v63 = vpack.c.bf16 %v75_v55, %v71_v54  ;;  %v3448_v0 = vpack.c.bf16 %v77_v58, %v73_v56  ;;  %v3418_v1 = vpack.c.bf16 %v84_v60, %v80_v59  ;;  %v79_v2 = vld [vmem:[%s7326_s1 + $0x140] sm:$0xff]  ;;  %v81_v5 = vld [vmem:[%s7326_s1 + $0x150] sm:$0xff] }
  0x10   :  { %3443 = vmatprep.subr.bf16.mxu1 %v3442_v44  ;;  %v86_v62 = vld [vmem:[%s7326_s1 + $0x178] sm:$0xff]  ;;  %v83_v4 = vld [vmem:[%s7326_s1 + $0x160] sm:$0xff]  ;;  %v85_v7 = vld [vmem:[%s7326_s1 + $0x170] sm:$0xff] }
  0x11   :  { %v3450_v6 = vpack.c.bf16 %v86_v62, %v82_v61  ;;  %v88_v8 = vld [vmem:[%s7326_s1 + $0x188] sm:$0xff]  ;;  %v90_v10 = vld [vmem:[%s7326_s1 + $0x198] sm:$0xff]  ;;  %v3420_v12 = vpack.c.bf16 %v83_v4, %v79_v2  ;;  %v3452_v13 = vpack.c.bf16 %v85_v7, %v81_v5  ;;  %v87_v15 = vld [vmem:[%s7326_s1 + $0x180] sm:$0xff] }
  0x12   :  { %3413 = vmatpush1.bf16.msra.mxu0 %v3412_v51  ;;  %v92_v9 = vld [vmem:[%s7326_s1 + $0x1a8] sm:$0xff]  ;;  %v94_v11 = vld [vmem:[%s7326_s1 + $0x1b8] sm:$0xff]  ;;  %v91_v16 = vld [vmem:[%s7326_s1 + $0x1a0] sm:$0xff] }
  0x13   :  { %3445 = vmatpush1.bf16.msra.mxu1 %v3444_v52  ;;  %3415 = vmatprep.subr.bf16.mxu0 %v3414_v53  ;;  %v3422_v14 = vpack.c.bf16 %v92_v9, %v88_v8  ;;  %v89_v17 = vld [vmem:[%s7326_s1 + $0x190] sm:$0xff]  ;;  %v3454_v18 = vpack.c.bf16 %v94_v11, %v90_v10  ;;  %v96_v20 = vld [vmem:[%s7326_s1 + $0x1c8] sm:$0xff]  ;;  %v98_v22 = vld [vmem:[%s7326_s1 + $0x1d8] sm:$0xff]  ;;  %v3424_v24 = vpack.c.bf16 %v91_v16, %v87_v15 }
  0x14   :  { %3447 = vmatprep.subr.bf16.mxu1 %v3446_v57  ;;  %v93_v19 = vld [vmem:[%s7326_s1 + $0x1b0] sm:$0xff]  ;;  %v100_v21 = vld [vmem:[%s7326_s1 + $0x1e8] sm:$0xff]  ;;  %v102_v23 = vld [vmem:[%s7326_s1 + $0x1f8] sm:$0xff] }
  0x15   :  { %v3456_v25 = vpack.c.bf16 %v93_v19, %v89_v17  ;;  %v3426_v26 = vpack.c.bf16 %v100_v21, %v96_v20  ;;  %v95_v27 = vld [vmem:[%s7326_s1 + $0x1c0] sm:$0xff]  ;;  %v97_v29 = vld [vmem:[%s7326_s1 + $0x1d0] sm:$0xff]  ;;  %v3458_v30 = vpack.c.bf16 %v102_v23, %v98_v22  ;;  %v388_v32 = vld [vmem:[%s7327_s2 + $0x8] sm:$0xff] }
  0x16   :  { %3417 = vmatpush1.bf16.msra.mxu0 %v3416_v63  ;;  %v99_v28 = vld [vmem:[%s7326_s1 + $0x1e0] sm:$0xff]  ;;  %v101_v31 = vld [vmem:[%s7326_s1 + $0x1f0] sm:$0xff]  ;;  %v392_v33 = vld [vmem:[%s7327_s2 + $0x28] sm:$0xff] }
  0x17   :  { %3449 = vmatpush1.bf16.msra.mxu1 %v3448_v0  ;;  %3419 = vmatprep.subr.bf16.mxu0 %v3418_v1  ;;  %v390_v34 = vld [vmem:[%s7327_s2 + $0x18] sm:$0xff]  ;;  %v3428_v36 = vpack.c.bf16 %v99_v28, %v95_v27  ;;  %v3460_v37 = vpack.c.bf16 %v101_v31, %v97_v29  ;;  %v5571_v38 = vpack.c.bf16 %v392_v33, %v388_v32  ;;  %v387_v39 = vld [vmem:[%s7327_s2] sm:$0xff]  ;;  %v389_v42 = vld [vmem:[%s7327_s2 + $0x10] sm:$0xff] }
  0x18   :  { %3451 = vmatprep.subr.bf16.mxu1 %v3450_v6  ;;  %v394_v35 = vld [vmem:[%s7327_s2 + $0x38] sm:$0xff]  ;;  %v391_v40 = vld [vmem:[%s7327_s2 + $0x20] sm:$0xff]  ;;  %v393_v43 = vld [vmem:[%s7327_s2 + $0x30] sm:$0xff] }
  0x19   :  { %7469 = vst [vmem:[#allocation4_spill] sm:$0xff] %v5571_v38  ;;  %v5579_v41 = vpack.c.bf16 %v394_v35, %v390_v34  ;;  %v396_v44 = vld [vmem:[%s7327_s2 + $0x48] sm:$0xff]  ;;  %v31_v46 = vld [vmem:[%s7328_s0] sm:$0xff]  ;;  %v5596_v47 = vpack.c.bf16 %v391_v40, %v387_v39  ;;  %v398_v48 = vld [vmem:[%s7327_s2 + $0x58] sm:$0xff]  ;;  %v5605_v50 = vpack.c.bf16 %v393_v43, %v389_v42 }
  0x1a   :  { %3421 = vmatpush1.bf16.msra.mxu0 %v3420_v12  ;;  %v400_v45 = vld [vmem:[%s7327_s2 + $0x68] sm:$0xff]  ;;  %v402_v49 = vld [vmem:[%s7327_s2 + $0x78] sm:$0xff]  ;;  %v395_v51 = vld [vmem:[%s7327_s2 + $0x40] sm:$0xff] }
  0x1b   :  { %3453 = vmatpush1.bf16.msra.mxu1 %v3452_v13  ;;  %3423 = vmatprep.subr.bf16.mxu0 %v3422_v14  ;;  %7470 = vst [vmem:[#allocation5_spill] sm:$0xff] %v5579_v41  ;;  %v399_v52 = vld [vmem:[%s7327_s2 + $0x60] sm:$0xff]  ;;  %v5614_v53 = vpack.c.bf16 %v400_v45, %v396_v44  ;;  %v397_v54 = vld [vmem:[%s7327_s2 + $0x50] sm:$0xff]  ;;  %v5622_v56 = vpack.c.bf16 %v402_v49, %v398_v48  ;;  %v404_v57 = vld [vmem:[%s7327_s2 + $0x88] sm:$0xff] }
  0x1c   :  { %3455 = vmatprep.subr.bf16.mxu1 %v3454_v18  ;;  %v401_v55 = vld [vmem:[%s7327_s2 + $0x70] sm:$0xff]  ;;  %v408_v58 = vld [vmem:[%s7327_s2 + $0xa8] sm:$0xff]  ;;  %v5634_v60 = vpack.c.bf16 %v399_v52, %v395_v51  ;;  %v406_v61 = vld [vmem:[%s7327_s2 + $0x98] sm:$0xff] }
  0x1d   :  { %v32_v59 = vld [vmem:[%s7328_s0 + $0x8] sm:$0xff]  ;;  %v410_v62 = vld [vmem:[%s7327_s2 + $0xb8] sm:$0xff]  ;;  %v5644_v63 = vpack.c.bf16 %v401_v55, %v397_v54  ;;  %v403_v0 = vld [vmem:[%s7327_s2 + $0x80] sm:$0xff]  ;;  %v5654_v2 = vpack.c.bf16 %v408_v58, %v404_v57 }
  0x1e   :  { %3425 = vmatpush1.bf16.msra.mxu0 %v3424_v24  ;;  %v407_v1 = vld [vmem:[%s7327_s2 + $0xa0] sm:$0xff]  ;;  %v405_v4 = vld [vmem:[%s7327_s2 + $0x90] sm:$0xff]  ;;  %v5663_v6 = vpack.c.bf16 %v410_v62, %v406_v61  ;;  %v412_v7 = vld [vmem:[%s7327_s2 + $0xc8] sm:$0xff] }
  0x1f   :  { %3457 = vmatpush1.bf16.msra.mxu1 %v3456_v25  ;;  %3427 = vmatprep.subr.bf16.mxu0 %v3426_v26  ;;  %v409_v5 = vld [vmem:[%s7327_s2 + $0xb0] sm:$0xff]  ;;  %v416_v8 = vld [vmem:[%s7327_s2 + $0xe8] sm:$0xff]  ;;  %v5675_v10 = vpack.c.bf16 %v407_v1, %v403_v0  ;;  %v414_v11 = vld [vmem:[%s7327_s2 + $0xd8] sm:$0xff] }
  0x20   :  { %3459 = vmatprep.subr.bf16.mxu1 %v3458_v30  ;;  %v33_v9 = vld [vmem:[%s7328_s0 + $0x10] sm:$0xff]  ;;  %v418_v12 = vld [vmem:[%s7327_s2 + $0xf8] sm:$0xff]  ;;  %v5685_v13 = vpack.c.bf16 %v409_v5, %v405_v4  ;;  %v411_v14 = vld [vmem:[%s7327_s2 + $0xc0] sm:$0xff]  ;;  %v5695_v16 = vpack.c.bf16 %v416_v8, %v412_v7 }
  0x21   :  { %v415_v15 = vld [vmem:[%s7327_s2 + $0xe0] sm:$0xff]  ;;  %v413_v17 = vld [vmem:[%s7327_s2 + $0xd0] sm:$0xff]  ;;  %v5704_v19 = vpack.c.bf16 %v418_v12, %v414_v11  ;;  %v420_v20 = vld [vmem:[%s7327_s2 + $0x108] sm:$0xff] }
  0x22   :  { %3429 = vmatpush1.bf16.msra.mxu0 %v3428_v36  ;;  %v417_v18 = vld [vmem:[%s7327_s2 + $0xf0] sm:$0xff]  ;;  %v424_v21 = vld [vmem:[%s7327_s2 + $0x128] sm:$0xff]  ;;  %v34_v22 = vld [vmem:[%s7328_s0 + $0x18] sm:$0xff]  ;;  %v5716_v23 = vpack.c.bf16 %v415_v15, %v411_v14 }
  0x23   :  { %3461 = vmatpush1.bf16.msra.mxu1 %v3460_v37  ;;  %3463 = vmatprep.subr.bf16.mxu0 %v5571_v38  ;;  %v422_v24 = vld [vmem:[%s7327_s2 + $0x118] sm:$0xff]  ;;  %v5726_v26 = vpack.c.bf16 %v417_v18, %v413_v17  ;;  %v419_v27 = vld [vmem:[%s7327_s2 + $0x100] sm:$0xff]  ;;  %v5736_v29 = vpack.c.bf16 %v424_v21, %v420_v20  ;;  %v421_v30 = vld [vmem:[%s7327_s2 + $0x110] sm:$0xff] }
  0x24   :  { %3495 = vmatprep.subr.bf16.mxu1 %v5579_v41  ;;  %v426_v25 = vld [vmem:[%s7327_s2 + $0x138] sm:$0xff]  ;;  %v423_v28 = vld [vmem:[%s7327_s2 + $0x120] sm:$0xff]  ;;  %v425_v31 = vld [vmem:[%s7327_s2 + $0x130] sm:$0xff] }
  0x25   :  { %190 = vmatmul.mubr.f32.vlgmr.msra.gmra.mrb[0].mxu0 %v31_v46  ;;  %v5745_v32 = vpack.c.bf16 %v426_v25, %v422_v24  ;;  %v428_v33 = vld [vmem:[%s7327_s2 + $0x148] sm:$0xff]  ;;  %v35_v35 = vld [vmem:[%s7328_s0 + $0x20] sm:$0xff]  ;;  %v5757_v36 = vpack.c.bf16 %v423_v28, %v419_v27  ;;  %v430_v37 = vld [vmem:[%s7327_s2 + $0x158] sm:$0xff]  ;;  %v5767_v40 = vpack.c.bf16 %v425_v31, %v421_v30 }
  0x26   :  { %303 = vmatmul.mubr.f32.vlgmr.msra.gmra.mrb[0].mxu1 %v31_v46  ;;  %3465 = vmatpush1.bf16.msra.mxu0 %v5596_v47  ;;  %v432_v34 = vld [vmem:[%s7327_s2 + $0x168] sm:$0xff]  ;;  %v434_v39 = vld [vmem:[%s7327_s2 + $0x178] sm:$0xff]  ;;  %v427_v42 = vld [vmem:[%s7327_s2 + $0x140] sm:$0xff] }
  0x27   :  { %3497 = vmatpush1.bf16.msra.mxu1 %v5605_v50  ;;  %195 = vmatprep.mubr.f32.mxu0 %v7335_v3  ;;  %v431_v43 = vld [vmem:[%s7327_s2 + $0x160] sm:$0xff]  ;;  %v5777_v44 = vpack.c.bf16 %v432_v34, %v428_v33  ;;  %v429_v45 = vld [vmem:[%s7327_s2 + $0x150] sm:$0xff]  ;;  %v5786_v48 = vpack.c.bf16 %v434_v39, %v430_v37  ;;  %v436_v49 = vld [vmem:[%s7327_s2 + $0x188] sm:$0xff] }
  0x28   :  { %308 = vmatprep.mubr.f32.mxu1 %v7335_v3  ;;  %3467 = vmatprep.subr.bf16.mxu0 %v5614_v53  ;;  %v433_v46 = vld [vmem:[%s7327_s2 + $0x170] sm:$0xff]  ;;  %v440_v51 = vld [vmem:[%s7327_s2 + $0x1a8] sm:$0xff]  ;;  %v5798_v54 = vpack.c.bf16 %v431_v43, %v427_v42  ;;  %v438_v55 = vld [vmem:[%s7327_s2 + $0x198] sm:$0xff] }
  0x29   :  { %196 = vmatmul.mubr.f32.gmra.mrb[2].mxu0 %v32_v59  ;;  %3499 = vmatprep.subr.bf16.mxu1 %v5622_v56  ;;  %v36_v52 = vld [vmem:[%s7328_s0 + $0x28] sm:$0xff]  ;;  %v442_v57 = vld [vmem:[%s7327_s2 + $0x1b8] sm:$0xff]  ;;  %v5808_v58 = vpack.c.bf16 %v433_v46, %v429_v45  ;;  %v439_v61 = vld [vmem:[%s7327_s2 + $0x1a0] sm:$0xff]  ;;  %v5818_v62 = vpack.c.bf16 %v440_v51, %v436_v49 }
  0x2a   :  { %309 = vmatmul.mubr.f32.gmra.mrb[2].mxu1 %v32_v59  ;;  %3469 = vmatpush1.bf16.msra.mxu0 %v5634_v60  ;;  %v435_v59 = vld [vmem:[%s7327_s2 + $0x180] sm:$0xff]  ;;  %v437_v0 = vld [vmem:[%s7327_s2 + $0x190] sm:$0xff]  ;;  %v5827_v4 = vpack.c.bf16 %v442_v57, %v438_v55  ;;  %v444_v5 = vld [vmem:[%s7327_s2 + $0x1c8] sm:$0xff] }
  0x2b   :  { %3501 = vmatpush1.bf16.msra.mxu1 %v5644_v63  ;;  %201 = vmatprep.mubr.f32.mxu0 %v7335_v3  ;;  %v441_v1 = vld [vmem:[%s7327_s2 + $0x1b0] sm:$0xff]  ;;  %v448_v7 = vld [vmem:[%s7327_s2 + $0x1e8] sm:$0xff]  ;;  %v446_v11 = vld [vmem:[%s7327_s2 + $0x1d8] sm:$0xff] }
  0x2c   :  { %314 = vmatprep.mubr.f32.mxu1 %v7335_v3  ;;  %3471 = vmatprep.subr.bf16.mxu0 %v5654_v2  ;;  %v37_v8 = vld [vmem:[%s7328_s0 + $0x30] sm:$0xff]  ;;  %v450_v12 = vld [vmem:[%s7327_s2 + $0x1f8] sm:$0xff]  ;;  %v5849_v14 = vpack.c.bf16 %v441_v1, %v437_v0  ;;  %v443_v15 = vld [vmem:[%s7327_s2 + $0x1c0] sm:$0xff]  ;;  %v5859_v18 = vpack.c.bf16 %v448_v7, %v444_v5 }
  0x2d   :  { %202 = vmatmul.mubr.f32.gmra.mrb[4].mxu0 %v33_v9  ;;  %3503 = vmatprep.subr.bf16.mxu1 %v5663_v6  ;;  %v447_v17 = vld [vmem:[%s7327_s2 + $0x1e0] sm:$0xff]  ;;  %v445_v20 = vld [vmem:[%s7327_s2 + $0x1d0] sm:$0xff]  ;;  %v622_v24 = vld [vmem:[%s7329_s4 + $0x8] sm:$0xff] }
  0x2e   :  { %315 = vmatmul.mubr.f32.gmra.mrb[4].mxu1 %v33_v9  ;;  %3473 = vmatpush1.bf16.msra.mxu0 %v5675_v10  ;;  %v5839_v9 = vpack.c.bf16 %v439_v61, %v435_v59  ;;  %v449_v21 = vld [vmem:[%s7327_s2 + $0x1f0] sm:$0xff]  ;;  %v626_v25 = vld [vmem:[%s7329_s4 + $0x28] sm:$0xff]  ;;  %v38_v27 = vld [vmem:[%s7328_s0 + $0x38] sm:$0xff]  ;;  %v5880_v28 = vpack.c.bf16 %v447_v17, %v443_v15 }
  0x2f   :  { %3505 = vmatpush1.bf16.msra.mxu1 %v5685_v13  ;;  %207 = vmatprep.mubr.f32.mxu0 %v7335_v3  ;;  %v624_v30 = vld [vmem:[%s7329_s4 + $0x18] sm:$0xff]  ;;  %v5890_v33 = vpack.c.bf16 %v449_v21, %v445_v20  ;;  %v621_v34 = vld [vmem:[%s7329_s4] sm:$0xff]  ;;  %v623_v37 = vld [vmem:[%s7329_s4 + $0x10] sm:$0xff]  ;;  %v5903_v39 = vpack.c.bf16 %v626_v25, %v622_v24 }
  0x30   :  { %320 = vmatprep.mubr.f32.mxu1 %v7335_v3  ;;  %3475 = vmatprep.subr.bf16.mxu0 %v5695_v16  ;;  %v628_v31 = vld [vmem:[%s7329_s4 + $0x38] sm:$0xff]  ;;  %v627_v42 = vld [vmem:[%s7329_s4 + $0x30] sm:$0xff]  ;;  %v630_v43 = vld [vmem:[%s7329_s4 + $0x48] sm:$0xff] }
  0x31   :  { %208 = vmatmul.mubr.f32.gmra.mrb[6].mxu0 %v34_v22  ;;  %3507 = vmatprep.subr.bf16.mxu1 %v5704_v19  ;;  %v634_v45 = vld [vmem:[%s7329_s4 + $0x68] sm:$0xff]  ;;  %v5915_v46 = vpack.c.bf16 %v628_v31, %v624_v30  ;;  %v632_v49 = vld [vmem:[%s7329_s4 + $0x58] sm:$0xff]  ;;  %v5928_v55 = vpack.c.bf16 %v627_v42, %v623_v37  ;;  %v629_v59 = vld [vmem:[%s7329_s4 + $0x40] sm:$0xff] }
  0x32   :  { %321 = vmatmul.mubr.f32.gmra.mrb[6].mxu1 %v34_v22  ;;  %3477 = vmatpush1.bf16.msra.mxu0 %v5716_v23  ;;  %v5868_v22 = vpack.c.bf16 %v450_v12, %v446_v11  ;;  %v636_v51 = vld [vmem:[%s7329_s4 + $0x78] sm:$0xff]  ;;  %v5930_v57 = vpack.c.bf16 %v634_v45, %v630_v43  ;;  %v633_v61 = vld [vmem:[%s7329_s4 + $0x60] sm:$0xff]  ;;  %v631_v0 = vld [vmem:[%s7329_s4 + $0x50] sm:$0xff] }
  0x33   :  { %3509 = vmatpush1.bf16.msra.mxu1 %v5726_v26  ;;  %213 = vmatprep.mubr.f32.mxu0 %v7335_v3  ;;  %v5943_v1 = vpack.c.bf16 %v636_v51, %v632_v49  ;;  %v635_v5 = vld [vmem:[%s7329_s4 + $0x70] sm:$0xff]  ;;  %v638_v7 = vld [vmem:[%s7329_s4 + $0x88] sm:$0xff]  ;;  %v640_v11 = vld [vmem:[%s7329_s4 + $0x98] sm:$0xff]  ;;  %v5964_v15 = vpack.c.bf16 %v633_v61, %v629_v59 }
  0x34   :  { %326 = vmatprep.mubr.f32.mxu1 %v7335_v3  ;;  %3479 = vmatprep.subr.bf16.mxu0 %v5736_v29  ;;  %v644_v12 = vld [vmem:[%s7329_s4 + $0xb8] sm:$0xff]  ;;  %v5968_v17 = vpack.c.bf16 %v635_v5, %v631_v0  ;;  %v637_v21 = vld [vmem:[%s7329_s4 + $0x80] sm:$0xff]  ;;  %v639_v25 = vld [vmem:[%s7329_s4 + $0x90] sm:$0xff] }
  0x35   :  { %214 = vmatmul.mubr.f32.gmra.mrb[8].mxu0 %v35_v35  ;;  %3511 = vmatprep.subr.bf16.mxu1 %v5745_v32  ;;  %v641_v24 = vld [vmem:[%s7329_s4 + $0xa0] sm:$0xff]  ;;  %v643_v30 = vld [vmem:[%s7329_s4 + $0xb0] sm:$0xff]  ;;  %v646_v31 = vld [vmem:[%s7329_s4 + $0xc8] sm:$0xff] }
  0x36   :  { %327 = vmatmul.mubr.f32.gmra.mrb[8].mxu1 %v35_v35  ;;  %3481 = vmatpush1.bf16.msra.mxu0 %v5757_v36  ;;  %v625_v35 = vld [vmem:[%s7329_s4 + $0x20] sm:$0xff]  ;;  %v652_v37 = vld [vmem:[%s7329_s4 + $0xf8] sm:$0xff]  ;;  %v6002_v42 = vpack.c.bf16 %v641_v24, %v637_v21  ;;  %v6006_v43 = vpack.c.bf16 %v643_v30, %v639_v25  ;;  %v647_v59 = vld [vmem:[%s7329_s4 + $0xd0] sm:$0xff] }
  0x37   :  { %3513 = vmatpush1.bf16.msra.mxu1 %v5767_v40  ;;  %219 = vmatprep.mubr.f32.mxu0 %v7335_v3  ;;  %v645_v49 = vld [vmem:[%s7329_s4 + $0xc0] sm:$0xff]  ;;  %v651_v0 = vld [vmem:[%s7329_s4 + $0xf0] sm:$0xff]  ;;  %v654_v5 = vld [vmem:[%s7329_s4 + $0x108] sm:$0xff] }
  0x38   :  { %332 = vmatprep.mubr.f32.mxu1 %v7335_v3  ;;  %3483 = vmatprep.subr.bf16.mxu0 %v5777_v44  ;;  %7471 = vst [vmem:[#allocation6_spill] sm:$0xff] %v6002_v42  ;;  %7472 = vst [vmem:[#allocation7_spill] sm:$0xff] %v6006_v43  ;;  %v649_v51 = vld [vmem:[%s7329_s4 + $0xe0] sm:$0xff]  ;;  %v6042_v21 = vpack.c.bf16 %v651_v0, %v647_v59  ;;  %v666_v59 = vld [vmem:[%s7329_s4 + $0x168] sm:$0xff] }
  0x39   :  { %220 = vmatmul.mubr.f32.gmra.mrb[10].mxu0 %v36_v52  ;;  %3515 = vmatprep.subr.bf16.mxu1 %v5786_v48  ;;  %v653_v25 = vld [vmem:[%s7329_s4 + $0x100] sm:$0xff]  ;;  %v664_v0 = vld [vmem:[%s7329_s4 + $0x158] sm:$0xff] }
  0x3a   :  { %333 = vmatmul.mubr.f32.gmra.mrb[10].mxu1 %v36_v52  ;;  %3485 = vmatpush1.bf16.msra.mxu0 %v5798_v54  ;;  %v5924_v52 = vpack.c.bf16 %v625_v35, %v621_v34  ;;  %v650_v34 = vld [vmem:[%s7329_s4 + $0xe8] sm:$0xff]  ;;  %v648_v35 = vld [vmem:[%s7329_s4 + $0xd8] sm:$0xff]  ;;  %7476 = vst [vmem:[#allocation11_spill] sm:$0xff] %v6042_v21  ;;  %v657_v30 = vld [vmem:[%s7329_s4 + $0x120] sm:$0xff] }
  0x3b   :  { %3517 = vmatpush1.bf16.msra.mxu1 %v5808_v58  ;;  %225 = vmatprep.mubr.f32.mxu0 %v7335_v3  ;;  %v6008_v45 = vpack.c.bf16 %v650_v34, %v646_v31  ;;  %v6020_v61 = vpack.c.bf16 %v652_v37, %v648_v35  ;;  %v655_v34 = vld [vmem:[%s7329_s4 + $0x110] sm:$0xff]  ;;  %v6062_v37 = vpack.c.bf16 %v657_v30, %v653_v25 }
  0x3c   :  { %338 = vmatprep.mubr.f32.mxu1 %v7335_v3  ;;  %3487 = vmatprep.subr.bf16.mxu0 %v5818_v62  ;;  %v659_v35 = vld [vmem:[%s7329_s4 + $0x130] sm:$0xff] }
  0x3d   :  { %226 = vmatmul.mubr.f32.gmra.mrb[12].mxu0 %v37_v8  ;;  %3519 = vmatprep.subr.bf16.mxu1 %v5827_v4  ;;  %7473 = vst [vmem:[#allocation8_spill] sm:$0xff] %v6008_v45  ;;  %7474 = vst [vmem:[#allocation9_spill] sm:$0xff] %v6020_v61 }
  0x3e   :  { %339 = vmatmul.mubr.f32.gmra.mrb[12].mxu1 %v37_v8  ;;  %3489 = vmatpush1.bf16.msra.mxu0 %v5839_v9  ;;  %v642_v8 = vld [vmem:[%s7329_s4 + $0xa8] sm:$0xff]  ;;  %7479 = vst [vmem:[#allocation14_spill] sm:$0xff] %v6062_v37 }
  0x3f   :  { %3521 = vmatpush1.bf16.msra.mxu1 %v5849_v14  ;;  %231 = vmatprep.mubr.f32.mxu0 %v7335_v3  ;;  %v5970_v20 = vpack.c.bf16 %v642_v8, %v638_v7  ;;  %v658_v7 = vld [vmem:[%s7329_s4 + $0x128] sm:$0xff]  ;;  %v656_v8 = vld [vmem:[%s7329_s4 + $0x118] sm:$0xff] }
  0x40   :  { %344 = vmatprep.mubr.f32.mxu1 %v7335_v3  ;;  %3491 = vmatprep.subr.bf16.mxu0 %v5859_v18  ;;  %v6044_v24 = vpack.c.bf16 %v658_v7, %v654_v5  ;;  %v668_v7 = vld [vmem:[%s7329_s4 + $0x178] sm:$0xff] }
  0x41   :  { %232 = vmatmul.mubr.f32.gmra.mrb[14].mxu0 %v38_v27  ;;  %3523 = vmatprep.subr.bf16.mxu1 %v5868_v22  ;;  %v6091_v25 = vpack.c.bf16 %v668_v7, %v664_v0  ;;  %v674_v0 = vld [vmem:[%s7329_s4 + $0x1a8] sm:$0xff]  ;;  %v672_v7 = vld [vmem:[%s7329_s4 + $0x198] sm:$0xff] }
  0x42   :  { %345 = vmatmul.mubr.f32.gmra.mrb[14].mxu1 %v38_v27  ;;  %3493 = vmatpush1.bf16.msra.mxu0 %v5880_v28  ;;  %v5982_v27 = vpack.c.bf16 %v644_v12, %v640_v11  ;;  %v660_v11 = vld [vmem:[%s7329_s4 + $0x138] sm:$0xff]  ;;  %v6038_v12 = vpack.c.bf16 %v649_v51, %v645_v49  ;;  %7477 = vst [vmem:[#allocation12_spill] sm:$0xff] %v6044_v24  ;;  %v662_v51 = vld [vmem:[%s7329_s4 + $0x148] sm:$0xff] }
  0x43   :  { %3525 = vmatpush1.bf16.msra.mxu1 %v5890_v33  ;;  %515 = vmatprep.mubr.f32.mxu0 %v7335_v3  ;;  %v6053_v31 = vpack.c.bf16 %v660_v11, %v656_v8  ;;  %v6066_v49 = vpack.c.bf16 %v659_v35, %v655_v34  ;;  %v6080_v5 = vpack.c.bf16 %v666_v59, %v662_v51  ;;  %v661_v8 = vld [vmem:[%s7329_s4 + $0x140] sm:$0xff]  ;;  %v663_v34 = vld [vmem:[%s7329_s4 + $0x150] sm:$0xff]  ;;  %v670_v59 = vld [vmem:[%s7329_s4 + $0x188] sm:$0xff] }
  0x44   :  { %586 = vmatprep.mubr.f32.mxu1 %v7335_v3  ;;  %3527 = vmatprep.subr.bf16.mxu0 %v5903_v39  ;;  %7475 = vst [vmem:[#allocation10_spill] sm:$0xff] %v6038_v12  ;;  %v665_v11 = vld [vmem:[%s7329_s4 + $0x160] sm:$0xff]  ;;  %7482 = vst [vmem:[#allocation17_spill] sm:$0xff] %v6091_v25  ;;  %v667_v35 = vld [vmem:[%s7329_s4 + $0x170] sm:$0xff] }
  0x45   :  { %516 = vmatmul.mubr.f32.vlgmr.msra.gmra.mrb[0].mxu0 %v7335_v3  ;;  %3591 = vmatprep.subr.bf16.mxu1 %v5915_v46  ;;  %7478 = vst [vmem:[#allocation13_spill] sm:$0xff] %v6053_v31  ;;  %7480 = vst [vmem:[#allocation15_spill] sm:$0xff] %v6066_v49  ;;  %v6093_v30 = vpack.c.bf16 %v665_v11, %v661_v8  ;;  %v6102_v51 = vpack.c.bf16 %v667_v35, %v663_v34  ;;  %v676_v11 = vld [vmem:[%s7329_s4 + $0x1b8] sm:$0xff]  ;;  %v669_v34 = vld [vmem:[%s7329_s4 + $0x180] sm:$0xff] }
  0x46   :  { %587 = vmatmul.mubr.f32.vlgmr.msra.gmra.mrb[0].mxu1 %v7335_v3  ;;  %3529 = vmatpush1.bf16.msra.mxu0 %v5924_v52  ;;  %7481 = vst [vmem:[#allocation16_spill] sm:$0xff] %v6080_v5  ;;  %v6116_v8 = vpack.c.bf16 %v674_v0, %v670_v59  ;;  %v673_v35 = vld [vmem:[%s7329_s4 + $0x1a0] sm:$0xff]  ;;  %v671_v59 = vld [vmem:[%s7329_s4 + $0x190] sm:$0xff] }
  0x47   :  { %3593 = vmatpush1.bf16.msra.mxu1 %v5928_v55  ;;  %3531 = vmatprep.subr.bf16.mxu0 %v5930_v57  ;;  %7483 = vst [vmem:[#allocation18_spill] sm:$0xff] %v6093_v30  ;;  %7484 = vst [vmem:[#allocation19_spill] sm:$0xff] %v6102_v51  ;;  %v675_v0 = vld [vmem:[%s7329_s4 + $0x1b0] sm:$0xff] }
  0x48   :  { %3595 = vmatprep.subr.bf16.mxu1 %v5943_v1  ;;  %835 = vmatprep.mubr.f32.mxu0 %v7335_v3  ;;  %7485 = vst [vmem:[#allocation20_spill] sm:$0xff] %v6116_v8 }
  0x49   :  { %906 = vmatprep.mubr.f32.mxu1 %v7335_v3  ;;  %v6127_v3 = vpack.c.bf16 %v676_v11, %v672_v7  ;;  %v678_v7 = vld [vmem:[%s7329_s4 + $0x1c8] sm:$0xff] }
  0x4a   :  { %3533 = vmatpush1.bf16.msra.mxu0 %v5964_v15  ;;  %v682_v11 = vld [vmem:[%s7329_s4 + $0x1e8] sm:$0xff] }
  0x4b   :  { %3597 = vmatpush1.bf16.msra.mxu1 %v5968_v17  ;;  %3535 = vmatprep.subr.bf16.mxu0 %v5970_v20  ;;  %7486 = vst [vmem:[#allocation21_spill] sm:$0xff] %v6127_v3 }
  0x4c   :  { %3599 = vmatprep.subr.bf16.mxu1 %v5982_v27 }
  0x4e   :  { %3537 = vmatpush1.bf16.msra.mxu0 %v6002_v42 }
  0x4f   :  { %3601 = vmatpush1.bf16.msra.mxu1 %v6006_v43  ;;  %3539 = vmatprep.subr.bf16.mxu0 %v6008_v45 }
  0x50   :  { %3603 = vmatprep.subr.bf16.mxu1 %v6020_v61 }
  0x52   :  { %3541 = vmatpush1.bf16.msra.mxu0 %v6038_v12 }
  0x53   :  { %3605 = vmatpush1.bf16.msra.mxu1 %v6042_v21  ;;  %3543 = vmatprep.subr.bf16.mxu0 %v6044_v24 }
  0x54   :  { %3607 = vmatprep.subr.bf16.mxu1 %v6053_v31 }
  0x56   :  { %3545 = vmatpush1.bf16.msra.mxu0 %v6062_v37 }
  0x57   :  { %3609 = vmatpush1.bf16.msra.mxu1 %v6066_v49  ;;  %3547 = vmatprep.subr.bf16.mxu0 %v6080_v5  ;;  %v735_v5 = vld [vmem:[%s7329_s4 + $0x390] sm:$0xff] }
  0x58   :  { %3611 = vmatprep.subr.bf16.mxu1 %v6091_v25 }
  0x5a   :  { %3549 = vmatpush1.bf16.msra.mxu0 %v6093_v30  ;;  %v6129_v30 = vpack.c.bf16 %v673_v35, %v669_v34  ;;  %v680_v34 = vld [vmem:[%s7329_s4 + $0x1d8] sm:$0xff]  ;;  %v6152_v35 = vpack.c.bf16 %v682_v11, %v678_v7  ;;  %v679_v7 = vld [vmem:[%s7329_s4 + $0x1d0] sm:$0xff] }
  0x5b   :  { %3613 = vmatpush1.bf16.msra.mxu1 %v6102_v51  ;;  %3551 = vmatprep.subr.bf16.mxu0 %v6116_v8  ;;  %v6138_v51 = vpack.c.bf16 %v675_v0, %v671_v59  ;;  %v684_v59 = vld [vmem:[%s7329_s4 + $0x1f8] sm:$0xff]  ;;  %v677_v0 = vld [vmem:[%s7329_s4 + $0x1c0] sm:$0xff]  ;;  %v683_v11 = vld [vmem:[%s7329_s4 + $0x1f0] sm:$0xff] }
  0x5c   :  { %7487 = vst [vmem:[#allocation22_spill] sm:$0xff] %v6129_v30  ;;  %3615 = vmatprep.subr.bf16.mxu1 %v6127_v3  ;;  %7489 = vst [vmem:[#allocation24_spill] sm:$0xff] %v6152_v35  ;;  %v6163_v3 = vpack.c.bf16 %v684_v59, %v680_v34  ;;  %v690_v34 = vld [vmem:[%s7329_s4 + $0x228] sm:$0xff]  ;;  %v688_v59 = vld [vmem:[%s7329_s4 + $0x218] sm:$0xff] }
  0x5d   :  { %7488 = vst [vmem:[#allocation23_spill] sm:$0xff] %v6138_v51 }
  0x5e   :  { %3553 = vmatpush1.bf16.msra.mxu0 %v6129_v30  ;;  %v681_v30 = vld [vmem:[%s7329_s4 + $0x1e0] sm:$0xff]  ;;  %7490 = vst [vmem:[#allocation25_spill] sm:$0xff] %v6163_v3 }
  0x5f   :  { %3617 = vmatpush1.bf16.msra.mxu1 %v6138_v51  ;;  %v6165_v8 = vpack.c.bf16 %v681_v30, %v677_v0  ;;  %3555 = vmatprep.subr.bf16.mxu0 %v6152_v35  ;;  %v6174_v51 = vpack.c.bf16 %v683_v11, %v679_v7  ;;  %v686_v30 = vld [vmem:[%s7329_s4 + $0x208] sm:$0xff]  ;;  %v692_v7 = vld [vmem:[%s7329_s4 + $0x238] sm:$0xff]  ;;  %v685_v11 = vld [vmem:[%s7329_s4 + $0x200] sm:$0xff] }
  0x60   :  { %3619 = vmatprep.subr.bf16.mxu1 %v6163_v3  ;;  %v6188_v0 = vpack.c.bf16 %v690_v34, %v686_v30  ;;  %v6199_v3 = vpack.c.bf16 %v692_v7, %v688_v59  ;;  %v687_v30 = vld [vmem:[%s7329_s4 + $0x210] sm:$0xff]  ;;  %v698_v59 = vld [vmem:[%s7329_s4 + $0x268] sm:$0xff]  ;;  %v696_v7 = vld [vmem:[%s7329_s4 + $0x258] sm:$0xff] }
  0x61   :  { %7491 = vst [vmem:[#allocation26_spill] sm:$0xff] %v6165_v8  ;;  %7492 = vst [vmem:[#allocation27_spill] sm:$0xff] %v6174_v51  ;;  %v691_v34 = vld [vmem:[%s7329_s4 + $0x230] sm:$0xff] }
  0x62   :  { %3557 = vmatpush1.bf16.msra.mxu0 %v6165_v8  ;;  %7493 = vst [vmem:[#allocation28_spill] sm:$0xff] %v6188_v0  ;;  %v689_v8 = vld [vmem:[%s7329_s4 + $0x220] sm:$0xff]  ;;  %7494 = vst [vmem:[#allocation29_spill] sm:$0xff] %v6199_v3 }
  0x63   :  { %3621 = vmatpush1.bf16.msra.mxu1 %v6174_v51  ;;  %v6201_v35 = vpack.c.bf16 %v689_v8, %v685_v11  ;;  %3559 = vmatprep.subr.bf16.mxu0 %v6188_v0  ;;  %v6210_v51 = vpack.c.bf16 %v691_v34, %v687_v30  ;;  %v694_v8 = vld [vmem:[%s7329_s4 + $0x248] sm:$0xff]  ;;  %v700_v30 = vld [vmem:[%s7329_s4 + $0x278] sm:$0xff]  ;;  %v693_v34 = vld [vmem:[%s7329_s4 + $0x240] sm:$0xff] }
  0x64   :  { %3623 = vmatprep.subr.bf16.mxu1 %v6199_v3  ;;  %v6224_v11 = vpack.c.bf16 %v698_v59, %v694_v8  ;;  %v6235_v3 = vpack.c.bf16 %v700_v30, %v696_v7  ;;  %v695_v8 = vld [vmem:[%s7329_s4 + $0x250] sm:$0xff]  ;;  %v706_v7 = vld [vmem:[%s7329_s4 + $0x2a8] sm:$0xff]  ;;  %v704_v30 = vld [vmem:[%s7329_s4 + $0x298] sm:$0xff] }
  0x65   :  { %7495 = vst [vmem:[#allocation30_spill] sm:$0xff] %v6201_v35  ;;  %7496 = vst [vmem:[#allocation31_spill] sm:$0xff] %v6210_v51  ;;  %v699_v59 = vld [vmem:[%s7329_s4 + $0x270] sm:$0xff] }
  0x66   :  { %3561 = vmatpush1.bf16.msra.mxu0 %v6201_v35  ;;  %7497 = vst [vmem:[#allocation32_spill] sm:$0xff] %v6224_v11  ;;  %v697_v35 = vld [vmem:[%s7329_s4 + $0x260] sm:$0xff]  ;;  %7498 = vst [vmem:[#allocation33_spill] sm:$0xff] %v6235_v3 }
  0x67   :  { %3625 = vmatpush1.bf16.msra.mxu1 %v6210_v51  ;;  %v6237_v0 = vpack.c.bf16 %v697_v35, %v693_v34  ;;  %3563 = vmatprep.subr.bf16.mxu0 %v6224_v11  ;;  %v6246_v51 = vpack.c.bf16 %v699_v59, %v695_v8  ;;  %v702_v35 = vld [vmem:[%s7329_s4 + $0x288] sm:$0xff]  ;;  %v708_v8 = vld [vmem:[%s7329_s4 + $0x2b8] sm:$0xff]  ;;  %v701_v59 = vld [vmem:[%s7329_s4 + $0x280] sm:$0xff] }
  0x68   :  { %3627 = vmatprep.subr.bf16.mxu1 %v6235_v3  ;;  %v6260_v34 = vpack.c.bf16 %v706_v7, %v702_v35  ;;  %v6271_v3 = vpack.c.bf16 %v708_v8, %v704_v30  ;;  %v703_v35 = vld [vmem:[%s7329_s4 + $0x290] sm:$0xff]  ;;  %v714_v30 = vld [vmem:[%s7329_s4 + $0x2e8] sm:$0xff]  ;;  %v712_v8 = vld [vmem:[%s7329_s4 + $0x2d8] sm:$0xff] }
  0x69   :  { %7499 = vst [vmem:[#allocation34_spill] sm:$0xff] %v6237_v0  ;;  %7500 = vst [vmem:[#allocation35_spill] sm:$0xff] %v6246_v51  ;;  %v707_v7 = vld [vmem:[%s7329_s4 + $0x2b0] sm:$0xff] }
  0x6a   :  { %3565 = vmatpush1.bf16.msra.mxu0 %v6237_v0  ;;  %7501 = vst [vmem:[#allocation36_spill] sm:$0xff] %v6260_v34  ;;  %v705_v0 = vld [vmem:[%s7329_s4 + $0x2a0] sm:$0xff]  ;;  %7502 = vst [vmem:[#allocation37_spill] sm:$0xff] %v6271_v3 }
  0x6b   :  { %3629 = vmatpush1.bf16.msra.mxu1 %v6246_v51  ;;  %v6273_v11 = vpack.c.bf16 %v705_v0, %v701_v59  ;;  %3567 = vmatprep.subr.bf16.mxu0 %v6260_v34  ;;  %v6282_v51 = vpack.c.bf16 %v707_v7, %v703_v35  ;;  %v710_v0 = vld [vmem:[%s7329_s4 + $0x2c8] sm:$0xff]  ;;  %v716_v35 = vld [vmem:[%s7329_s4 + $0x2f8] sm:$0xff]  ;;  %v709_v7 = vld [vmem:[%s7329_s4 + $0x2c0] sm:$0xff] }
  0x6c   :  { %3631 = vmatprep.subr.bf16.mxu1 %v6271_v3  ;;  %v6296_v59 = vpack.c.bf16 %v714_v30, %v710_v0  ;;  %v6307_v3 = vpack.c.bf16 %v716_v35, %v712_v8  ;;  %v711_v0 = vld [vmem:[%s7329_s4 + $0x2d0] sm:$0xff]  ;;  %v722_v8 = vld [vmem:[%s7329_s4 + $0x328] sm:$0xff]  ;;  %v720_v35 = vld [vmem:[%s7329_s4 + $0x318] sm:$0xff] }
  0x6d   :  { %7503 = vst [vmem:[#allocation38_spill] sm:$0xff] %v6273_v11  ;;  %7504 = vst [vmem:[#allocation39_spill] sm:$0xff] %v6282_v51  ;;  %v715_v30 = vld [vmem:[%s7329_s4 + $0x2f0] sm:$0xff] }
  0x6e   :  { %3569 = vmatpush1.bf16.msra.mxu0 %v6273_v11  ;;  %7505 = vst [vmem:[#allocation40_spill] sm:$0xff] %v6296_v59  ;;  %v713_v11 = vld [vmem:[%s7329_s4 + $0x2e0] sm:$0xff]  ;;  %7506 = vst [vmem:[#allocation41_spill] sm:$0xff] %v6307_v3 }
  0x6f   :  { %3633 = vmatpush1.bf16.msra.mxu1 %v6282_v51  ;;  %v6309_v34 = vpack.c.bf16 %v713_v11, %v709_v7  ;;  %3571 = vmatprep.subr.bf16.mxu0 %v6296_v59  ;;  %v6318_v51 = vpack.c.bf16 %v715_v30, %v711_v0  ;;  %v718_v11 = vld [vmem:[%s7329_s4 + $0x308] sm:$0xff]  ;;  %v724_v0 = vld [vmem:[%s7329_s4 + $0x338] sm:$0xff]  ;;  %v717_v30 = vld [vmem:[%s7329_s4 + $0x300] sm:$0xff] }
  0x70   :  { %3635 = vmatprep.subr.bf16.mxu1 %v6307_v3  ;;  %v6332_v7 = vpack.c.bf16 %v722_v8, %v718_v11  ;;  %v6343_v3 = vpack.c.bf16 %v724_v0, %v720_v35  ;;  %v719_v11 = vld [vmem:[%s7329_s4 + $0x310] sm:$0xff]  ;;  %v730_v35 = vld [vmem:[%s7329_s4 + $0x368] sm:$0xff]  ;;  %v728_v0 = vld [vmem:[%s7329_s4 + $0x358] sm:$0xff] }
  0x71   :  { %7507 = vst [vmem:[#allocation42_spill] sm:$0xff] %v6309_v34  ;;  %7508 = vst [vmem:[#allocation43_spill] sm:$0xff] %v6318_v51  ;;  %v723_v8 = vld [vmem:[%s7329_s4 + $0x330] sm:$0xff] }
  0x72   :  { %3573 = vmatpush1.bf16.msra.mxu0 %v6309_v34  ;;  %7509 = vst [vmem:[#allocation44_spill] sm:$0xff] %v6332_v7  ;;  %v721_v34 = vld [vmem:[%s7329_s4 + $0x320] sm:$0xff]  ;;  %7510 = vst [vmem:[#allocation45_spill] sm:$0xff] %v6343_v3 }
  0x73   :  { %3637 = vmatpush1.bf16.msra.mxu1 %v6318_v51  ;;  %v6345_v59 = vpack.c.bf16 %v721_v34, %v717_v30  ;;  %3575 = vmatprep.subr.bf16.mxu0 %v6332_v7  ;;  %v6354_v51 = vpack.c.bf16 %v723_v8, %v719_v11  ;;  %v726_v34 = vld [vmem:[%s7329_s4 + $0x348] sm:$0xff]  ;;  %v732_v11 = vld [vmem:[%s7329_s4 + $0x378] sm:$0xff]  ;;  %v725_v8 = vld [vmem:[%s7329_s4 + $0x340] sm:$0xff] }
  0x74   :  { %3639 = vmatprep.subr.bf16.mxu1 %v6343_v3  ;;  %v6368_v30 = vpack.c.bf16 %v730_v35, %v726_v34  ;;  %v6379_v3 = vpack.c.bf16 %v732_v11, %v728_v0  ;;  %v727_v34 = vld [vmem:[%s7329_s4 + $0x350] sm:$0xff]  ;;  %v736_v0 = vld [vmem:[%s7329_s4 + $0x398] sm:$0xff] }
  0x75   :  { %7511 = vst [vmem:[#allocation46_spill] sm:$0xff] %v6345_v59  ;;  %7512 = vst [vmem:[#allocation47_spill] sm:$0xff] %v6354_v51  ;;  %v731_v35 = vld [vmem:[%s7329_s4 + $0x370] sm:$0xff]  ;;  %v740_v11 = vld [vmem:[%s7329_s4 + $0x3b8] sm:$0xff] }
  0x76   :  { %3577 = vmatpush1.bf16.msra.mxu0 %v6345_v59  ;;  %7513 = vst [vmem:[#allocation48_spill] sm:$0xff] %v6368_v30  ;;  %v729_v59 = vld [vmem:[%s7329_s4 + $0x360] sm:$0xff]  ;;  %7514 = vst [vmem:[#allocation49_spill] sm:$0xff] %v6379_v3  ;;  %v6393_v25 = vpack.c.bf16 %v731_v35, %v727_v34  ;;  %v6408_v34 = vpack.c.bf16 %v740_v11, %v736_v0  ;;  %v746_v0 = vld [vmem:[%s7329_s4 + $0x3e8] sm:$0xff] }
  0x77   :  { %3641 = vmatpush1.bf16.msra.mxu1 %v6354_v51  ;;  %v6381_v7 = vpack.c.bf16 %v729_v59, %v725_v8  ;;  %v734_v51 = vld [vmem:[%s7329_s4 + $0x388] sm:$0xff]  ;;  %3579 = vmatprep.subr.bf16.mxu0 %v6368_v30  ;;  %v733_v35 = vld [vmem:[%s7329_s4 + $0x380] sm:$0xff] }
  0x78   :  { %7516 = vst [vmem:[#allocation51_spill] sm:$0xff] %v6393_v25  ;;  %v738_v59 = vld [vmem:[%s7329_s4 + $0x3a8] sm:$0xff]  ;;  %3643 = vmatprep.subr.bf16.mxu1 %v6379_v3  ;;  %7518 = vst [vmem:[#allocation53_spill] sm:$0xff] %v6408_v34  ;;  %v737_v30 = vld [vmem:[%s7329_s4 + $0x3a0] sm:$0xff] }
  0x79   :  { %7515 = vst [vmem:[#allocation50_spill] sm:$0xff] %v6381_v7  ;;  %v6406_v8 = vpack.c.bf16 %v738_v59, %v734_v51  ;;  %v6420_v3 = vpack.c.bf16 %v737_v30, %v733_v35  ;;  %v739_v51 = vld [vmem:[%s7329_s4 + $0x3b0] sm:$0xff]  ;;  %v742_v59 = vld [vmem:[%s7329_s4 + $0x3c8] sm:$0xff]  ;;  %v744_v35 = vld [vmem:[%s7329_s4 + $0x3d8] sm:$0xff] }
  0x7a   :  { %3581 = vmatpush1.bf16.msra.mxu0 %v6381_v7  ;;  %v6433_v11 = vpack.c.bf16 %v739_v51, %v735_v5  ;;  %v6435_v30 = vpack.c.bf16 %v746_v0, %v742_v59  ;;  %v741_v7 = vld [vmem:[%s7329_s4 + $0x3c0] sm:$0xff]  ;;  %v743_v51 = vld [vmem:[%s7329_s4 + $0x3d0] sm:$0xff] }
  0x7b   :  { %7517 = vst [vmem:[#allocation52_spill] sm:$0xff] %v6406_v8  ;;  %3645 = vmatpush1.bf16.msra.mxu1 %v6393_v25  ;;  %7519 = vst [vmem:[#allocation54_spill] sm:$0xff] %v6420_v3  ;;  %3583 = vmatprep.subr.bf16.mxu0 %v6406_v8  ;;  %v748_v25 = vld [vmem:[%s7329_s4 + $0x3f8] sm:$0xff]  ;;  %v745_v5 = vld [vmem:[%s7329_s4 + $0x3e0] sm:$0xff] }
  0x7c   :  { %3647 = vmatprep.subr.bf16.mxu1 %v6408_v34  ;;  %7520 = vst [vmem:[#allocation55_spill] sm:$0xff] %v6433_v11  ;;  %7521 = vst [vmem:[#allocation56_spill] sm:$0xff] %v6435_v30  ;;  %v6446_v49 = vpack.c.bf16 %v748_v25, %v744_v35  ;;  %v747_v59 = vld [vmem:[%s7329_s4 + $0x3f0] sm:$0xff]  ;;  %v6458_v0 = vpack.c.bf16 %v745_v5, %v741_v7  ;;  %v105_v35 = vlaneseq  ;;  %v103_v5 = vld [vmem:[%s7330_s3] sm:$0xf] }
  0x7d   :  { %v6462_v25 = vpack.c.bf16 %v747_v59, %v743_v51 }
  0x7e   :  { %7522 = vst [vmem:[#allocation57_spill] sm:$0xff] %v6446_v49  ;;  %3585 = vmatpush1.bf16.msra.mxu0 %v6420_v3  ;;  %7523 = vst [vmem:[#allocation58_spill] sm:$0xff] %v6458_v0  ;;  %v6469_v3 = vshrl.u32 %v105_v35, 7 }
  0x7f   :  { %3649 = vmatpush1.bf16.msra.mxu1 %v6433_v11  ;;  %3587 = vmatprep.subr.bf16.mxu0 %v6435_v30  ;;  %7524 = vst [vmem:[#allocation59_spill] sm:$0xff] %v6462_v25 }
  0x80   :  { %3651 = vmatprep.subr.bf16.mxu1 %v6446_v49  ;;  %7525 = vst [vmem:[#allocation60_spill] sm:$0xff] %v6469_v3  ;;  %v7431_v7 = vsub.s32 0, %v6469_v3  ;;  %v7432_v51 = vsub.s32 1, %v6469_v3  ;;  %v7439_v35 = vsub.s32 3, %v6469_v3 }
  0x82   :  { %3589 = vmatpush1.bf16.msra.mxu0 %v6458_v0  ;;  %v6478_v59 = vrot.slane %v103_v5, %v7431_v7  ;;  %v6489_v7 = vrot.slane %v103_v5, %v7439_v35 }
  0x83   :  { %3653 = vmatpush1.bf16.msra.mxu1 %v6462_v25  ;;  %3655 = vmatprep.subr.bf16.mxu0 %v5571_v38  ;;  %v6482_v38 = vrot.slane %v103_v5, %v7432_v51  ;;  %v7448_v51 = vsub.s32 2, %v6469_v3 }
  0x84   :  { %3687 = vmatprep.subr.bf16.mxu1 %v5579_v41  ;;  %7526 = vst [vmem:[#allocation61_spill] sm:$0xff] %v6478_v59  ;;  %7528 = vst [vmem:[#allocation63_spill] sm:$0xff] %v6489_v7 }
  0x85   :  { %7527 = vst [vmem:[#allocation62_spill] sm:$0xff] %v6482_v38 }
 0x118   :  { %v517_v41 = vpop.f32.mrb[0].mxu0 }
 0x119   :  { %v4998_v25 = vadd.f32 %v517_v41, %v6478_v59  ;;  %v588_v0 = vpop.f32.mrb[0].mxu1  ;;  %v519_v49 = vpop.f32.mrb[1].mxu0  ;;  %v6495_v41 = vrot.slane %v103_v5, %v7448_v51  ;;  %v7544_v51 = vld [vmem:[#allocation26_spill] sm:$0xff] }
 0x11a   :  { %v4999_v30 = vadd.f32 %v519_v49, %v6482_v38  ;;  %v590_v11 = vpop.f32.mrb[1].mxu1 }
 0x11b   :  { %v3348_v34 = vmul.f32 -1.442695, %v4998_v25  ;;  %v5015_v37 = vadd.f32 %v590_v11, %v6489_v7  ;;  %v5014_v49 = vadd.f32 %v588_v0, %v6495_v41 }
 0x11c   :  { %v3349_v8 = vmul.f32 -1.442695, %v4999_v30 }
 0x11d   :  { %5063 = vpow2.f32 %v3348_v34  ;;  %v3350_v59 = vmul.f32 -1.442695, %v5015_v37 }
 0x11e   :  { %5065 = vpow2.f32 %v3349_v8 }
 0x11f   :  { %5067 = vpow2.f32 %v3350_v59  ;;  %v7533_v59 = vld [vmem:[#allocation15_spill] sm:$0xff] }
 0x120   :  { %5069 = vtanh.f32 %v5014_v49  ;;  %v7535_v49 = vld [vmem:[#allocation17_spill] sm:$0xff] }
 0x127   :  { %v5064_v38 = vpop.eup %5063 }
 0x128   :  { %v5066_v25 = vpop.eup %5065  ;;  %v600_v30 = vadd.f32 1.0, %v5064_v38 }
 0x129   :  { %v606_v35 = vadd.f32 1.0, %v5066_v25  ;;  %v5068_v34 = vpop.eup %5067  ;;  %v7536_v25 = vld [vmem:[#allocation18_spill] sm:$0xff] }
 0x12a   :  { %5071 = vrcp.f32 %v600_v30  ;;  %v5070_v31 = vpop.eup %5069  ;;  %v613_v7 = vadd.f32 1.0, %v5068_v34  ;;  %v7537_v30 = vld [vmem:[#allocation19_spill] sm:$0xff]  ;;  %v7538_v34 = vld [vmem:[#allocation20_spill] sm:$0xff] }
 0x12b   :  { %5073 = vrcp.f32 %v606_v35  ;;  %v7534_v35 = vld [vmem:[#allocation16_spill] sm:$0xff] }
 0x12c   :  { %5075 = vrcp.f32 %v613_v7  ;;  %v7532_v7 = vld [vmem:[#allocation14_spill] sm:$0xff] }
 0x134   :  { %v5072_v8 = vpop.eup %5071 }
 0x135   :  { %v5074_v24 = vpop.eup %5073  ;;  %v617_v11 = vmul.f32 %v5072_v8, %v5070_v31  ;;  %v7529_v31 = vmov 0.0   ;;  %v7539_v8 = vld [vmem:[#allocation21_spill] sm:$0xff] }
 0x136   :  { %v616_v3 = vmul.f32 0.0, %v5074_v24  ;;  %v5076_v37 = vpop.eup %5075  ;;  %v7531_v24 = vld [vmem:[#allocation13_spill] sm:$0xff] }
 0x138   :  { %v6498_v5 = vadd.f32 %v617_v11, %v616_v3  ;;  %v7530_v3 = vld [vmem:[#allocation12_spill] sm:$0xff]  ;;  %v7540_v11 = vld [vmem:[#allocation22_spill] sm:$0xff] }
 0x13a   :  { %5077 = vtanh.f32 %v6498_v5 }
 0x144   :  { %v5078_v0 = vpop.eup %5077 }
 0x145   :  { %v620_v38 = vmul.f32 %v5078_v0, %v5076_v37  ;;  %v7541_v37 = vld [vmem:[#allocation23_spill] sm:$0xff]  ;;  %v7542_v0 = vld [vmem:[#allocation24_spill] sm:$0xff] }
 0x147   :  { %836 = vmatmul.mubr.f32.vlgmr.msra.gmra.mrb[16].mxu0 %v620_v38  ;;  %907 = vmatmul.mubr.f32.vlgmr.msra.gmra.mrb[16].mxu1 %v620_v38 }
 0x148   :  { %3657 = vmatpush1.bf16.msra.mxu0 %v5596_v47  ;;  %3689 = vmatpush1.bf16.msra.mxu1 %v5605_v50 }
 0x149   :  { %3659 = vmatprep.subr.bf16.mxu0 %v5614_v53  ;;  %3691 = vmatprep.subr.bf16.mxu1 %v5622_v56 }
 0x14a   :  { %1006 = vmatprep.mubr.f32.mxu0 %v7529_v31  ;;  %1077 = vmatprep.mubr.f32.mxu1 %v7529_v31 }
 0x14c   :  { %3661 = vmatpush1.bf16.msra.mxu0 %v5634_v60  ;;  %3693 = vmatpush1.bf16.msra.mxu1 %v5644_v63 }
 0x14d   :  { %3663 = vmatprep.subr.bf16.mxu0 %v5654_v2  ;;  %3695 = vmatprep.subr.bf16.mxu1 %v5663_v6 }
 0x150   :  { %3665 = vmatpush1.bf16.msra.mxu0 %v5675_v10  ;;  %3697 = vmatpush1.bf16.msra.mxu1 %v5685_v13 }
 0x151   :  { %3667 = vmatprep.subr.bf16.mxu0 %v5695_v16  ;;  %3699 = vmatprep.subr.bf16.mxu1 %v5704_v19 }
 0x154   :  { %3669 = vmatpush1.bf16.msra.mxu0 %v5716_v23  ;;  %3701 = vmatpush1.bf16.msra.mxu1 %v5726_v26 }
 0x155   :  { %3671 = vmatprep.subr.bf16.mxu0 %v5736_v29  ;;  %3703 = vmatprep.subr.bf16.mxu1 %v5745_v32 }
 0x158   :  { %3673 = vmatpush1.bf16.msra.mxu0 %v5757_v36  ;;  %3705 = vmatpush1.bf16.msra.mxu1 %v5767_v40 }
 0x159   :  { %3675 = vmatprep.subr.bf16.mxu0 %v5777_v44  ;;  %3707 = vmatprep.subr.bf16.mxu1 %v5786_v48 }
 0x15c   :  { %3677 = vmatpush1.bf16.msra.mxu0 %v5798_v54  ;;  %3709 = vmatpush1.bf16.msra.mxu1 %v5808_v58 }
 0x15d   :  { %3679 = vmatprep.subr.bf16.mxu0 %v5818_v62  ;;  %3711 = vmatprep.subr.bf16.mxu1 %v5827_v4 }
 0x160   :  { %3681 = vmatpush1.bf16.msra.mxu0 %v5839_v9  ;;  %3713 = vmatpush1.bf16.msra.mxu1 %v5849_v14 }
 0x161   :  { %3683 = vmatprep.subr.bf16.mxu0 %v5859_v18  ;;  %3715 = vmatprep.subr.bf16.mxu1 %v5868_v22 }
 0x164   :  { %3685 = vmatpush1.bf16.msra.mxu0 %v5880_v28  ;;  %3717 = vmatpush1.bf16.msra.mxu1 %v5890_v33 }
 0x165   :  { %3719 = vmatprep.subr.bf16.mxu0 %v5903_v39  ;;  %3783 = vmatprep.subr.bf16.mxu1 %v5915_v46 }
 0x167   :  { %1007 = vmatmul.mubr.f32.vlgmr.msra.gmra.mrb[2].mxu0 %v620_v38  ;;  %1078 = vmatmul.mubr.f32.vlgmr.msra.gmra.mrb[2].mxu1 %v620_v38  ;;  %v7543_v38 = vld [vmem:[#allocation25_spill] sm:$0xff] }
 0x168   :  { %3721 = vmatpush1.bf16.msra.mxu0 %v5924_v52  ;;  %3785 = vmatpush1.bf16.msra.mxu1 %v5928_v55 }
 0x169   :  { %3723 = vmatprep.subr.bf16.mxu0 %v5930_v57  ;;  %3787 = vmatprep.subr.bf16.mxu1 %v5943_v1 }
 0x16c   :  { %3725 = vmatpush1.bf16.msra.mxu0 %v5964_v15  ;;  %3789 = vmatpush1.bf16.msra.mxu1 %v5968_v17 }
 0x16d   :  { %3727 = vmatprep.subr.bf16.mxu0 %v5970_v20  ;;  %3791 = vmatprep.subr.bf16.mxu1 %v5982_v27 }
 0x170   :  { %3729 = vmatpush1.bf16.msra.mxu0 %v6002_v42  ;;  %3793 = vmatpush1.bf16.msra.mxu1 %v6006_v43 }
 0x171   :  { %3731 = vmatprep.subr.bf16.mxu0 %v6008_v45  ;;  %3795 = vmatprep.subr.bf16.mxu1 %v6020_v61 }
 0x174   :  { %3733 = vmatpush1.bf16.msra.mxu0 %v6038_v12  ;;  %3797 = vmatpush1.bf16.msra.mxu1 %v6042_v21 }
 0x175   :  { %3735 = vmatprep.subr.bf16.mxu0 %v7530_v3  ;;  %3799 = vmatprep.subr.bf16.mxu1 %v7531_v24 }
 0x178   :  { %3737 = vmatpush1.bf16.msra.mxu0 %v7532_v7  ;;  %3801 = vmatpush1.bf16.msra.mxu1 %v7533_v59 }
 0x179   :  { %3739 = vmatprep.subr.bf16.mxu0 %v7534_v35  ;;  %3803 = vmatprep.subr.bf16.mxu1 %v7535_v49  ;;  %v7545_v35 = vld [vmem:[#allocation27_spill] sm:$0xff]  ;;  %v7546_v49 = vld [vmem:[#allocation28_spill] sm:$0xff] }
 0x17c   :  { %3741 = vmatpush1.bf16.msra.mxu0 %v7536_v25  ;;  %3805 = vmatpush1.bf16.msra.mxu1 %v7537_v30  ;;  %v7547_v25 = vld [vmem:[#allocation29_spill] sm:$0xff]  ;;  %v7548_v30 = vld [vmem:[#allocation30_spill] sm:$0xff] }
 0x17d   :  { %3743 = vmatprep.subr.bf16.mxu0 %v7538_v34  ;;  %3807 = vmatprep.subr.bf16.mxu1 %v7539_v8  ;;  %v7549_v34 = vld [vmem:[#allocation31_spill] sm:$0xff]  ;;  %v7550_v8 = vld [vmem:[#allocation32_spill] sm:$0xff] }
 0x180   :  { %3745 = vmatpush1.bf16.msra.mxu0 %v7540_v11  ;;  %3809 = vmatpush1.bf16.msra.mxu1 %v7541_v37  ;;  %v7551_v11 = vld [vmem:[#allocation33_spill] sm:$0xff]  ;;  %v7552_v37 = vld [vmem:[#allocation34_spill] sm:$0xff] }
 0x181   :  { %3747 = vmatprep.subr.bf16.mxu0 %v7542_v0  ;;  %3811 = vmatprep.subr.bf16.mxu1 %v7543_v38  ;;  %v7553_v0 = vld [vmem:[#allocation35_spill] sm:$0xff]  ;;  %v7554_v38 = vld [vmem:[#allocation36_spill] sm:$0xff] }
 0x184   :  { %3749 = vmatpush1.bf16.msra.mxu0 %v7544_v51  ;;  %3813 = vmatpush1.bf16.msra.mxu1 %v7545_v35  ;;  %v7555_v51 = vld [vmem:[#allocation37_spill] sm:$0xff]  ;;  %v7556_v35 = vld [vmem:[#allocation38_spill] sm:$0xff] }
 0x185   :  { %3751 = vmatprep.subr.bf16.mxu0 %v7546_v49  ;;  %3815 = vmatprep.subr.bf16.mxu1 %v7547_v25  ;;  %v7557_v49 = vld [vmem:[#allocation39_spill] sm:$0xff]  ;;  %v7558_v25 = vld [vmem:[#allocation40_spill] sm:$0xff] }
 0x188   :  { %3753 = vmatpush1.bf16.msra.mxu0 %v7548_v30  ;;  %3817 = vmatpush1.bf16.msra.mxu1 %v7549_v34  ;;  %v7559_v30 = vld [vmem:[#allocation41_spill] sm:$0xff]  ;;  %v7560_v34 = vld [vmem:[#allocation42_spill] sm:$0xff] }
 0x189   :  { %3755 = vmatprep.subr.bf16.mxu0 %v7550_v8  ;;  %3819 = vmatprep.subr.bf16.mxu1 %v7551_v11  ;;  %v7561_v8 = vld [vmem:[#allocation43_spill] sm:$0xff]  ;;  %v7562_v11 = vld [vmem:[#allocation44_spill] sm:$0xff] }
 0x18c   :  { %3757 = vmatpush1.bf16.msra.mxu0 %v7552_v37  ;;  %3821 = vmatpush1.bf16.msra.mxu1 %v7553_v0  ;;  %v7563_v37 = vld [vmem:[#allocation45_spill] sm:$0xff]  ;;  %v7564_v0 = vld [vmem:[#allocation46_spill] sm:$0xff] }
 0x18d   :  { %3759 = vmatprep.subr.bf16.mxu0 %v7554_v38  ;;  %3823 = vmatprep.subr.bf16.mxu1 %v7555_v51  ;;  %v7565_v38 = vld [vmem:[#allocation47_spill] sm:$0xff]  ;;  %v7566_v51 = vld [vmem:[#allocation48_spill] sm:$0xff] }
 0x190   :  { %3761 = vmatpush1.bf16.msra.mxu0 %v7556_v35  ;;  %3825 = vmatpush1.bf16.msra.mxu1 %v7557_v49  ;;  %v7567_v35 = vld [vmem:[#allocation49_spill] sm:$0xff]  ;;  %v7568_v49 = vld [vmem:[#allocation50_spill] sm:$0xff] }
 0x191   :  { %3763 = vmatprep.subr.bf16.mxu0 %v7558_v25  ;;  %3827 = vmatprep.subr.bf16.mxu1 %v7559_v30  ;;  %v7569_v25 = vld [vmem:[#allocation51_spill] sm:$0xff]  ;;  %v7570_v30 = vld [vmem:[#allocation52_spill] sm:$0xff] }
 0x194   :  { %3765 = vmatpush1.bf16.msra.mxu0 %v7560_v34  ;;  %3829 = vmatpush1.bf16.msra.mxu1 %v7561_v8  ;;  %v7571_v34 = vld [vmem:[#allocation53_spill] sm:$0xff]  ;;  %v7572_v8 = vld [vmem:[#allocation54_spill] sm:$0xff] }
 0x195   :  { %3767 = vmatprep.subr.bf16.mxu0 %v7562_v11  ;;  %3831 = vmatprep.subr.bf16.mxu1 %v7563_v37  ;;  %v7573_v11 = vld [vmem:[#allocation55_spill] sm:$0xff]  ;;  %v7574_v37 = vld [vmem:[#allocation56_spill] sm:$0xff] }
 0x198   :  { %3769 = vmatpush1.bf16.msra.mxu0 %v7564_v0  ;;  %3833 = vmatpush1.bf16.msra.mxu1 %v7565_v38  ;;  %v7575_v0 = vld [vmem:[#allocation57_spill] sm:$0xff]  ;;  %v7576_v38 = vld [vmem:[#allocation58_spill] sm:$0xff] }
 0x199   :  { %3771 = vmatprep.subr.bf16.mxu0 %v7566_v51  ;;  %3835 = vmatprep.subr.bf16.mxu1 %v7567_v35  ;;  %v7577_v51 = vld [vmem:[#allocation59_spill] sm:$0xff]  ;;  %v7578_v35 = vld [vmem:[#allocation4_spill] sm:$0xff] }
 0x19c   :  { %3773 = vmatpush1.bf16.msra.mxu0 %v7568_v49  ;;  %3837 = vmatpush1.bf16.msra.mxu1 %v7569_v25  ;;  %v7579_v49 = vld [vmem:[#allocation5_spill] sm:$0xff] }
 0x19d   :  { %3775 = vmatprep.subr.bf16.mxu0 %v7570_v30  ;;  %3839 = vmatprep.subr.bf16.mxu1 %v7571_v34  ;;  %v749_v34 = vld [vmem:[%s7331_s5] sm:$0xf] }
 0x19e   :  { %v7580_v30 = vld [vmem:[#allocation60_spill] sm:$0xff] }
 0x19f   :  { %v7585_v3 = vsub.s32 3, %v7580_v30 }
 0x1a0   :  { %3777 = vmatpush1.bf16.msra.mxu0 %v7572_v8  ;;  %3841 = vmatpush1.bf16.msra.mxu1 %v7573_v11  ;;  %v7581_v8 = vsub.s32 0, %v7580_v30 }
 0x1a1   :  { %3779 = vmatprep.subr.bf16.mxu0 %v7574_v37  ;;  %3843 = vmatprep.subr.bf16.mxu1 %v7575_v0  ;;  %v7583_v37 = vsub.s32 1, %v7580_v30  ;;  %v6614_v21 = vrot.slane %v749_v34, %v7585_v3 }
 0x1a2   :  { %v6604_v25 = vrot.slane %v749_v34, %v7581_v8 }
 0x1a3   :  { %v6608_v11 = vrot.slane %v749_v34, %v7583_v37  ;;  %7586 = vst [vmem:[#allocation65_spill] sm:$0xff] %v6614_v21  ;;  %v7587_v37 = vsub.s32 2, %v7580_v30 }
 0x1a4   :  { %3781 = vmatpush1.bf16.msra.mxu0 %v7576_v38  ;;  %3845 = vmatpush1.bf16.msra.mxu1 %v7577_v51  ;;  %7582 = vst [vmem:[#allocation60_spill] sm:$0xff] %v6604_v25 }
 0x1a5   :  { %3847 = vmatprep.subr.bf16.mxu0 %v7578_v35  ;;  %3879 = vmatprep.subr.bf16.mxu1 %v7579_v49  ;;  %7584 = vst [vmem:[#allocation64_spill] sm:$0xff] %v6608_v11  ;;  %v6619_v12 = vrot.slane %v749_v34, %v7587_v37 }
 0x1a7   :  { %7588 = vst [vmem:[#allocation66_spill] sm:$0xff] %v6619_v12 }
 0x21a   :  { %v837_v0 = vpop.f32.mrb[16].mxu0  ;;  %v908_v38 = vpop.f32.mrb[16].mxu1 }
 0x21b   :  { %v838_v51 = vadd.f32 %v837_v0, %v6604_v25  ;;  %v839_v59 = vpop.f32.mrb[17].mxu0  ;;  %v910_v35 = vpop.f32.mrb[17].mxu1  ;;  %v909_v0 = vadd.f32 %v908_v38, %v6619_v12  ;;  %v7589_v38 = vld [vmem:[#allocation61_spill] sm:$0xff] }
 0x21c   :  { %v840_v49 = vadd.f32 %v839_v59, %v6608_v11  ;;  %v911_v8 = vadd.f32 %v910_v35, %v6614_v21 }
 0x21d   :  { %v3351_v7 = vmul.f32 -1.442695, %v838_v51 }
 0x21e   :  { %v3352_v24 = vmul.f32 -1.442695, %v840_v49  ;;  %v3353_v61 = vmul.f32 -1.442695, %v911_v8 }
 0x21f   :  { %5079 = vpow2.f32 %v3351_v7 }
 0x220   :  { %5081 = vpow2.f32 %v3352_v24 }
 0x221   :  { %5083 = vpow2.f32 %v3353_v61 }
 0x222   :  { %5085 = vtanh.f32 %v909_v0 }
 0x229   :  { %v5080_v25 = vpop.eup %5079 }
 0x22a   :  { %v5082_v45 = vpop.eup %5081  ;;  %v916_v59 = vadd.f32 1.0, %v5080_v25 }
 0x22b   :  { %v922_v51 = vadd.f32 1.0, %v5082_v45  ;;  %v5084_v3 = vpop.eup %5083  ;;  %v7590_v45 = vld [vmem:[#allocation62_spill] sm:$0xff] }
 0x22c   :  { %5087 = vrcp.f32 %v916_v59  ;;  %v5086_v7 = vpop.eup %5085  ;;  %v929_v21 = vadd.f32 1.0, %v5084_v3 }
 0x22d   :  { %5089 = vrcp.f32 %v922_v51 }
 0x22e   :  { %5091 = vrcp.f32 %v929_v21 }
 0x236   :  { %v5088_v24 = vpop.eup %5087 }
 0x237   :  { %v5090_v49 = vpop.eup %5089  ;;  %v933_v35 = vmul.f32 %v5088_v24, %v5086_v7  ;;  %v7591_v7 = vld [vmem:[#allocation63_spill] sm:$0xff] }
 0x238   :  { %v932_v30 = vmul.f32 0.0, %v5090_v49  ;;  %v5092_v24 = vpop.eup %5091 }
 0x23a   :  { %v6622_v34 = vadd.f32 %v933_v35, %v932_v30  ;;  %v1008_v8 = vpop.f32.mrb[2].mxu0  ;;  %v1079_v37 = vpop.f32.mrb[2].mxu1 }
 0x23b   :  { %v5000_v12 = vadd.f32 %v1008_v8, %v7589_v38  ;;  %v1010_v25 = vpop.f32.mrb[3].mxu0  ;;  %v1081_v61 = vpop.f32.mrb[3].mxu1  ;;  %v5016_v30 = vadd.f32 %v1079_v37, %v6495_v41 }
 0x23c   :  { %5093 = vtanh.f32 %v6622_v34  ;;  %v5001_v0 = vadd.f32 %v1010_v25, %v7590_v45  ;;  %v5017_v3 = vadd.f32 %v1081_v61, %v7591_v7 }
 0x23d   :  { %v3354_v59 = vmul.f32 -1.442695, %v5000_v12 }
 0x23e   :  { %v3355_v51 = vmul.f32 -1.442695, %v5001_v0  ;;  %v3356_v35 = vmul.f32 -1.442695, %v5017_v3 }
 0x23f   :  { %5095 = vpow2.f32 %v3354_v59 }
 0x240   :  { %5097 = vpow2.f32 %v3355_v51 }
 0x241   :  { %5099 = vpow2.f32 %v3356_v35  ;;  %v7595_v35 = vld [vmem:[#allocation11_spill] sm:$0xff] }
 0x242   :  { %5101 = vtanh.f32 %v5016_v30  ;;  %v7596_v30 = vld [vmem:[#allocation12_spill] sm:$0xff] }
 0x246   :  { %v5094_v49 = vpop.eup %5093 }
 0x247   :  { %v936_v21 = vmul.f32 %v5094_v49, %v5092_v24 }
 0x249   :  { %v5096_v11 = vpop.eup %5095  ;;  %1176 = vmatprep.mubr.f32.mxu0 %v936_v21  ;;  %1247 = vmatprep.mubr.f32.mxu1 %v936_v21  ;;  %v7597_v21 = vld [vmem:[#allocation13_spill] sm:$0xff] }
 0x24a   :  { %v5098_v8 = vpop.eup %5097  ;;  %v1091_v38 = vadd.f32 1.0, %v5096_v11 }
 0x24b   :  { %v1097_v25 = vadd.f32 1.0, %v5098_v8  ;;  %v5100_v12 = vpop.eup %5099  ;;  %v7598_v8 = vld [vmem:[#allocation14_spill] sm:$0xff] }
 0x24c   :  { %5103 = vrcp.f32 %v1091_v38  ;;  %v5102_v0 = vpop.eup %5101  ;;  %v1104_v7 = vadd.f32 1.0, %v5100_v12  ;;  %v7593_v38 = vld [vmem:[#allocation9_spill] sm:$0xff]  ;;  %v7600_v12 = vld [vmem:[#allocation16_spill] sm:$0xff] }
 0x24d   :  { %5105 = vrcp.f32 %v1097_v25  ;;  %v7599_v25 = vld [vmem:[#allocation15_spill] sm:$0xff] }
 0x24e   :  { %5107 = vrcp.f32 %v1104_v7  ;;  %v7594_v7 = vld [vmem:[#allocation10_spill] sm:$0xff] }
 0x256   :  { %v5104_v59 = vpop.eup %5103 }
 0x257   :  { %v5106_v61 = vpop.eup %5105  ;;  %v1108_v51 = vmul.f32 %v5104_v59, %v5102_v0  ;;  %v7601_v0 = vld [vmem:[#allocation17_spill] sm:$0xff]  ;;  %v7602_v59 = vld [vmem:[#allocation18_spill] sm:$0xff] }
 0x258   :  { %v1107_v3 = vmul.f32 %v5106_v61, %v6498_v5  ;;  %v5108_v24 = vpop.eup %5107  ;;  %v7592_v5 = vld [vmem:[#allocation8_spill] sm:$0xff]  ;;  %v7603_v61 = vld [vmem:[#allocation19_spill] sm:$0xff] }
 0x25a   :  { %v6630_v37 = vadd.f32 %v1108_v51, %v1107_v3  ;;  %v7604_v51 = vld [vmem:[#allocation20_spill] sm:$0xff]  ;;  %v7605_v3 = vld [vmem:[#allocation21_spill] sm:$0xff] }
 0x25c   :  { %5109 = vtanh.f32 %v6630_v37 }
 0x266   :  { %v5110_v11 = vpop.eup %5109 }
 0x267   :  { %v1111_v49 = vmul.f32 %v5110_v11, %v5108_v24  ;;  %v7606_v24 = vld [vmem:[#allocation22_spill] sm:$0xff]  ;;  %v7607_v11 = vld [vmem:[#allocation23_spill] sm:$0xff] }
 0x269   :  { %1177 = vmatmul.mubr.f32.vlgmr.msra.gmra.mrb[18].mxu0 %v1111_v49  ;;  %1248 = vmatmul.mubr.f32.vlgmr.msra.gmra.mrb[18].mxu1 %v1111_v49 }
 0x26a   :  { %3849 = vmatpush1.bf16.msra.mxu0 %v5596_v47  ;;  %3881 = vmatpush1.bf16.msra.mxu1 %v5605_v50 }
 0x26b   :  { %3851 = vmatprep.subr.bf16.mxu0 %v5614_v53  ;;  %3883 = vmatprep.subr.bf16.mxu1 %v5622_v56 }
 0x26c   :  { %1347 = vmatprep.mubr.f32.mxu0 %v7529_v31  ;;  %1418 = vmatprep.mubr.f32.mxu1 %v7529_v31 }
 0x26e   :  { %3853 = vmatpush1.bf16.msra.mxu0 %v5634_v60  ;;  %3885 = vmatpush1.bf16.msra.mxu1 %v5644_v63 }
 0x26f   :  { %3855 = vmatprep.subr.bf16.mxu0 %v5654_v2  ;;  %3887 = vmatprep.subr.bf16.mxu1 %v5663_v6 }
 0x272   :  { %3857 = vmatpush1.bf16.msra.mxu0 %v5675_v10  ;;  %3889 = vmatpush1.bf16.msra.mxu1 %v5685_v13 }
 0x273   :  { %3859 = vmatprep.subr.bf16.mxu0 %v5695_v16  ;;  %3891 = vmatprep.subr.bf16.mxu1 %v5704_v19 }
 0x276   :  { %3861 = vmatpush1.bf16.msra.mxu0 %v5716_v23  ;;  %3893 = vmatpush1.bf16.msra.mxu1 %v5726_v26 }
 0x277   :  { %3863 = vmatprep.subr.bf16.mxu0 %v5736_v29  ;;  %3895 = vmatprep.subr.bf16.mxu1 %v5745_v32 }
 0x27a   :  { %3865 = vmatpush1.bf16.msra.mxu0 %v5757_v36  ;;  %3897 = vmatpush1.bf16.msra.mxu1 %v5767_v40 }
 0x27b   :  { %3867 = vmatprep.subr.bf16.mxu0 %v5777_v44  ;;  %3899 = vmatprep.subr.bf16.mxu1 %v5786_v48 }
 0x27e   :  { %3869 = vmatpush1.bf16.msra.mxu0 %v5798_v54  ;;  %3901 = vmatpush1.bf16.msra.mxu1 %v5808_v58 }
 0x27f   :  { %3871 = vmatprep.subr.bf16.mxu0 %v5818_v62  ;;  %3903 = vmatprep.subr.bf16.mxu1 %v5827_v4 }
 0x282   :  { %3873 = vmatpush1.bf16.msra.mxu0 %v5839_v9  ;;  %3905 = vmatpush1.bf16.msra.mxu1 %v5849_v14 }
 0x283   :  { %3875 = vmatprep.subr.bf16.mxu0 %v5859_v18  ;;  %3907 = vmatprep.subr.bf16.mxu1 %v5868_v22 }
 0x286   :  { %3877 = vmatpush1.bf16.msra.mxu0 %v5880_v28  ;;  %3909 = vmatpush1.bf16.msra.mxu1 %v5890_v33 }
 0x287   :  { %3911 = vmatprep.subr.bf16.mxu0 %v5903_v39  ;;  %3975 = vmatprep.subr.bf16.mxu1 %v5915_v46 }
 0x289   :  { %1348 = vmatmul.mubr.f32.vlgmr.msra.gmra.mrb[4].mxu0 %v1111_v49  ;;  %1419 = vmatmul.mubr.f32.vlgmr.msra.gmra.mrb[4].mxu1 %v1111_v49  ;;  %v7608_v49 = vld [vmem:[#allocation24_spill] sm:$0xff] }
 0x28a   :  { %3913 = vmatpush1.bf16.msra.mxu0 %v5924_v52  ;;  %3977 = vmatpush1.bf16.msra.mxu1 %v5928_v55 }
 0x28b   :  { %3915 = vmatprep.subr.bf16.mxu0 %v5930_v57  ;;  %3979 = vmatprep.subr.bf16.mxu1 %v5943_v1 }
 0x28e   :  { %3917 = vmatpush1.bf16.msra.mxu0 %v5964_v15  ;;  %3981 = vmatpush1.bf16.msra.mxu1 %v5968_v17 }
 0x28f   :  { %3919 = vmatprep.subr.bf16.mxu0 %v5970_v20  ;;  %3983 = vmatprep.subr.bf16.mxu1 %v5982_v27 }
 0x292   :  { %3921 = vmatpush1.bf16.msra.mxu0 %v6002_v42  ;;  %3985 = vmatpush1.bf16.msra.mxu1 %v6006_v43 }
 0x293   :  { %3923 = vmatprep.subr.bf16.mxu0 %v7592_v5  ;;  %3987 = vmatprep.subr.bf16.mxu1 %v7593_v38 }
 0x296   :  { %3925 = vmatpush1.bf16.msra.mxu0 %v7594_v7  ;;  %3989 = vmatpush1.bf16.msra.mxu1 %v7595_v35  ;;  %v7647_v35 = vld [vmem:[#allocation64_spill] sm:$0xff] }
 0x297   :  { %3927 = vmatprep.subr.bf16.mxu0 %v7596_v30  ;;  %3991 = vmatprep.subr.bf16.mxu1 %v7597_v21  ;;  %v7646_v21 = vld [vmem:[#allocation60_spill] sm:$0xff] }
 0x29a   :  { %3929 = vmatpush1.bf16.msra.mxu0 %v7598_v8  ;;  %3993 = vmatpush1.bf16.msra.mxu1 %v7599_v25  ;;  %v7609_v8 = vld [vmem:[#allocation25_spill] sm:$0xff]  ;;  %v7610_v25 = vld [vmem:[#allocation26_spill] sm:$0xff] }
 0x29b   :  { %3931 = vmatprep.subr.bf16.mxu0 %v7600_v12  ;;  %3995 = vmatprep.subr.bf16.mxu1 %v7601_v0  ;;  %v7611_v12 = vld [vmem:[#allocation27_spill] sm:$0xff]  ;;  %v7612_v0 = vld [vmem:[#allocation28_spill] sm:$0xff] }
 0x29e   :  { %3933 = vmatpush1.bf16.msra.mxu0 %v7602_v59  ;;  %3997 = vmatpush1.bf16.msra.mxu1 %v7603_v61  ;;  %v7613_v59 = vld [vmem:[#allocation29_spill] sm:$0xff]  ;;  %v7614_v61 = vld [vmem:[#allocation30_spill] sm:$0xff] }
 0x29f   :  { %3935 = vmatprep.subr.bf16.mxu0 %v7604_v51  ;;  %3999 = vmatprep.subr.bf16.mxu1 %v7605_v3  ;;  %v7615_v51 = vld [vmem:[#allocation31_spill] sm:$0xff]  ;;  %v7616_v3 = vld [vmem:[#allocation32_spill] sm:$0xff] }
 0x2a2   :  { %3937 = vmatpush1.bf16.msra.mxu0 %v7606_v24  ;;  %4001 = vmatpush1.bf16.msra.mxu1 %v7607_v11  ;;  %v7617_v24 = vld [vmem:[#allocation33_spill] sm:$0xff]  ;;  %v7618_v11 = vld [vmem:[#allocation34_spill] sm:$0xff] }
 0x2a3   :  { %3939 = vmatprep.subr.bf16.mxu0 %v7608_v49  ;;  %4003 = vmatprep.subr.bf16.mxu1 %v7609_v8  ;;  %v7619_v49 = vld [vmem:[#allocation35_spill] sm:$0xff]  ;;  %v7620_v8 = vld [vmem:[#allocation36_spill] sm:$0xff] }
 0x2a6   :  { %3941 = vmatpush1.bf16.msra.mxu0 %v7610_v25  ;;  %4005 = vmatpush1.bf16.msra.mxu1 %v7611_v12  ;;  %v7621_v25 = vld [vmem:[#allocation37_spill] sm:$0xff]  ;;  %v7622_v12 = vld [vmem:[#allocation38_spill] sm:$0xff] }
 0x2a7   :  { %3943 = vmatprep.subr.bf16.mxu0 %v7612_v0  ;;  %4007 = vmatprep.subr.bf16.mxu1 %v7613_v59  ;;  %v7623_v0 = vld [vmem:[#allocation39_spill] sm:$0xff]  ;;  %v7624_v59 = vld [vmem:[#allocation40_spill] sm:$0xff] }
 0x2aa   :  { %3945 = vmatpush1.bf16.msra.mxu0 %v7614_v61  ;;  %4009 = vmatpush1.bf16.msra.mxu1 %v7615_v51  ;;  %v7625_v61 = vld [vmem:[#allocation41_spill] sm:$0xff]  ;;  %v7626_v51 = vld [vmem:[#allocation42_spill] sm:$0xff] }
 0x2ab   :  { %3947 = vmatprep.subr.bf16.mxu0 %v7616_v3  ;;  %4011 = vmatprep.subr.bf16.mxu1 %v7617_v24  ;;  %v7627_v3 = vld [vmem:[#allocation43_spill] sm:$0xff]  ;;  %v7628_v24 = vld [vmem:[#allocation44_spill] sm:$0xff] }
 0x2ae   :  { %3949 = vmatpush1.bf16.msra.mxu0 %v7618_v11  ;;  %4013 = vmatpush1.bf16.msra.mxu1 %v7619_v49  ;;  %v7629_v11 = vld [vmem:[#allocation45_spill] sm:$0xff]  ;;  %v7630_v49 = vld [vmem:[#allocation46_spill] sm:$0xff] }
 0x2af   :  { %3951 = vmatprep.subr.bf16.mxu0 %v7620_v8  ;;  %4015 = vmatprep.subr.bf16.mxu1 %v7621_v25  ;;  %v7631_v8 = vld [vmem:[#allocation47_spill] sm:$0xff]  ;;  %v7632_v25 = vld [vmem:[#allocation48_spill] sm:$0xff] }
 0x2b2   :  { %3953 = vmatpush1.bf16.msra.mxu0 %v7622_v12  ;;  %4017 = vmatpush1.bf16.msra.mxu1 %v7623_v0  ;;  %v7633_v12 = vld [vmem:[#allocation49_spill] sm:$0xff]  ;;  %v7634_v0 = vld [vmem:[#allocation50_spill] sm:$0xff] }
 0x2b3   :  { %3955 = vmatprep.subr.bf16.mxu0 %v7624_v59  ;;  %4019 = vmatprep.subr.bf16.mxu1 %v7625_v61  ;;  %v7635_v59 = vld [vmem:[#allocation51_spill] sm:$0xff]  ;;  %v7636_v61 = vld [vmem:[#allocation52_spill] sm:$0xff] }
 0x2b6   :  { %3957 = vmatpush1.bf16.msra.mxu0 %v7626_v51  ;;  %4021 = vmatpush1.bf16.msra.mxu1 %v7627_v3  ;;  %v7637_v51 = vld [vmem:[#allocation53_spill] sm:$0xff]  ;;  %v7638_v3 = vld [vmem:[#allocation54_spill] sm:$0xff] }
 0x2b7   :  { %3959 = vmatprep.subr.bf16.mxu0 %v7628_v24  ;;  %4023 = vmatprep.subr.bf16.mxu1 %v7629_v11  ;;  %v7639_v24 = vld [vmem:[#allocation55_spill] sm:$0xff]  ;;  %v7640_v11 = vld [vmem:[#allocation56_spill] sm:$0xff] }
 0x2ba   :  { %3961 = vmatpush1.bf16.msra.mxu0 %v7630_v49  ;;  %4025 = vmatpush1.bf16.msra.mxu1 %v7631_v8  ;;  %v7641_v49 = vld [vmem:[#allocation57_spill] sm:$0xff]  ;;  %v7642_v8 = vld [vmem:[#allocation58_spill] sm:$0xff] }
 0x2bb   :  { %3963 = vmatprep.subr.bf16.mxu0 %v7632_v25  ;;  %4027 = vmatprep.subr.bf16.mxu1 %v7633_v12  ;;  %v7643_v25 = vld [vmem:[#allocation59_spill] sm:$0xff]  ;;  %v7644_v12 = vld [vmem:[#allocation4_spill] sm:$0xff] }
 0x2be   :  { %3965 = vmatpush1.bf16.msra.mxu0 %v7634_v0  ;;  %4029 = vmatpush1.bf16.msra.mxu1 %v7635_v59  ;;  %v7645_v0 = vld [vmem:[#allocation5_spill] sm:$0xff] }
 0x2bf   :  { %3967 = vmatprep.subr.bf16.mxu0 %v7636_v61  ;;  %4031 = vmatprep.subr.bf16.mxu1 %v7637_v51 }
 0x2c2   :  { %3969 = vmatpush1.bf16.msra.mxu0 %v7638_v3  ;;  %4033 = vmatpush1.bf16.msra.mxu1 %v7639_v24 }
 0x2c3   :  { %3971 = vmatprep.subr.bf16.mxu0 %v7640_v11  ;;  %4035 = vmatprep.subr.bf16.mxu1 %v7641_v49  ;;  %v7648_v49 = vld [vmem:[#allocation65_spill] sm:$0xff] }
 0x2c6   :  { %3973 = vmatpush1.bf16.msra.mxu0 %v7642_v8  ;;  %4037 = vmatpush1.bf16.msra.mxu1 %v7643_v25  ;;  %v7649_v25 = vld [vmem:[#allocation66_spill] sm:$0xff] }
 0x2c7   :  { %4039 = vmatprep.subr.bf16.mxu0 %v7644_v12  ;;  %4071 = vmatprep.subr.bf16.mxu1 %v7645_v0 }
 0x33c   :  { %v1178_v59 = vpop.f32.mrb[18].mxu0  ;;  %v1249_v61 = vpop.f32.mrb[18].mxu1 }
 0x33d   :  { %v1179_v51 = vadd.f32 %v1178_v59, %v7646_v21  ;;  %v1180_v30 = vpop.f32.mrb[19].mxu0  ;;  %v1251_v3 = vpop.f32.mrb[19].mxu1  ;;  %v1250_v5 = vadd.f32 %v1249_v61, %v7649_v25  ;;  %v7650_v61 = vld [vmem:[#allocation61_spill] sm:$0xff] }
 0x33e   :  { %v1181_v24 = vadd.f32 %v1180_v30, %v7647_v35  ;;  %v1252_v8 = vadd.f32 %v1251_v3, %v7648_v49 }
 0x33f   :  { %v3357_v7 = vmul.f32 -1.442695, %v1179_v51 }
 0x340   :  { %v3358_v11 = vmul.f32 -1.442695, %v1181_v24  ;;  %v3359_v38 = vmul.f32 -1.442695, %v1252_v8 }
 0x341   :  { %5111 = vpow2.f32 %v3357_v7 }
 0x342   :  { %5113 = vpow2.f32 %v3358_v11 }
 0x343   :  { %5115 = vpow2.f32 %v3359_v38 }
 0x344   :  { %5117 = vtanh.f32 %v1250_v5 }
 0x34b   :  { %v5112_v12 = vpop.eup %5111 }
 0x34c   :  { %v5114_v43 = vpop.eup %5113  ;;  %v1257_v0 = vadd.f32 1.0, %v5112_v12 }
 0x34d   :  { %v1263_v42 = vadd.f32 1.0, %v5114_v43  ;;  %v5116_v59 = vpop.eup %5115 }
 0x34e   :  { %5119 = vrcp.f32 %v1257_v0  ;;  %v5118_v21 = vpop.eup %5117  ;;  %v1270_v7 = vadd.f32 1.0, %v5116_v59 }
 0x34f   :  { %5121 = vrcp.f32 %v1263_v42 }
 0x350   :  { %5123 = vrcp.f32 %v1270_v7 }
 0x358   :  { %v5120_v30 = vpop.eup %5119 }
 0x359   :  { %v5122_v51 = vpop.eup %5121  ;;  %v1274_v24 = vmul.f32 %v5120_v30, %v5118_v21  ;;  %v7651_v21 = vld [vmem:[#allocation63_spill] sm:$0xff] }
 0x35a   :  { %v1273_v11 = vmul.f32 %v5122_v51, %v6622_v34  ;;  %v5124_v34 = vpop.eup %5123 }
 0x35c   :  { %v1349_v3 = vpop.f32.mrb[4].mxu0  ;;  %v1420_v8 = vpop.f32.mrb[4].mxu1  ;;  %v6736_v49 = vadd.f32 %v1274_v24, %v1273_v11 }
 0x35d   :  { %v5002_v12 = vadd.f32 %v1349_v3, %v7650_v61  ;;  %v1351_v38 = vpop.f32.mrb[5].mxu0  ;;  %v1422_v5 = vpop.f32.mrb[5].mxu1  ;;  %v5018_v24 = vadd.f32 %v1420_v8, %v6495_v41 }
 0x35e   :  { %v5003_v43 = vadd.f32 %v1351_v38, %v7590_v45  ;;  %5125 = vtanh.f32 %v6736_v49  ;;  %v5019_v59 = vadd.f32 %v1422_v5, %v7651_v21 }
 0x35f   :  { %v3360_v42 = vmul.f32 -1.442695, %v5002_v12 }
 0x360   :  { %v3361_v0 = vmul.f32 -1.442695, %v5003_v43  ;;  %v3362_v51 = vmul.f32 -1.442695, %v5019_v59 }
 0x361   :  { %5127 = vpow2.f32 %v3360_v42 }
 0x362   :  { %5129 = vpow2.f32 %v3361_v0 }
 0x363   :  { %5131 = vpow2.f32 %v3362_v51 }
 0x364   :  { %5133 = vtanh.f32 %v5018_v24  ;;  %v7655_v24 = vld [vmem:[#allocation9_spill] sm:$0xff] }
 0x368   :  { %v5126_v30 = vpop.eup %5125 }
 0x369   :  { %v1277_v7 = vmul.f32 %v5126_v30, %v5124_v34 }
 0x36b   :  { %v5128_v11 = vpop.eup %5127  ;;  %1517 = vmatprep.mubr.f32.mxu0 %v1277_v7  ;;  %1588 = vmatprep.mubr.f32.mxu1 %v1277_v7  ;;  %v7656_v7 = vld [vmem:[#allocation10_spill] sm:$0xff] }
 0x36c   :  { %v5130_v3 = vpop.eup %5129  ;;  %v1432_v61 = vadd.f32 1.0, %v5128_v11  ;;  %v7657_v11 = vld [vmem:[#allocation11_spill] sm:$0xff] }
 0x36d   :  { %v1438_v38 = vadd.f32 1.0, %v5130_v3  ;;  %v5132_v12 = vpop.eup %5131  ;;  %v7658_v3 = vld [vmem:[#allocation12_spill] sm:$0xff] }
 0x36e   :  { %5135 = vrcp.f32 %v1432_v61  ;;  %v5134_v43 = vpop.eup %5133  ;;  %v1445_v21 = vadd.f32 1.0, %v5132_v12  ;;  %v7653_v61 = vld [vmem:[#allocation7_spill] sm:$0xff]  ;;  %v7660_v12 = vld [vmem:[#allocation14_spill] sm:$0xff] }
 0x36f   :  { %5137 = vrcp.f32 %v1438_v38  ;;  %v7659_v38 = vld [vmem:[#allocation13_spill] sm:$0xff] }
 0x370   :  { %5139 = vrcp.f32 %v1445_v21  ;;  %v7654_v21 = vld [vmem:[#allocation8_spill] sm:$0xff] }
 0x378   :  { %v5136_v42 = vpop.eup %5135 }
 0x379   :  { %v5138_v5 = vpop.eup %5137  ;;  %v1449_v0 = vmul.f32 %v5136_v42, %v5134_v43  ;;  %v7661_v43 = vld [vmem:[#allocation15_spill] sm:$0xff]  ;;  %v7662_v42 = vld [vmem:[#allocation16_spill] sm:$0xff] }
 0x37a   :  { %v1448_v59 = vmul.f32 %v5138_v5, %v6630_v37  ;;  %v5140_v34 = vpop.eup %5139  ;;  %v7652_v37 = vld [vmem:[#allocation6_spill] sm:$0xff]  ;;  %v7663_v5 = vld [vmem:[#allocation17_spill] sm:$0xff] }
 0x37c   :  { %v6744_v8 = vadd.f32 %v1449_v0, %v1448_v59  ;;  %v7664_v0 = vld [vmem:[#allocation18_spill] sm:$0xff]  ;;  %v7665_v59 = vld [vmem:[#allocation19_spill] sm:$0xff] }
 0x37e   :  { %5141 = vtanh.f32 %v6744_v8 }
 0x388   :  { %v5142_v30 = vpop.eup %5141 }
 0x389   :  { %v1452_v51 = vmul.f32 %v5142_v30, %v5140_v34  ;;  %v7666_v34 = vld [vmem:[#allocation20_spill] sm:$0xff]  ;;  %v7667_v30 = vld [vmem:[#allocation21_spill] sm:$0xff] }
 0x38b   :  { %1518 = vmatmul.mubr.f32.vlgmr.msra.gmra.mrb[20].mxu0 %v1452_v51  ;;  %1589 = vmatmul.mubr.f32.vlgmr.msra.gmra.mrb[20].mxu1 %v1452_v51 }
 0x38c   :  { %4041 = vmatpush1.bf16.msra.mxu0 %v5596_v47  ;;  %4073 = vmatpush1.bf16.msra.mxu1 %v5605_v50 }
 0x38d   :  { %4043 = vmatprep.subr.bf16.mxu0 %v5614_v53  ;;  %4075 = vmatprep.subr.bf16.mxu1 %v5622_v56 }
 0x38e   :  { %1688 = vmatprep.mubr.f32.mxu0 %v7529_v31  ;;  %1759 = vmatprep.mubr.f32.mxu1 %v7529_v31 }
 0x390   :  { %4045 = vmatpush1.bf16.msra.mxu0 %v5634_v60  ;;  %4077 = vmatpush1.bf16.msra.mxu1 %v5644_v63 }
 0x391   :  { %4047 = vmatprep.subr.bf16.mxu0 %v5654_v2  ;;  %4079 = vmatprep.subr.bf16.mxu1 %v5663_v6 }
 0x394   :  { %4049 = vmatpush1.bf16.msra.mxu0 %v5675_v10  ;;  %4081 = vmatpush1.bf16.msra.mxu1 %v5685_v13 }
 0x395   :  { %4051 = vmatprep.subr.bf16.mxu0 %v5695_v16  ;;  %4083 = vmatprep.subr.bf16.mxu1 %v5704_v19 }
 0x398   :  { %4053 = vmatpush1.bf16.msra.mxu0 %v5716_v23  ;;  %4085 = vmatpush1.bf16.msra.mxu1 %v5726_v26 }
 0x399   :  { %4055 = vmatprep.subr.bf16.mxu0 %v5736_v29  ;;  %4087 = vmatprep.subr.bf16.mxu1 %v5745_v32 }
 0x39c   :  { %4057 = vmatpush1.bf16.msra.mxu0 %v5757_v36  ;;  %4089 = vmatpush1.bf16.msra.mxu1 %v5767_v40 }
 0x39d   :  { %4059 = vmatprep.subr.bf16.mxu0 %v5777_v44  ;;  %4091 = vmatprep.subr.bf16.mxu1 %v5786_v48 }
 0x3a0   :  { %4061 = vmatpush1.bf16.msra.mxu0 %v5798_v54  ;;  %4093 = vmatpush1.bf16.msra.mxu1 %v5808_v58 }
 0x3a1   :  { %4063 = vmatprep.subr.bf16.mxu0 %v5818_v62  ;;  %4095 = vmatprep.subr.bf16.mxu1 %v5827_v4 }
 0x3a4   :  { %4065 = vmatpush1.bf16.msra.mxu0 %v5839_v9  ;;  %4097 = vmatpush1.bf16.msra.mxu1 %v5849_v14 }
 0x3a5   :  { %4067 = vmatprep.subr.bf16.mxu0 %v5859_v18  ;;  %4099 = vmatprep.subr.bf16.mxu1 %v5868_v22 }
 0x3a8   :  { %4069 = vmatpush1.bf16.msra.mxu0 %v5880_v28  ;;  %4101 = vmatpush1.bf16.msra.mxu1 %v5890_v33 }
 0x3a9   :  { %4103 = vmatprep.subr.bf16.mxu0 %v5903_v39  ;;  %4167 = vmatprep.subr.bf16.mxu1 %v5915_v46 }
 0x3ab   :  { %1689 = vmatmul.mubr.f32.vlgmr.msra.gmra.mrb[6].mxu0 %v1452_v51  ;;  %1760 = vmatmul.mubr.f32.vlgmr.msra.gmra.mrb[6].mxu1 %v1452_v51  ;;  %v7668_v51 = vld [vmem:[#allocation22_spill] sm:$0xff] }
 0x3ac   :  { %4105 = vmatpush1.bf16.msra.mxu0 %v5924_v52  ;;  %4169 = vmatpush1.bf16.msra.mxu1 %v5928_v55 }
 0x3ad   :  { %4107 = vmatprep.subr.bf16.mxu0 %v5930_v57  ;;  %4171 = vmatprep.subr.bf16.mxu1 %v5943_v1 }
 0x3b0   :  { %4109 = vmatpush1.bf16.msra.mxu0 %v5964_v15  ;;  %4173 = vmatpush1.bf16.msra.mxu1 %v5968_v17 }
 0x3b1   :  { %4111 = vmatprep.subr.bf16.mxu0 %v5970_v20  ;;  %4175 = vmatprep.subr.bf16.mxu1 %v5982_v27 }
 0x3b4   :  { %4113 = vmatpush1.bf16.msra.mxu0 %v7652_v37  ;;  %4177 = vmatpush1.bf16.msra.mxu1 %v7653_v61 }
 0x3b5   :  { %4115 = vmatprep.subr.bf16.mxu0 %v7654_v21  ;;  %4179 = vmatprep.subr.bf16.mxu1 %v7655_v24 }
 0x3b8   :  { %4117 = vmatpush1.bf16.msra.mxu0 %v7656_v7  ;;  %4181 = vmatpush1.bf16.msra.mxu1 %v7657_v11  ;;  %v7708_v11 = vld [vmem:[#allocation60_spill] sm:$0xff] }
 0x3b9   :  { %4119 = vmatprep.subr.bf16.mxu0 %v7658_v3  ;;  %4183 = vmatprep.subr.bf16.mxu1 %v7659_v38  ;;  %v7669_v3 = vld [vmem:[#allocation23_spill] sm:$0xff]  ;;  %v7670_v38 = vld [vmem:[#allocation24_spill] sm:$0xff] }
 0x3bc   :  { %4121 = vmatpush1.bf16.msra.mxu0 %v7660_v12  ;;  %4185 = vmatpush1.bf16.msra.mxu1 %v7661_v43  ;;  %v7671_v12 = vld [vmem:[#allocation25_spill] sm:$0xff]  ;;  %v7672_v43 = vld [vmem:[#allocation26_spill] sm:$0xff] }
 0x3bd   :  { %4123 = vmatprep.subr.bf16.mxu0 %v7662_v42  ;;  %4187 = vmatprep.subr.bf16.mxu1 %v7663_v5  ;;  %v7673_v42 = vld [vmem:[#allocation27_spill] sm:$0xff]  ;;  %v7674_v5 = vld [vmem:[#allocation28_spill] sm:$0xff] }
 0x3c0   :  { %4125 = vmatpush1.bf16.msra.mxu0 %v7664_v0  ;;  %4189 = vmatpush1.bf16.msra.mxu1 %v7665_v59  ;;  %v7675_v0 = vld [vmem:[#allocation29_spill] sm:$0xff]  ;;  %v7676_v59 = vld [vmem:[#allocation30_spill] sm:$0xff] }
 0x3c1   :  { %4127 = vmatprep.subr.bf16.mxu0 %v7666_v34  ;;  %4191 = vmatprep.subr.bf16.mxu1 %v7667_v30  ;;  %v7677_v34 = vld [vmem:[#allocation31_spill] sm:$0xff]  ;;  %v7678_v30 = vld [vmem:[#allocation32_spill] sm:$0xff] }
 0x3c4   :  { %4129 = vmatpush1.bf16.msra.mxu0 %v7668_v51  ;;  %4193 = vmatpush1.bf16.msra.mxu1 %v7669_v3  ;;  %v7679_v51 = vld [vmem:[#allocation33_spill] sm:$0xff]  ;;  %v7680_v3 = vld [vmem:[#allocation34_spill] sm:$0xff] }
 0x3c5   :  { %4131 = vmatprep.subr.bf16.mxu0 %v7670_v38  ;;  %4195 = vmatprep.subr.bf16.mxu1 %v7671_v12  ;;  %v7681_v38 = vld [vmem:[#allocation35_spill] sm:$0xff]  ;;  %v7682_v12 = vld [vmem:[#allocation36_spill] sm:$0xff] }
 0x3c8   :  { %4133 = vmatpush1.bf16.msra.mxu0 %v7672_v43  ;;  %4197 = vmatpush1.bf16.msra.mxu1 %v7673_v42  ;;  %v7683_v43 = vld [vmem:[#allocation37_spill] sm:$0xff]  ;;  %v7684_v42 = vld [vmem:[#allocation38_spill] sm:$0xff] }
 0x3c9   :  { %4135 = vmatprep.subr.bf16.mxu0 %v7674_v5  ;;  %4199 = vmatprep.subr.bf16.mxu1 %v7675_v0  ;;  %v7685_v5 = vld [vmem:[#allocation39_spill] sm:$0xff]  ;;  %v7686_v0 = vld [vmem:[#allocation40_spill] sm:$0xff] }
 0x3cc   :  { %4137 = vmatpush1.bf16.msra.mxu0 %v7676_v59  ;;  %4201 = vmatpush1.bf16.msra.mxu1 %v7677_v34  ;;  %v7687_v59 = vld [vmem:[#allocation41_spill] sm:$0xff]  ;;  %v7688_v34 = vld [vmem:[#allocation42_spill] sm:$0xff] }
 0x3cd   :  { %4139 = vmatprep.subr.bf16.mxu0 %v7678_v30  ;;  %4203 = vmatprep.subr.bf16.mxu1 %v7679_v51  ;;  %v7689_v30 = vld [vmem:[#allocation43_spill] sm:$0xff]  ;;  %v7690_v51 = vld [vmem:[#allocation44_spill] sm:$0xff] }
 0x3d0   :  { %4141 = vmatpush1.bf16.msra.mxu0 %v7680_v3  ;;  %4205 = vmatpush1.bf16.msra.mxu1 %v7681_v38  ;;  %v7691_v3 = vld [vmem:[#allocation45_spill] sm:$0xff]  ;;  %v7692_v38 = vld [vmem:[#allocation46_spill] sm:$0xff] }
 0x3d1   :  { %4143 = vmatprep.subr.bf16.mxu0 %v7682_v12  ;;  %4207 = vmatprep.subr.bf16.mxu1 %v7683_v43  ;;  %v7693_v12 = vld [vmem:[#allocation47_spill] sm:$0xff]  ;;  %v7694_v43 = vld [vmem:[#allocation48_spill] sm:$0xff] }
 0x3d4   :  { %4145 = vmatpush1.bf16.msra.mxu0 %v7684_v42  ;;  %4209 = vmatpush1.bf16.msra.mxu1 %v7685_v5  ;;  %v7695_v42 = vld [vmem:[#allocation49_spill] sm:$0xff]  ;;  %v7696_v5 = vld [vmem:[#allocation50_spill] sm:$0xff] }
 0x3d5   :  { %4147 = vmatprep.subr.bf16.mxu0 %v7686_v0  ;;  %4211 = vmatprep.subr.bf16.mxu1 %v7687_v59  ;;  %v7697_v0 = vld [vmem:[#allocation51_spill] sm:$0xff]  ;;  %v7698_v59 = vld [vmem:[#allocation52_spill] sm:$0xff] }
 0x3d8   :  { %4149 = vmatpush1.bf16.msra.mxu0 %v7688_v34  ;;  %4213 = vmatpush1.bf16.msra.mxu1 %v7689_v30  ;;  %v7699_v34 = vld [vmem:[#allocation53_spill] sm:$0xff]  ;;  %v7700_v30 = vld [vmem:[#allocation54_spill] sm:$0xff] }
 0x3d9   :  { %4151 = vmatprep.subr.bf16.mxu0 %v7690_v51  ;;  %4215 = vmatprep.subr.bf16.mxu1 %v7691_v3  ;;  %v7701_v51 = vld [vmem:[#allocation55_spill] sm:$0xff]  ;;  %v7702_v3 = vld [vmem:[#allocation56_spill] sm:$0xff] }
 0x3dc   :  { %4153 = vmatpush1.bf16.msra.mxu0 %v7692_v38  ;;  %4217 = vmatpush1.bf16.msra.mxu1 %v7693_v12  ;;  %v7703_v38 = vld [vmem:[#allocation57_spill] sm:$0xff]  ;;  %v7704_v12 = vld [vmem:[#allocation58_spill] sm:$0xff] }
 0x3dd   :  { %4155 = vmatprep.subr.bf16.mxu0 %v7694_v43  ;;  %4219 = vmatprep.subr.bf16.mxu1 %v7695_v42  ;;  %v7705_v43 = vld [vmem:[#allocation59_spill] sm:$0xff]  ;;  %v7706_v42 = vld [vmem:[#allocation4_spill] sm:$0xff] }
 0x3e0   :  { %4157 = vmatpush1.bf16.msra.mxu0 %v7696_v5  ;;  %4221 = vmatpush1.bf16.msra.mxu1 %v7697_v0  ;;  %v7707_v5 = vld [vmem:[#allocation5_spill] sm:$0xff] }
 0x3e1   :  { %4159 = vmatprep.subr.bf16.mxu0 %v7698_v59  ;;  %4223 = vmatprep.subr.bf16.mxu1 %v7699_v34 }
 0x3e4   :  { %4161 = vmatpush1.bf16.msra.mxu0 %v7700_v30  ;;  %4225 = vmatpush1.bf16.msra.mxu1 %v7701_v51 }
 0x3e5   :  { %4163 = vmatprep.subr.bf16.mxu0 %v7702_v3  ;;  %4227 = vmatprep.subr.bf16.mxu1 %v7703_v38  ;;  %v7709_v38 = vld [vmem:[#allocation65_spill] sm:$0xff] }
 0x3e8   :  { %4165 = vmatpush1.bf16.msra.mxu0 %v7704_v12  ;;  %4229 = vmatpush1.bf16.msra.mxu1 %v7705_v43 }
 0x3e9   :  { %4231 = vmatprep.subr.bf16.mxu0 %v7706_v42  ;;  %4263 = vmatprep.subr.bf16.mxu1 %v7707_v5 }
 0x45e   :  { %v1519_v0 = vpop.f32.mrb[20].mxu0  ;;  %v1590_v59 = vpop.f32.mrb[20].mxu1 }
 0x45f   :  { %v1520_v34 = vadd.f32 %v1519_v0, %v7708_v11  ;;  %v1521_v7 = vpop.f32.mrb[21].mxu0  ;;  %v1592_v30 = vpop.f32.mrb[21].mxu1  ;;  %v1591_v43 = vadd.f32 %v1590_v59, %v7649_v25  ;;  %v7710_v59 = vld [vmem:[#allocation61_spill] sm:$0xff] }
 0x460   :  { %v1522_v51 = vadd.f32 %v1521_v7, %v7647_v35  ;;  %v1593_v12 = vadd.f32 %v1592_v30, %v7709_v38 }
 0x461   :  { %v3363_v24 = vmul.f32 -1.442695, %v1520_v34 }
 0x462   :  { %v3364_v3 = vmul.f32 -1.442695, %v1522_v51  ;;  %v3365_v21 = vmul.f32 -1.442695, %v1593_v12 }
 0x463   :  { %5143 = vpow2.f32 %v3363_v24 }
 0x464   :  { %5145 = vpow2.f32 %v3364_v3 }
 0x465   :  { %5147 = vpow2.f32 %v3365_v21 }
 0x466   :  { %5149 = vtanh.f32 %v1591_v43 }
 0x46d   :  { %v5144_v42 = vpop.eup %5143 }
 0x46e   :  { %v5146_v61 = vpop.eup %5145  ;;  %v1598_v5 = vadd.f32 1.0, %v5144_v42 }
 0x46f   :  { %v1604_v37 = vadd.f32 1.0, %v5146_v61  ;;  %v5148_v0 = vpop.eup %5147 }
 0x470   :  { %5151 = vrcp.f32 %v1598_v5  ;;  %v5150_v11 = vpop.eup %5149  ;;  %v1611_v24 = vadd.f32 1.0, %v5148_v0 }
 0x471   :  { %5153 = vrcp.f32 %v1604_v37 }
 0x472   :  { %5155 = vrcp.f32 %v1611_v24 }
 0x47a   :  { %v5152_v7 = vpop.eup %5151 }
 0x47b   :  { %v5154_v34 = vpop.eup %5153  ;;  %v1615_v51 = vmul.f32 %v5152_v7, %v5150_v11  ;;  %v7711_v11 = vld [vmem:[#allocation63_spill] sm:$0xff] }
 0x47c   :  { %v1614_v3 = vmul.f32 %v5154_v34, %v6736_v49  ;;  %v5156_v49 = vpop.eup %5155 }
 0x47e   :  { %v1690_v30 = vpop.f32.mrb[6].mxu0  ;;  %v1761_v12 = vpop.f32.mrb[6].mxu1  ;;  %v6850_v38 = vadd.f32 %v1615_v51, %v1614_v3 }
 0x47f   :  { %v5004_v42 = vadd.f32 %v1690_v30, %v7710_v59  ;;  %v1692_v21 = vpop.f32.mrb[7].mxu0  ;;  %v1763_v43 = vpop.f32.mrb[7].mxu1  ;;  %v5020_v51 = vadd.f32 %v1761_v12, %v6495_v41 }
 0x480   :  { %v5005_v61 = vadd.f32 %v1692_v21, %v7590_v45  ;;  %5157 = vtanh.f32 %v6850_v38  ;;  %v5021_v0 = vadd.f32 %v1763_v43, %v7711_v11 }
 0x481   :  { %v3366_v37 = vmul.f32 -1.442695, %v5004_v42 }
 0x482   :  { %v3367_v5 = vmul.f32 -1.442695, %v5005_v61  ;;  %v3368_v34 = vmul.f32 -1.442695, %v5021_v0 }
 0x483   :  { %5159 = vpow2.f32 %v3366_v37 }
 0x484   :  { %5161 = vpow2.f32 %v3367_v5 }
 0x485   :  { %5163 = vpow2.f32 %v3368_v34 }
 0x486   :  { %5165 = vtanh.f32 %v5020_v51  ;;  %v7715_v51 = vld [vmem:[#allocation9_spill] sm:$0xff] }
 0x48a   :  { %v5158_v7 = vpop.eup %5157 }
 0x48b   :  { %v1618_v24 = vmul.f32 %v5158_v7, %v5156_v49 }
 0x48d   :  { %v5160_v3 = vpop.eup %5159  ;;  %1858 = vmatprep.mubr.f32.mxu0 %v1618_v24  ;;  %1929 = vmatprep.mubr.f32.mxu1 %v1618_v24  ;;  %v7716_v24 = vld [vmem:[#allocation10_spill] sm:$0xff] }
 0x48e   :  { %v5162_v30 = vpop.eup %5161  ;;  %v1773_v59 = vadd.f32 1.0, %v5160_v3  ;;  %v7717_v3 = vld [vmem:[#allocation11_spill] sm:$0xff] }
 0x48f   :  { %v1779_v21 = vadd.f32 1.0, %v5162_v30  ;;  %v5164_v42 = vpop.eup %5163  ;;  %v7718_v30 = vld [vmem:[#allocation12_spill] sm:$0xff] }
 0x490   :  { %5167 = vrcp.f32 %v1773_v59  ;;  %v5166_v61 = vpop.eup %5165  ;;  %v1786_v11 = vadd.f32 1.0, %v5164_v42  ;;  %v7713_v59 = vld [vmem:[#allocation7_spill] sm:$0xff]  ;;  %v7720_v42 = vld [vmem:[#allocation14_spill] sm:$0xff] }
 0x491   :  { %5169 = vrcp.f32 %v1779_v21  ;;  %v7719_v21 = vld [vmem:[#allocation13_spill] sm:$0xff] }
 0x492   :  { %5171 = vrcp.f32 %v1786_v11  ;;  %v7714_v11 = vld [vmem:[#allocation8_spill] sm:$0xff] }
 0x49a   :  { %v5168_v37 = vpop.eup %5167 }
 0x49b   :  { %v5170_v43 = vpop.eup %5169  ;;  %v1790_v5 = vmul.f32 %v5168_v37, %v5166_v61  ;;  %v7721_v61 = vld [vmem:[#allocation15_spill] sm:$0xff]  ;;  %v7722_v37 = vld [vmem:[#allocation16_spill] sm:$0xff] }
 0x49c   :  { %v1789_v0 = vmul.f32 %v5170_v43, %v6744_v8  ;;  %v5172_v49 = vpop.eup %5171  ;;  %v7712_v8 = vld [vmem:[#allocation6_spill] sm:$0xff]  ;;  %v7723_v43 = vld [vmem:[#allocation17_spill] sm:$0xff] }
 0x49e   :  { %v6858_v12 = vadd.f32 %v1790_v5, %v1789_v0  ;;  %v7724_v5 = vld [vmem:[#allocation18_spill] sm:$0xff]  ;;  %v7725_v0 = vld [vmem:[#allocation19_spill] sm:$0xff] }
 0x4a0   :  { %5173 = vtanh.f32 %v6858_v12 }
 0x4aa   :  { %v5174_v7 = vpop.eup %5173 }
 0x4ab   :  { %v1793_v34 = vmul.f32 %v5174_v7, %v5172_v49  ;;  %v7726_v49 = vld [vmem:[#allocation20_spill] sm:$0xff]  ;;  %v7727_v7 = vld [vmem:[#allocation21_spill] sm:$0xff] }
 0x4ad   :  { %1859 = vmatmul.mubr.f32.vlgmr.msra.gmra.mrb[22].mxu0 %v1793_v34  ;;  %1930 = vmatmul.mubr.f32.vlgmr.msra.gmra.mrb[22].mxu1 %v1793_v34 }
 0x4ae   :  { %4233 = vmatpush1.bf16.msra.mxu0 %v5596_v47  ;;  %4265 = vmatpush1.bf16.msra.mxu1 %v5605_v50 }
 0x4af   :  { %4235 = vmatprep.subr.bf16.mxu0 %v5614_v53  ;;  %4267 = vmatprep.subr.bf16.mxu1 %v5622_v56 }
 0x4b0   :  { %2029 = vmatprep.mubr.f32.mxu0 %v7529_v31  ;;  %2100 = vmatprep.mubr.f32.mxu1 %v7529_v31 }
 0x4b2   :  { %4237 = vmatpush1.bf16.msra.mxu0 %v5634_v60  ;;  %4269 = vmatpush1.bf16.msra.mxu1 %v5644_v63 }
 0x4b3   :  { %4239 = vmatprep.subr.bf16.mxu0 %v5654_v2  ;;  %4271 = vmatprep.subr.bf16.mxu1 %v5663_v6 }
 0x4b6   :  { %4241 = vmatpush1.bf16.msra.mxu0 %v5675_v10  ;;  %4273 = vmatpush1.bf16.msra.mxu1 %v5685_v13 }
 0x4b7   :  { %4243 = vmatprep.subr.bf16.mxu0 %v5695_v16  ;;  %4275 = vmatprep.subr.bf16.mxu1 %v5704_v19 }
 0x4ba   :  { %4245 = vmatpush1.bf16.msra.mxu0 %v5716_v23  ;;  %4277 = vmatpush1.bf16.msra.mxu1 %v5726_v26 }
 0x4bb   :  { %4247 = vmatprep.subr.bf16.mxu0 %v5736_v29  ;;  %4279 = vmatprep.subr.bf16.mxu1 %v5745_v32 }
 0x4be   :  { %4249 = vmatpush1.bf16.msra.mxu0 %v5757_v36  ;;  %4281 = vmatpush1.bf16.msra.mxu1 %v5767_v40 }
 0x4bf   :  { %4251 = vmatprep.subr.bf16.mxu0 %v5777_v44  ;;  %4283 = vmatprep.subr.bf16.mxu1 %v5786_v48 }
 0x4c2   :  { %4253 = vmatpush1.bf16.msra.mxu0 %v5798_v54  ;;  %4285 = vmatpush1.bf16.msra.mxu1 %v5808_v58 }
 0x4c3   :  { %4255 = vmatprep.subr.bf16.mxu0 %v5818_v62  ;;  %4287 = vmatprep.subr.bf16.mxu1 %v5827_v4 }
 0x4c6   :  { %4257 = vmatpush1.bf16.msra.mxu0 %v5839_v9  ;;  %4289 = vmatpush1.bf16.msra.mxu1 %v5849_v14 }
 0x4c7   :  { %4259 = vmatprep.subr.bf16.mxu0 %v5859_v18  ;;  %4291 = vmatprep.subr.bf16.mxu1 %v5868_v22 }
 0x4ca   :  { %4261 = vmatpush1.bf16.msra.mxu0 %v5880_v28  ;;  %4293 = vmatpush1.bf16.msra.mxu1 %v5890_v33 }
 0x4cb   :  { %4295 = vmatprep.subr.bf16.mxu0 %v5903_v39  ;;  %4359 = vmatprep.subr.bf16.mxu1 %v5915_v46 }
 0x4cd   :  { %2030 = vmatmul.mubr.f32.vlgmr.msra.gmra.mrb[8].mxu0 %v1793_v34  ;;  %2101 = vmatmul.mubr.f32.vlgmr.msra.gmra.mrb[8].mxu1 %v1793_v34  ;;  %v7728_v34 = vld [vmem:[#allocation22_spill] sm:$0xff] }
 0x4ce   :  { %4297 = vmatpush1.bf16.msra.mxu0 %v5924_v52  ;;  %4361 = vmatpush1.bf16.msra.mxu1 %v5928_v55 }
 0x4cf   :  { %4299 = vmatprep.subr.bf16.mxu0 %v5930_v57  ;;  %4363 = vmatprep.subr.bf16.mxu1 %v5943_v1 }
 0x4d2   :  { %4301 = vmatpush1.bf16.msra.mxu0 %v5964_v15  ;;  %4365 = vmatpush1.bf16.msra.mxu1 %v5968_v17 }
 0x4d3   :  { %4303 = vmatprep.subr.bf16.mxu0 %v5970_v20  ;;  %4367 = vmatprep.subr.bf16.mxu1 %v5982_v27 }
 0x4d6   :  { %4305 = vmatpush1.bf16.msra.mxu0 %v7712_v8  ;;  %4369 = vmatpush1.bf16.msra.mxu1 %v7713_v59 }
 0x4d7   :  { %4307 = vmatprep.subr.bf16.mxu0 %v7714_v11  ;;  %4371 = vmatprep.subr.bf16.mxu1 %v7715_v51 }
 0x4da   :  { %4309 = vmatpush1.bf16.msra.mxu0 %v7716_v24  ;;  %4373 = vmatpush1.bf16.msra.mxu1 %v7717_v3  ;;  %v7768_v3 = vld [vmem:[#allocation60_spill] sm:$0xff] }
 0x4db   :  { %4311 = vmatprep.subr.bf16.mxu0 %v7718_v30  ;;  %4375 = vmatprep.subr.bf16.mxu1 %v7719_v21  ;;  %v7729_v30 = vld [vmem:[#allocation23_spill] sm:$0xff]  ;;  %v7730_v21 = vld [vmem:[#allocation24_spill] sm:$0xff] }
 0x4de   :  { %4313 = vmatpush1.bf16.msra.mxu0 %v7720_v42  ;;  %4377 = vmatpush1.bf16.msra.mxu1 %v7721_v61  ;;  %v7731_v42 = vld [vmem:[#allocation25_spill] sm:$0xff]  ;;  %v7732_v61 = vld [vmem:[#allocation26_spill] sm:$0xff] }
 0x4df   :  { %4315 = vmatprep.subr.bf16.mxu0 %v7722_v37  ;;  %4379 = vmatprep.subr.bf16.mxu1 %v7723_v43  ;;  %v7733_v37 = vld [vmem:[#allocation27_spill] sm:$0xff]  ;;  %v7734_v43 = vld [vmem:[#allocation28_spill] sm:$0xff] }
 0x4e2   :  { %4317 = vmatpush1.bf16.msra.mxu0 %v7724_v5  ;;  %4381 = vmatpush1.bf16.msra.mxu1 %v7725_v0  ;;  %v7735_v5 = vld [vmem:[#allocation29_spill] sm:$0xff]  ;;  %v7736_v0 = vld [vmem:[#allocation30_spill] sm:$0xff] }
 0x4e3   :  { %4319 = vmatprep.subr.bf16.mxu0 %v7726_v49  ;;  %4383 = vmatprep.subr.bf16.mxu1 %v7727_v7  ;;  %v7737_v49 = vld [vmem:[#allocation31_spill] sm:$0xff]  ;;  %v7738_v7 = vld [vmem:[#allocation32_spill] sm:$0xff] }
 0x4e6   :  { %4321 = vmatpush1.bf16.msra.mxu0 %v7728_v34  ;;  %4385 = vmatpush1.bf16.msra.mxu1 %v7729_v30  ;;  %v7739_v34 = vld [vmem:[#allocation33_spill] sm:$0xff]  ;;  %v7740_v30 = vld [vmem:[#allocation34_spill] sm:$0xff] }
 0x4e7   :  { %4323 = vmatprep.subr.bf16.mxu0 %v7730_v21  ;;  %4387 = vmatprep.subr.bf16.mxu1 %v7731_v42  ;;  %v7741_v21 = vld [vmem:[#allocation35_spill] sm:$0xff]  ;;  %v7742_v42 = vld [vmem:[#allocation36_spill] sm:$0xff] }
 0x4ea   :  { %4325 = vmatpush1.bf16.msra.mxu0 %v7732_v61  ;;  %4389 = vmatpush1.bf16.msra.mxu1 %v7733_v37  ;;  %v7743_v61 = vld [vmem:[#allocation37_spill] sm:$0xff]  ;;  %v7744_v37 = vld [vmem:[#allocation38_spill] sm:$0xff] }
 0x4eb   :  { %4327 = vmatprep.subr.bf16.mxu0 %v7734_v43  ;;  %4391 = vmatprep.subr.bf16.mxu1 %v7735_v5  ;;  %v7745_v43 = vld [vmem:[#allocation39_spill] sm:$0xff]  ;;  %v7746_v5 = vld [vmem:[#allocation40_spill] sm:$0xff] }
 0x4ee   :  { %4329 = vmatpush1.bf16.msra.mxu0 %v7736_v0  ;;  %4393 = vmatpush1.bf16.msra.mxu1 %v7737_v49  ;;  %v7747_v0 = vld [vmem:[#allocation41_spill] sm:$0xff]  ;;  %v7748_v49 = vld [vmem:[#allocation42_spill] sm:$0xff] }
 0x4ef   :  { %4331 = vmatprep.subr.bf16.mxu0 %v7738_v7  ;;  %4395 = vmatprep.subr.bf16.mxu1 %v7739_v34  ;;  %v7749_v7 = vld [vmem:[#allocation43_spill] sm:$0xff]  ;;  %v7750_v34 = vld [vmem:[#allocation44_spill] sm:$0xff] }
 0x4f2   :  { %4333 = vmatpush1.bf16.msra.mxu0 %v7740_v30  ;;  %4397 = vmatpush1.bf16.msra.mxu1 %v7741_v21  ;;  %v7751_v30 = vld [vmem:[#allocation45_spill] sm:$0xff]  ;;  %v7752_v21 = vld [vmem:[#allocation46_spill] sm:$0xff] }
 0x4f3   :  { %4335 = vmatprep.subr.bf16.mxu0 %v7742_v42  ;;  %4399 = vmatprep.subr.bf16.mxu1 %v7743_v61  ;;  %v7753_v42 = vld [vmem:[#allocation47_spill] sm:$0xff]  ;;  %v7754_v61 = vld [vmem:[#allocation48_spill] sm:$0xff] }
 0x4f6   :  { %4337 = vmatpush1.bf16.msra.mxu0 %v7744_v37  ;;  %4401 = vmatpush1.bf16.msra.mxu1 %v7745_v43  ;;  %v7755_v37 = vld [vmem:[#allocation49_spill] sm:$0xff]  ;;  %v7756_v43 = vld [vmem:[#allocation50_spill] sm:$0xff] }
 0x4f7   :  { %4339 = vmatprep.subr.bf16.mxu0 %v7746_v5  ;;  %4403 = vmatprep.subr.bf16.mxu1 %v7747_v0  ;;  %v7757_v5 = vld [vmem:[#allocation51_spill] sm:$0xff]  ;;  %v7758_v0 = vld [vmem:[#allocation52_spill] sm:$0xff] }
 0x4fa   :  { %4341 = vmatpush1.bf16.msra.mxu0 %v7748_v49  ;;  %4405 = vmatpush1.bf16.msra.mxu1 %v7749_v7  ;;  %v7759_v49 = vld [vmem:[#allocation53_spill] sm:$0xff]  ;;  %v7760_v7 = vld [vmem:[#allocation54_spill] sm:$0xff] }
 0x4fb   :  { %4343 = vmatprep.subr.bf16.mxu0 %v7750_v34  ;;  %4407 = vmatprep.subr.bf16.mxu1 %v7751_v30  ;;  %v7761_v34 = vld [vmem:[#allocation55_spill] sm:$0xff]  ;;  %v7762_v30 = vld [vmem:[#allocation56_spill] sm:$0xff] }
 0x4fe   :  { %4345 = vmatpush1.bf16.msra.mxu0 %v7752_v21  ;;  %4409 = vmatpush1.bf16.msra.mxu1 %v7753_v42  ;;  %v7763_v21 = vld [vmem:[#allocation57_spill] sm:$0xff]  ;;  %v7764_v42 = vld [vmem:[#allocation58_spill] sm:$0xff] }
 0x4ff   :  { %4347 = vmatprep.subr.bf16.mxu0 %v7754_v61  ;;  %4411 = vmatprep.subr.bf16.mxu1 %v7755_v37  ;;  %v7765_v61 = vld [vmem:[#allocation59_spill] sm:$0xff]  ;;  %v7766_v37 = vld [vmem:[#allocation4_spill] sm:$0xff] }
 0x502   :  { %4349 = vmatpush1.bf16.msra.mxu0 %v7756_v43  ;;  %4413 = vmatpush1.bf16.msra.mxu1 %v7757_v5  ;;  %v7767_v43 = vld [vmem:[#allocation5_spill] sm:$0xff] }
 0x503   :  { %4351 = vmatprep.subr.bf16.mxu0 %v7758_v0  ;;  %4415 = vmatprep.subr.bf16.mxu1 %v7759_v49 }
 0x506   :  { %4353 = vmatpush1.bf16.msra.mxu0 %v7760_v7  ;;  %4417 = vmatpush1.bf16.msra.mxu1 %v7761_v34 }
 0x507   :  { %4355 = vmatprep.subr.bf16.mxu0 %v7762_v30  ;;  %4419 = vmatprep.subr.bf16.mxu1 %v7763_v21  ;;  %v7769_v21 = vld [vmem:[#allocation65_spill] sm:$0xff] }
 0x50a   :  { %4357 = vmatpush1.bf16.msra.mxu0 %v7764_v42  ;;  %4421 = vmatpush1.bf16.msra.mxu1 %v7765_v61 }
 0x50b   :  { %4423 = vmatprep.subr.bf16.mxu0 %v7766_v37  ;;  %4455 = vmatprep.subr.bf16.mxu1 %v7767_v43 }
 0x580   :  { %v1860_v5 = vpop.f32.mrb[22].mxu0  ;;  %v1931_v0 = vpop.f32.mrb[22].mxu1 }
 0x581   :  { %v1861_v49 = vadd.f32 %v1860_v5, %v7768_v3  ;;  %v1862_v24 = vpop.f32.mrb[23].mxu0  ;;  %v1933_v7 = vpop.f32.mrb[23].mxu1  ;;  %v1932_v61 = vadd.f32 %v1931_v0, %v7649_v25  ;;  %v7770_v0 = vld [vmem:[#allocation61_spill] sm:$0xff] }
 0x582   :  { %v1863_v34 = vadd.f32 %v1862_v24, %v7647_v35  ;;  %v1934_v42 = vadd.f32 %v1933_v7, %v7769_v21 }
 0x583   :  { %v3369_v51 = vmul.f32 -1.442695, %v1861_v49 }
 0x584   :  { %v3370_v30 = vmul.f32 -1.442695, %v1863_v34  ;;  %v3371_v11 = vmul.f32 -1.442695, %v1934_v42 }
 0x585   :  { %5175 = vpow2.f32 %v3369_v51 }
 0x586   :  { %5177 = vpow2.f32 %v3370_v30 }
 0x587   :  { %5179 = vpow2.f32 %v3371_v11 }
 0x588   :  { %5181 = vtanh.f32 %v1932_v61 }
 0x58f   :  { %v5176_v37 = vpop.eup %5175 }
 0x590   :  { %v5178_v59 = vpop.eup %5177  ;;  %v1939_v43 = vadd.f32 1.0, %v5176_v37 }
 0x591   :  { %v1945_v8 = vadd.f32 1.0, %v5178_v59  ;;  %v5180_v5 = vpop.eup %5179 }
 0x592   :  { %5183 = vrcp.f32 %v1939_v43  ;;  %v5182_v3 = vpop.eup %5181  ;;  %v1952_v51 = vadd.f32 1.0, %v5180_v5 }
 0x593   :  { %5185 = vrcp.f32 %v1945_v8 }
 0x594   :  { %5187 = vrcp.f32 %v1952_v51 }
 0x59c   :  { %v5184_v24 = vpop.eup %5183 }
 0x59d   :  { %v5186_v49 = vpop.eup %5185  ;;  %v1956_v34 = vmul.f32 %v5184_v24, %v5182_v3  ;;  %v7771_v3 = vld [vmem:[#allocation63_spill] sm:$0xff] }
 0x59e   :  { %v1955_v30 = vmul.f32 %v5186_v49, %v6850_v38  ;;  %v5188_v38 = vpop.eup %5187 }
 0x5a0   :  { %v2031_v7 = vpop.f32.mrb[8].mxu0  ;;  %v2102_v42 = vpop.f32.mrb[8].mxu1  ;;  %v6964_v21 = vadd.f32 %v1956_v34, %v1955_v30 }
 0x5a1   :  { %v5006_v37 = vadd.f32 %v2031_v7, %v7770_v0  ;;  %v2033_v11 = vpop.f32.mrb[9].mxu0  ;;  %v2104_v61 = vpop.f32.mrb[9].mxu1  ;;  %v5022_v34 = vadd.f32 %v2102_v42, %v6495_v41 }
 0x5a2   :  { %v5007_v59 = vadd.f32 %v2033_v11, %v7590_v45  ;;  %5189 = vtanh.f32 %v6964_v21  ;;  %v5023_v5 = vadd.f32 %v2104_v61, %v7771_v3 }
 0x5a3   :  { %v3372_v8 = vmul.f32 -1.442695, %v5006_v37 }
 0x5a4   :  { %v3373_v43 = vmul.f32 -1.442695, %v5007_v59  ;;  %v3374_v49 = vmul.f32 -1.442695, %v5023_v5 }
 0x5a5   :  { %5191 = vpow2.f32 %v3372_v8 }
 0x5a6   :  { %5193 = vpow2.f32 %v3373_v43 }
 0x5a7   :  { %5195 = vpow2.f32 %v3374_v49 }
 0x5a8   :  { %5197 = vtanh.f32 %v5022_v34  ;;  %v7775_v34 = vld [vmem:[#allocation9_spill] sm:$0xff] }
 0x5ac   :  { %v5190_v24 = vpop.eup %5189 }
 0x5ad   :  { %v1959_v51 = vmul.f32 %v5190_v24, %v5188_v38 }
 0x5af   :  { %v5192_v30 = vpop.eup %5191  ;;  %2199 = vmatprep.mubr.f32.mxu0 %v1959_v51  ;;  %2270 = vmatprep.mubr.f32.mxu1 %v1959_v51  ;;  %v7776_v51 = vld [vmem:[#allocation10_spill] sm:$0xff] }
 0x5b0   :  { %v5194_v7 = vpop.eup %5193  ;;  %v2114_v0 = vadd.f32 1.0, %v5192_v30  ;;  %v7777_v30 = vld [vmem:[#allocation11_spill] sm:$0xff] }
 0x5b1   :  { %v2120_v11 = vadd.f32 1.0, %v5194_v7  ;;  %v5196_v37 = vpop.eup %5195  ;;  %v7778_v7 = vld [vmem:[#allocation12_spill] sm:$0xff] }
 0x5b2   :  { %5199 = vrcp.f32 %v2114_v0  ;;  %v5198_v59 = vpop.eup %5197  ;;  %v2127_v3 = vadd.f32 1.0, %v5196_v37  ;;  %v7773_v0 = vld [vmem:[#allocation7_spill] sm:$0xff]  ;;  %v7780_v37 = vld [vmem:[#allocation14_spill] sm:$0xff] }
 0x5b3   :  { %5201 = vrcp.f32 %v2120_v11  ;;  %v7779_v11 = vld [vmem:[#allocation13_spill] sm:$0xff] }
 0x5b4   :  { %5203 = vrcp.f32 %v2127_v3  ;;  %v7774_v3 = vld [vmem:[#allocation8_spill] sm:$0xff] }
 0x5bc   :  { %v5200_v8 = vpop.eup %5199 }
 0x5bd   :  { %v5202_v61 = vpop.eup %5201  ;;  %v2131_v43 = vmul.f32 %v5200_v8, %v5198_v59  ;;  %v7781_v59 = vld [vmem:[#allocation15_spill] sm:$0xff]  ;;  %v7782_v8 = vld [vmem:[#allocation16_spill] sm:$0xff] }
 0x5be   :  { %v2130_v5 = vmul.f32 %v5202_v61, %v6858_v12  ;;  %v5204_v38 = vpop.eup %5203  ;;  %v7772_v12 = vld [vmem:[#allocation6_spill] sm:$0xff]  ;;  %v7783_v61 = vld [vmem:[#allocation17_spill] sm:$0xff] }
 0x5c0   :  { %v6972_v42 = vadd.f32 %v2131_v43, %v2130_v5  ;;  %v7784_v43 = vld [vmem:[#allocation18_spill] sm:$0xff]  ;;  %v7785_v5 = vld [vmem:[#allocation19_spill] sm:$0xff] }
 0x5c2   :  { %5205 = vtanh.f32 %v6972_v42 }
 0x5cc   :  { %v5206_v24 = vpop.eup %5205 }
 0x5cd   :  { %v2134_v49 = vmul.f32 %v5206_v24, %v5204_v38  ;;  %v7786_v38 = vld [vmem:[#allocation20_spill] sm:$0xff]  ;;  %v7787_v24 = vld [vmem:[#allocation21_spill] sm:$0xff] }
 0x5cf   :  { %2200 = vmatmul.mubr.f32.vlgmr.msra.gmra.mrb[24].mxu0 %v2134_v49  ;;  %2271 = vmatmul.mubr.f32.vlgmr.msra.gmra.mrb[24].mxu1 %v2134_v49 }
 0x5d0   :  { %4425 = vmatpush1.bf16.msra.mxu0 %v5596_v47  ;;  %4457 = vmatpush1.bf16.msra.mxu1 %v5605_v50 }
 0x5d1   :  { %4427 = vmatprep.subr.bf16.mxu0 %v5614_v53  ;;  %4459 = vmatprep.subr.bf16.mxu1 %v5622_v56 }
 0x5d2   :  { %2370 = vmatprep.mubr.f32.mxu0 %v7529_v31  ;;  %2441 = vmatprep.mubr.f32.mxu1 %v7529_v31 }
 0x5d4   :  { %4429 = vmatpush1.bf16.msra.mxu0 %v5634_v60  ;;  %4461 = vmatpush1.bf16.msra.mxu1 %v5644_v63 }
 0x5d5   :  { %4431 = vmatprep.subr.bf16.mxu0 %v5654_v2  ;;  %4463 = vmatprep.subr.bf16.mxu1 %v5663_v6 }
 0x5d8   :  { %4433 = vmatpush1.bf16.msra.mxu0 %v5675_v10  ;;  %4465 = vmatpush1.bf16.msra.mxu1 %v5685_v13 }
 0x5d9   :  { %4435 = vmatprep.subr.bf16.mxu0 %v5695_v16  ;;  %4467 = vmatprep.subr.bf16.mxu1 %v5704_v19 }
 0x5dc   :  { %4437 = vmatpush1.bf16.msra.mxu0 %v5716_v23  ;;  %4469 = vmatpush1.bf16.msra.mxu1 %v5726_v26 }
 0x5dd   :  { %4439 = vmatprep.subr.bf16.mxu0 %v5736_v29  ;;  %4471 = vmatprep.subr.bf16.mxu1 %v5745_v32 }
 0x5e0   :  { %4441 = vmatpush1.bf16.msra.mxu0 %v5757_v36  ;;  %4473 = vmatpush1.bf16.msra.mxu1 %v5767_v40 }
 0x5e1   :  { %4443 = vmatprep.subr.bf16.mxu0 %v5777_v44  ;;  %4475 = vmatprep.subr.bf16.mxu1 %v5786_v48 }
 0x5e4   :  { %4445 = vmatpush1.bf16.msra.mxu0 %v5798_v54  ;;  %4477 = vmatpush1.bf16.msra.mxu1 %v5808_v58 }
 0x5e5   :  { %4447 = vmatprep.subr.bf16.mxu0 %v5818_v62  ;;  %4479 = vmatprep.subr.bf16.mxu1 %v5827_v4 }
 0x5e8   :  { %4449 = vmatpush1.bf16.msra.mxu0 %v5839_v9  ;;  %4481 = vmatpush1.bf16.msra.mxu1 %v5849_v14 }
 0x5e9   :  { %4451 = vmatprep.subr.bf16.mxu0 %v5859_v18  ;;  %4483 = vmatprep.subr.bf16.mxu1 %v5868_v22 }
 0x5ec   :  { %4453 = vmatpush1.bf16.msra.mxu0 %v5880_v28  ;;  %4485 = vmatpush1.bf16.msra.mxu1 %v5890_v33 }
 0x5ed   :  { %4487 = vmatprep.subr.bf16.mxu0 %v5903_v39  ;;  %4551 = vmatprep.subr.bf16.mxu1 %v5915_v46 }
 0x5ef   :  { %2371 = vmatmul.mubr.f32.vlgmr.msra.gmra.mrb[10].mxu0 %v2134_v49  ;;  %2442 = vmatmul.mubr.f32.vlgmr.msra.gmra.mrb[10].mxu1 %v2134_v49  ;;  %v7788_v49 = vld [vmem:[#allocation22_spill] sm:$0xff] }
 0x5f0   :  { %4489 = vmatpush1.bf16.msra.mxu0 %v5924_v52  ;;  %4553 = vmatpush1.bf16.msra.mxu1 %v5928_v55 }
 0x5f1   :  { %4491 = vmatprep.subr.bf16.mxu0 %v5930_v57  ;;  %4555 = vmatprep.subr.bf16.mxu1 %v5943_v1 }
 0x5f4   :  { %4493 = vmatpush1.bf16.msra.mxu0 %v5964_v15  ;;  %4557 = vmatpush1.bf16.msra.mxu1 %v5968_v17 }
 0x5f5   :  { %4495 = vmatprep.subr.bf16.mxu0 %v5970_v20  ;;  %4559 = vmatprep.subr.bf16.mxu1 %v5982_v27 }
 0x5f8   :  { %4497 = vmatpush1.bf16.msra.mxu0 %v7772_v12  ;;  %4561 = vmatpush1.bf16.msra.mxu1 %v7773_v0 }
 0x5f9   :  { %4499 = vmatprep.subr.bf16.mxu0 %v7774_v3  ;;  %4563 = vmatprep.subr.bf16.mxu1 %v7775_v34 }
 0x5fc   :  { %4501 = vmatpush1.bf16.msra.mxu0 %v7776_v51  ;;  %4565 = vmatpush1.bf16.msra.mxu1 %v7777_v30  ;;  %v7828_v30 = vld [vmem:[#allocation60_spill] sm:$0xff] }
 0x5fd   :  { %4503 = vmatprep.subr.bf16.mxu0 %v7778_v7  ;;  %4567 = vmatprep.subr.bf16.mxu1 %v7779_v11  ;;  %v7789_v7 = vld [vmem:[#allocation23_spill] sm:$0xff]  ;;  %v7790_v11 = vld [vmem:[#allocation24_spill] sm:$0xff] }
 0x600   :  { %4505 = vmatpush1.bf16.msra.mxu0 %v7780_v37  ;;  %4569 = vmatpush1.bf16.msra.mxu1 %v7781_v59  ;;  %v7791_v37 = vld [vmem:[#allocation25_spill] sm:$0xff]  ;;  %v7792_v59 = vld [vmem:[#allocation26_spill] sm:$0xff] }
 0x601   :  { %4507 = vmatprep.subr.bf16.mxu0 %v7782_v8  ;;  %4571 = vmatprep.subr.bf16.mxu1 %v7783_v61  ;;  %v7793_v8 = vld [vmem:[#allocation27_spill] sm:$0xff]  ;;  %v7794_v61 = vld [vmem:[#allocation28_spill] sm:$0xff] }
 0x604   :  { %4509 = vmatpush1.bf16.msra.mxu0 %v7784_v43  ;;  %4573 = vmatpush1.bf16.msra.mxu1 %v7785_v5  ;;  %v7795_v43 = vld [vmem:[#allocation29_spill] sm:$0xff]  ;;  %v7796_v5 = vld [vmem:[#allocation30_spill] sm:$0xff] }
 0x605   :  { %4511 = vmatprep.subr.bf16.mxu0 %v7786_v38  ;;  %4575 = vmatprep.subr.bf16.mxu1 %v7787_v24  ;;  %v7797_v38 = vld [vmem:[#allocation31_spill] sm:$0xff]  ;;  %v7798_v24 = vld [vmem:[#allocation32_spill] sm:$0xff] }
 0x608   :  { %4513 = vmatpush1.bf16.msra.mxu0 %v7788_v49  ;;  %4577 = vmatpush1.bf16.msra.mxu1 %v7789_v7  ;;  %v7799_v49 = vld [vmem:[#allocation33_spill] sm:$0xff]  ;;  %v7800_v7 = vld [vmem:[#allocation34_spill] sm:$0xff] }
 0x609   :  { %4515 = vmatprep.subr.bf16.mxu0 %v7790_v11  ;;  %4579 = vmatprep.subr.bf16.mxu1 %v7791_v37  ;;  %v7801_v11 = vld [vmem:[#allocation35_spill] sm:$0xff]  ;;  %v7802_v37 = vld [vmem:[#allocation36_spill] sm:$0xff] }
 0x60c   :  { %4517 = vmatpush1.bf16.msra.mxu0 %v7792_v59  ;;  %4581 = vmatpush1.bf16.msra.mxu1 %v7793_v8  ;;  %v7803_v59 = vld [vmem:[#allocation37_spill] sm:$0xff]  ;;  %v7804_v8 = vld [vmem:[#allocation38_spill] sm:$0xff] }
 0x60d   :  { %4519 = vmatprep.subr.bf16.mxu0 %v7794_v61  ;;  %4583 = vmatprep.subr.bf16.mxu1 %v7795_v43  ;;  %v7805_v61 = vld [vmem:[#allocation39_spill] sm:$0xff]  ;;  %v7806_v43 = vld [vmem:[#allocation40_spill] sm:$0xff] }
 0x610   :  { %4521 = vmatpush1.bf16.msra.mxu0 %v7796_v5  ;;  %4585 = vmatpush1.bf16.msra.mxu1 %v7797_v38  ;;  %v7807_v5 = vld [vmem:[#allocation41_spill] sm:$0xff]  ;;  %v7808_v38 = vld [vmem:[#allocation42_spill] sm:$0xff] }
 0x611   :  { %4523 = vmatprep.subr.bf16.mxu0 %v7798_v24  ;;  %4587 = vmatprep.subr.bf16.mxu1 %v7799_v49  ;;  %v7809_v24 = vld [vmem:[#allocation43_spill] sm:$0xff]  ;;  %v7810_v49 = vld [vmem:[#allocation44_spill] sm:$0xff] }
 0x614   :  { %4525 = vmatpush1.bf16.msra.mxu0 %v7800_v7  ;;  %4589 = vmatpush1.bf16.msra.mxu1 %v7801_v11  ;;  %v7811_v7 = vld [vmem:[#allocation45_spill] sm:$0xff]  ;;  %v7812_v11 = vld [vmem:[#allocation46_spill] sm:$0xff] }
 0x615   :  { %4527 = vmatprep.subr.bf16.mxu0 %v7802_v37  ;;  %4591 = vmatprep.subr.bf16.mxu1 %v7803_v59  ;;  %v7813_v37 = vld [vmem:[#allocation47_spill] sm:$0xff]  ;;  %v7814_v59 = vld [vmem:[#allocation48_spill] sm:$0xff] }
 0x618   :  { %4529 = vmatpush1.bf16.msra.mxu0 %v7804_v8  ;;  %4593 = vmatpush1.bf16.msra.mxu1 %v7805_v61  ;;  %v7815_v8 = vld [vmem:[#allocation49_spill] sm:$0xff]  ;;  %v7816_v61 = vld [vmem:[#allocation50_spill] sm:$0xff] }
 0x619   :  { %4531 = vmatprep.subr.bf16.mxu0 %v7806_v43  ;;  %4595 = vmatprep.subr.bf16.mxu1 %v7807_v5  ;;  %v7817_v43 = vld [vmem:[#allocation51_spill] sm:$0xff]  ;;  %v7818_v5 = vld [vmem:[#allocation52_spill] sm:$0xff] }
 0x61c   :  { %4533 = vmatpush1.bf16.msra.mxu0 %v7808_v38  ;;  %4597 = vmatpush1.bf16.msra.mxu1 %v7809_v24  ;;  %v7819_v38 = vld [vmem:[#allocation53_spill] sm:$0xff]  ;;  %v7820_v24 = vld [vmem:[#allocation54_spill] sm:$0xff] }
 0x61d   :  { %4535 = vmatprep.subr.bf16.mxu0 %v7810_v49  ;;  %4599 = vmatprep.subr.bf16.mxu1 %v7811_v7  ;;  %v7821_v49 = vld [vmem:[#allocation55_spill] sm:$0xff]  ;;  %v7822_v7 = vld [vmem:[#allocation56_spill] sm:$0xff] }
 0x620   :  { %4537 = vmatpush1.bf16.msra.mxu0 %v7812_v11  ;;  %4601 = vmatpush1.bf16.msra.mxu1 %v7813_v37  ;;  %v7823_v11 = vld [vmem:[#allocation57_spill] sm:$0xff]  ;;  %v7824_v37 = vld [vmem:[#allocation58_spill] sm:$0xff] }
 0x621   :  { %4539 = vmatprep.subr.bf16.mxu0 %v7814_v59  ;;  %4603 = vmatprep.subr.bf16.mxu1 %v7815_v8  ;;  %v7825_v59 = vld [vmem:[#allocation59_spill] sm:$0xff]  ;;  %v7826_v8 = vld [vmem:[#allocation4_spill] sm:$0xff] }
 0x624   :  { %4541 = vmatpush1.bf16.msra.mxu0 %v7816_v61  ;;  %4605 = vmatpush1.bf16.msra.mxu1 %v7817_v43  ;;  %v7827_v61 = vld [vmem:[#allocation5_spill] sm:$0xff] }
 0x625   :  { %4543 = vmatprep.subr.bf16.mxu0 %v7818_v5  ;;  %4607 = vmatprep.subr.bf16.mxu1 %v7819_v38 }
 0x628   :  { %4545 = vmatpush1.bf16.msra.mxu0 %v7820_v24  ;;  %4609 = vmatpush1.bf16.msra.mxu1 %v7821_v49 }
 0x629   :  { %4547 = vmatprep.subr.bf16.mxu0 %v7822_v7  ;;  %4611 = vmatprep.subr.bf16.mxu1 %v7823_v11  ;;  %v7829_v11 = vld [vmem:[#allocation65_spill] sm:$0xff] }
 0x62c   :  { %4549 = vmatpush1.bf16.msra.mxu0 %v7824_v37  ;;  %4613 = vmatpush1.bf16.msra.mxu1 %v7825_v59 }
 0x62d   :  { %4615 = vmatprep.subr.bf16.mxu0 %v7826_v8  ;;  %4647 = vmatprep.subr.bf16.mxu1 %v7827_v61 }
 0x6a2   :  { %v2201_v43 = vpop.f32.mrb[24].mxu0  ;;  %v2272_v5 = vpop.f32.mrb[24].mxu1 }
 0x6a3   :  { %v2202_v38 = vadd.f32 %v2201_v43, %v7828_v30  ;;  %v2203_v51 = vpop.f32.mrb[25].mxu0  ;;  %v2274_v24 = vpop.f32.mrb[25].mxu1  ;;  %v2273_v59 = vadd.f32 %v2272_v5, %v7649_v25  ;;  %v7830_v5 = vld [vmem:[#allocation61_spill] sm:$0xff] }
 0x6a4   :  { %v2204_v49 = vadd.f32 %v2203_v51, %v7647_v35  ;;  %v2275_v37 = vadd.f32 %v2274_v24, %v7829_v11 }
 0x6a5   :  { %v3375_v34 = vmul.f32 -1.442695, %v2202_v38 }
 0x6a6   :  { %v3376_v7 = vmul.f32 -1.442695, %v2204_v49  ;;  %v3377_v3 = vmul.f32 -1.442695, %v2275_v37 }
 0x6a7   :  { %5207 = vpow2.f32 %v3375_v34 }
 0x6a8   :  { %5209 = vpow2.f32 %v3376_v7 }
 0x6a9   :  { %5211 = vpow2.f32 %v3377_v3 }
 0x6aa   :  { %5213 = vtanh.f32 %v2273_v59 }
 0x6b1   :  { %v5208_v8 = vpop.eup %5207 }
 0x6b2   :  { %v5210_v0 = vpop.eup %5209  ;;  %v2280_v61 = vadd.f32 1.0, %v5208_v8 }
 0x6b3   :  { %v2286_v12 = vadd.f32 1.0, %v5210_v0  ;;  %v5212_v43 = vpop.eup %5211 }
 0x6b4   :  { %5215 = vrcp.f32 %v2280_v61  ;;  %v5214_v30 = vpop.eup %5213  ;;  %v2293_v34 = vadd.f32 1.0, %v5212_v43 }
 0x6b5   :  { %5217 = vrcp.f32 %v2286_v12 }
 0x6b6   :  { %5219 = vrcp.f32 %v2293_v34 }
 0x6be   :  { %v5216_v51 = vpop.eup %5215 }
 0x6bf   :  { %v5218_v38 = vpop.eup %5217  ;;  %v2297_v49 = vmul.f32 %v5216_v51, %v5214_v30  ;;  %v7831_v30 = vld [vmem:[#allocation63_spill] sm:$0xff] }
 0x6c0   :  { %v2296_v7 = vmul.f32 %v5218_v38, %v6964_v21  ;;  %v5220_v21 = vpop.eup %5219 }
 0x6c2   :  { %v2372_v24 = vpop.f32.mrb[10].mxu0  ;;  %v2443_v37 = vpop.f32.mrb[10].mxu1  ;;  %v7078_v11 = vadd.f32 %v2297_v49, %v2296_v7 }
 0x6c3   :  { %v5008_v8 = vadd.f32 %v2372_v24, %v7830_v5  ;;  %v2374_v3 = vpop.f32.mrb[11].mxu0  ;;  %v2445_v59 = vpop.f32.mrb[11].mxu1  ;;  %v5024_v49 = vadd.f32 %v2443_v37, %v6495_v41 }
 0x6c4   :  { %v5009_v0 = vadd.f32 %v2374_v3, %v7590_v45  ;;  %5221 = vtanh.f32 %v7078_v11  ;;  %v5025_v43 = vadd.f32 %v2445_v59, %v7831_v30 }
 0x6c5   :  { %v3378_v12 = vmul.f32 -1.442695, %v5008_v8 }
 0x6c6   :  { %v3379_v61 = vmul.f32 -1.442695, %v5009_v0  ;;  %v3380_v38 = vmul.f32 -1.442695, %v5025_v43 }
 0x6c7   :  { %5223 = vpow2.f32 %v3378_v12 }
 0x6c8   :  { %5225 = vpow2.f32 %v3379_v61 }
 0x6c9   :  { %5227 = vpow2.f32 %v3380_v38 }
 0x6ca   :  { %5229 = vtanh.f32 %v5024_v49  ;;  %v7835_v49 = vld [vmem:[#allocation9_spill] sm:$0xff] }
 0x6ce   :  { %v5222_v51 = vpop.eup %5221 }
 0x6cf   :  { %v2300_v34 = vmul.f32 %v5222_v51, %v5220_v21 }
 0x6d1   :  { %v5224_v7 = vpop.eup %5223  ;;  %2540 = vmatprep.mubr.f32.mxu0 %v2300_v34  ;;  %2611 = vmatprep.mubr.f32.mxu1 %v2300_v34  ;;  %v7836_v34 = vld [vmem:[#allocation10_spill] sm:$0xff] }
 0x6d2   :  { %v5226_v24 = vpop.eup %5225  ;;  %v2455_v5 = vadd.f32 1.0, %v5224_v7  ;;  %v7837_v7 = vld [vmem:[#allocation11_spill] sm:$0xff] }
 0x6d3   :  { %v2461_v3 = vadd.f32 1.0, %v5226_v24  ;;  %v5228_v8 = vpop.eup %5227  ;;  %v7838_v24 = vld [vmem:[#allocation12_spill] sm:$0xff] }
 0x6d4   :  { %5231 = vrcp.f32 %v2455_v5  ;;  %v5230_v0 = vpop.eup %5229  ;;  %v2468_v30 = vadd.f32 1.0, %v5228_v8  ;;  %v7833_v5 = vld [vmem:[#allocation7_spill] sm:$0xff]  ;;  %v7840_v8 = vld [vmem:[#allocation14_spill] sm:$0xff] }
 0x6d5   :  { %5233 = vrcp.f32 %v2461_v3  ;;  %v7839_v3 = vld [vmem:[#allocation13_spill] sm:$0xff] }
 0x6d6   :  { %5235 = vrcp.f32 %v2468_v30  ;;  %v7834_v30 = vld [vmem:[#allocation8_spill] sm:$0xff] }
 0x6de   :  { %v5232_v12 = vpop.eup %5231 }
 0x6df   :  { %v5234_v59 = vpop.eup %5233  ;;  %v2472_v61 = vmul.f32 %v5232_v12, %v5230_v0  ;;  %v7841_v0 = vld [vmem:[#allocation15_spill] sm:$0xff]  ;;  %v7842_v12 = vld [vmem:[#allocation16_spill] sm:$0xff] }
 0x6e0   :  { %v2471_v43 = vmul.f32 %v5234_v59, %v6972_v42  ;;  %v5236_v21 = vpop.eup %5235  ;;  %v7832_v42 = vld [vmem:[#allocation6_spill] sm:$0xff]  ;;  %v7843_v59 = vld [vmem:[#allocation17_spill] sm:$0xff] }
 0x6e2   :  { %v7086_v37 = vadd.f32 %v2472_v61, %v2471_v43  ;;  %v7844_v61 = vld [vmem:[#allocation18_spill] sm:$0xff]  ;;  %v7845_v43 = vld [vmem:[#allocation19_spill] sm:$0xff] }
 0x6e4   :  { %5237 = vtanh.f32 %v7086_v37 }
 0x6ee   :  { %v5238_v51 = vpop.eup %5237 }
 0x6ef   :  { %v2475_v38 = vmul.f32 %v5238_v51, %v5236_v21  ;;  %v7846_v21 = vld [vmem:[#allocation20_spill] sm:$0xff]  ;;  %v7847_v51 = vld [vmem:[#allocation21_spill] sm:$0xff] }
 0x6f1   :  { %2541 = vmatmul.mubr.f32.vlgmr.msra.gmra.mrb[26].mxu0 %v2475_v38  ;;  %2612 = vmatmul.mubr.f32.vlgmr.msra.gmra.mrb[26].mxu1 %v2475_v38 }
 0x6f2   :  { %4617 = vmatpush1.bf16.msra.mxu0 %v5596_v47  ;;  %4649 = vmatpush1.bf16.msra.mxu1 %v5605_v50 }
 0x6f3   :  { %4619 = vmatprep.subr.bf16.mxu0 %v5614_v53  ;;  %4651 = vmatprep.subr.bf16.mxu1 %v5622_v56 }
 0x6f4   :  { %2711 = vmatprep.mubr.f32.mxu0 %v7529_v31  ;;  %2782 = vmatprep.mubr.f32.mxu1 %v7529_v31 }
 0x6f6   :  { %4621 = vmatpush1.bf16.msra.mxu0 %v5634_v60  ;;  %4653 = vmatpush1.bf16.msra.mxu1 %v5644_v63 }
 0x6f7   :  { %4623 = vmatprep.subr.bf16.mxu0 %v5654_v2  ;;  %4655 = vmatprep.subr.bf16.mxu1 %v5663_v6 }
 0x6fa   :  { %4625 = vmatpush1.bf16.msra.mxu0 %v5675_v10  ;;  %4657 = vmatpush1.bf16.msra.mxu1 %v5685_v13 }
 0x6fb   :  { %4627 = vmatprep.subr.bf16.mxu0 %v5695_v16  ;;  %4659 = vmatprep.subr.bf16.mxu1 %v5704_v19 }
 0x6fe   :  { %4629 = vmatpush1.bf16.msra.mxu0 %v5716_v23  ;;  %4661 = vmatpush1.bf16.msra.mxu1 %v5726_v26 }
 0x6ff   :  { %4631 = vmatprep.subr.bf16.mxu0 %v5736_v29  ;;  %4663 = vmatprep.subr.bf16.mxu1 %v5745_v32 }
 0x702   :  { %4633 = vmatpush1.bf16.msra.mxu0 %v5757_v36  ;;  %4665 = vmatpush1.bf16.msra.mxu1 %v5767_v40 }
 0x703   :  { %4635 = vmatprep.subr.bf16.mxu0 %v5777_v44  ;;  %4667 = vmatprep.subr.bf16.mxu1 %v5786_v48 }
 0x706   :  { %4637 = vmatpush1.bf16.msra.mxu0 %v5798_v54  ;;  %4669 = vmatpush1.bf16.msra.mxu1 %v5808_v58 }
 0x707   :  { %4639 = vmatprep.subr.bf16.mxu0 %v5818_v62  ;;  %4671 = vmatprep.subr.bf16.mxu1 %v5827_v4 }
 0x70a   :  { %4641 = vmatpush1.bf16.msra.mxu0 %v5839_v9  ;;  %4673 = vmatpush1.bf16.msra.mxu1 %v5849_v14 }
 0x70b   :  { %4643 = vmatprep.subr.bf16.mxu0 %v5859_v18  ;;  %4675 = vmatprep.subr.bf16.mxu1 %v5868_v22 }
 0x70e   :  { %4645 = vmatpush1.bf16.msra.mxu0 %v5880_v28  ;;  %4677 = vmatpush1.bf16.msra.mxu1 %v5890_v33 }
 0x70f   :  { %4679 = vmatprep.subr.bf16.mxu0 %v5903_v39  ;;  %4743 = vmatprep.subr.bf16.mxu1 %v5915_v46 }
 0x711   :  { %2712 = vmatmul.mubr.f32.vlgmr.msra.gmra.mrb[12].mxu0 %v2475_v38  ;;  %2783 = vmatmul.mubr.f32.vlgmr.msra.gmra.mrb[12].mxu1 %v2475_v38  ;;  %v7848_v38 = vld [vmem:[#allocation22_spill] sm:$0xff] }
 0x712   :  { %4681 = vmatpush1.bf16.msra.mxu0 %v5924_v52  ;;  %4745 = vmatpush1.bf16.msra.mxu1 %v5928_v55 }
 0x713   :  { %4683 = vmatprep.subr.bf16.mxu0 %v5930_v57  ;;  %4747 = vmatprep.subr.bf16.mxu1 %v5943_v1 }
 0x716   :  { %4685 = vmatpush1.bf16.msra.mxu0 %v5964_v15  ;;  %4749 = vmatpush1.bf16.msra.mxu1 %v5968_v17 }
 0x717   :  { %4687 = vmatprep.subr.bf16.mxu0 %v5970_v20  ;;  %4751 = vmatprep.subr.bf16.mxu1 %v5982_v27 }
 0x71a   :  { %4689 = vmatpush1.bf16.msra.mxu0 %v7832_v42  ;;  %4753 = vmatpush1.bf16.msra.mxu1 %v7833_v5 }
 0x71b   :  { %4691 = vmatprep.subr.bf16.mxu0 %v7834_v30  ;;  %4755 = vmatprep.subr.bf16.mxu1 %v7835_v49 }
 0x71e   :  { %4693 = vmatpush1.bf16.msra.mxu0 %v7836_v34  ;;  %4757 = vmatpush1.bf16.msra.mxu1 %v7837_v7  ;;  %v7888_v7 = vld [vmem:[#allocation60_spill] sm:$0xff] }
 0x71f   :  { %4695 = vmatprep.subr.bf16.mxu0 %v7838_v24  ;;  %4759 = vmatprep.subr.bf16.mxu1 %v7839_v3  ;;  %v7849_v24 = vld [vmem:[#allocation23_spill] sm:$0xff]  ;;  %v7850_v3 = vld [vmem:[#allocation24_spill] sm:$0xff] }
 0x722   :  { %4697 = vmatpush1.bf16.msra.mxu0 %v7840_v8  ;;  %4761 = vmatpush1.bf16.msra.mxu1 %v7841_v0  ;;  %v7851_v8 = vld [vmem:[#allocation25_spill] sm:$0xff]  ;;  %v7852_v0 = vld [vmem:[#allocation26_spill] sm:$0xff] }
 0x723   :  { %4699 = vmatprep.subr.bf16.mxu0 %v7842_v12  ;;  %4763 = vmatprep.subr.bf16.mxu1 %v7843_v59  ;;  %v7853_v12 = vld [vmem:[#allocation27_spill] sm:$0xff]  ;;  %v7854_v59 = vld [vmem:[#allocation28_spill] sm:$0xff] }
 0x726   :  { %4701 = vmatpush1.bf16.msra.mxu0 %v7844_v61  ;;  %4765 = vmatpush1.bf16.msra.mxu1 %v7845_v43  ;;  %v7855_v61 = vld [vmem:[#allocation29_spill] sm:$0xff]  ;;  %v7856_v43 = vld [vmem:[#allocation30_spill] sm:$0xff] }
 0x727   :  { %4703 = vmatprep.subr.bf16.mxu0 %v7846_v21  ;;  %4767 = vmatprep.subr.bf16.mxu1 %v7847_v51  ;;  %v7857_v21 = vld [vmem:[#allocation31_spill] sm:$0xff]  ;;  %v7858_v51 = vld [vmem:[#allocation32_spill] sm:$0xff] }
 0x72a   :  { %4705 = vmatpush1.bf16.msra.mxu0 %v7848_v38  ;;  %4769 = vmatpush1.bf16.msra.mxu1 %v7849_v24  ;;  %v7859_v38 = vld [vmem:[#allocation33_spill] sm:$0xff]  ;;  %v7860_v24 = vld [vmem:[#allocation34_spill] sm:$0xff] }
 0x72b   :  { %4707 = vmatprep.subr.bf16.mxu0 %v7850_v3  ;;  %4771 = vmatprep.subr.bf16.mxu1 %v7851_v8  ;;  %v7861_v3 = vld [vmem:[#allocation35_spill] sm:$0xff]  ;;  %v7862_v8 = vld [vmem:[#allocation36_spill] sm:$0xff] }
 0x72e   :  { %4709 = vmatpush1.bf16.msra.mxu0 %v7852_v0  ;;  %4773 = vmatpush1.bf16.msra.mxu1 %v7853_v12  ;;  %v7863_v0 = vld [vmem:[#allocation37_spill] sm:$0xff]  ;;  %v7864_v12 = vld [vmem:[#allocation38_spill] sm:$0xff] }
 0x72f   :  { %4711 = vmatprep.subr.bf16.mxu0 %v7854_v59  ;;  %4775 = vmatprep.subr.bf16.mxu1 %v7855_v61  ;;  %v7865_v59 = vld [vmem:[#allocation39_spill] sm:$0xff]  ;;  %v7866_v61 = vld [vmem:[#allocation40_spill] sm:$0xff] }
 0x732   :  { %4713 = vmatpush1.bf16.msra.mxu0 %v7856_v43  ;;  %4777 = vmatpush1.bf16.msra.mxu1 %v7857_v21  ;;  %v7867_v43 = vld [vmem:[#allocation41_spill] sm:$0xff]  ;;  %v7868_v21 = vld [vmem:[#allocation42_spill] sm:$0xff] }
 0x733   :  { %4715 = vmatprep.subr.bf16.mxu0 %v7858_v51  ;;  %4779 = vmatprep.subr.bf16.mxu1 %v7859_v38  ;;  %v7869_v51 = vld [vmem:[#allocation43_spill] sm:$0xff]  ;;  %v7870_v38 = vld [vmem:[#allocation44_spill] sm:$0xff] }
 0x736   :  { %4717 = vmatpush1.bf16.msra.mxu0 %v7860_v24  ;;  %4781 = vmatpush1.bf16.msra.mxu1 %v7861_v3  ;;  %v7871_v24 = vld [vmem:[#allocation45_spill] sm:$0xff]  ;;  %v7872_v3 = vld [vmem:[#allocation46_spill] sm:$0xff] }
 0x737   :  { %4719 = vmatprep.subr.bf16.mxu0 %v7862_v8  ;;  %4783 = vmatprep.subr.bf16.mxu1 %v7863_v0  ;;  %v7873_v8 = vld [vmem:[#allocation47_spill] sm:$0xff]  ;;  %v7874_v0 = vld [vmem:[#allocation48_spill] sm:$0xff] }
 0x73a   :  { %4721 = vmatpush1.bf16.msra.mxu0 %v7864_v12  ;;  %4785 = vmatpush1.bf16.msra.mxu1 %v7865_v59  ;;  %v7875_v12 = vld [vmem:[#allocation49_spill] sm:$0xff]  ;;  %v7876_v59 = vld [vmem:[#allocation50_spill] sm:$0xff] }
 0x73b   :  { %4723 = vmatprep.subr.bf16.mxu0 %v7866_v61  ;;  %4787 = vmatprep.subr.bf16.mxu1 %v7867_v43  ;;  %v7877_v61 = vld [vmem:[#allocation51_spill] sm:$0xff]  ;;  %v7878_v43 = vld [vmem:[#allocation52_spill] sm:$0xff] }
 0x73e   :  { %4725 = vmatpush1.bf16.msra.mxu0 %v7868_v21  ;;  %4789 = vmatpush1.bf16.msra.mxu1 %v7869_v51  ;;  %v7879_v21 = vld [vmem:[#allocation53_spill] sm:$0xff]  ;;  %v7880_v51 = vld [vmem:[#allocation54_spill] sm:$0xff] }
 0x73f   :  { %4727 = vmatprep.subr.bf16.mxu0 %v7870_v38  ;;  %4791 = vmatprep.subr.bf16.mxu1 %v7871_v24  ;;  %v7881_v38 = vld [vmem:[#allocation55_spill] sm:$0xff]  ;;  %v7882_v24 = vld [vmem:[#allocation56_spill] sm:$0xff] }
 0x742   :  { %4729 = vmatpush1.bf16.msra.mxu0 %v7872_v3  ;;  %4793 = vmatpush1.bf16.msra.mxu1 %v7873_v8  ;;  %v7883_v3 = vld [vmem:[#allocation57_spill] sm:$0xff]  ;;  %v7884_v8 = vld [vmem:[#allocation58_spill] sm:$0xff] }
 0x743   :  { %4731 = vmatprep.subr.bf16.mxu0 %v7874_v0  ;;  %4795 = vmatprep.subr.bf16.mxu1 %v7875_v12  ;;  %v7885_v0 = vld [vmem:[#allocation59_spill] sm:$0xff]  ;;  %v7886_v12 = vld [vmem:[#allocation4_spill] sm:$0xff] }
 0x746   :  { %4733 = vmatpush1.bf16.msra.mxu0 %v7876_v59  ;;  %4797 = vmatpush1.bf16.msra.mxu1 %v7877_v61  ;;  %v7887_v59 = vld [vmem:[#allocation5_spill] sm:$0xff] }
 0x747   :  { %4735 = vmatprep.subr.bf16.mxu0 %v7878_v43  ;;  %4799 = vmatprep.subr.bf16.mxu1 %v7879_v21 }
 0x74a   :  { %4737 = vmatpush1.bf16.msra.mxu0 %v7880_v51  ;;  %4801 = vmatpush1.bf16.msra.mxu1 %v7881_v38 }
 0x74b   :  { %4739 = vmatprep.subr.bf16.mxu0 %v7882_v24  ;;  %4803 = vmatprep.subr.bf16.mxu1 %v7883_v3  ;;  %v7889_v3 = vld [vmem:[#allocation65_spill] sm:$0xff] }
 0x74e   :  { %4741 = vmatpush1.bf16.msra.mxu0 %v7884_v8  ;;  %4805 = vmatpush1.bf16.msra.mxu1 %v7885_v0 }
 0x74f   :  { %4807 = vmatprep.subr.bf16.mxu0 %v7886_v12  ;;  %4839 = vmatprep.subr.bf16.mxu1 %v7887_v59 }
 0x7c4   :  { %v2542_v61 = vpop.f32.mrb[26].mxu0  ;;  %v2613_v43 = vpop.f32.mrb[26].mxu1 }
 0x7c5   :  { %v2543_v21 = vadd.f32 %v2542_v61, %v7888_v7  ;;  %v2544_v34 = vpop.f32.mrb[27].mxu0  ;;  %v2615_v51 = vpop.f32.mrb[27].mxu1  ;;  %v2614_v0 = vadd.f32 %v2613_v43, %v7649_v25  ;;  %v7890_v43 = vld [vmem:[#allocation61_spill] sm:$0xff] }
 0x7c6   :  { %v2545_v38 = vadd.f32 %v2544_v34, %v7647_v35  ;;  %v2616_v8 = vadd.f32 %v2615_v51, %v7889_v3 }
 0x7c7   :  { %v3381_v49 = vmul.f32 -1.442695, %v2543_v21 }
 0x7c8   :  { %v3382_v24 = vmul.f32 -1.442695, %v2545_v38  ;;  %v3383_v30 = vmul.f32 -1.442695, %v2616_v8 }
 0x7c9   :  { %5239 = vpow2.f32 %v3381_v49 }
 0x7ca   :  { %5241 = vpow2.f32 %v3382_v24 }
 0x7cb   :  { %5243 = vpow2.f32 %v3383_v30 }
 0x7cc   :  { %5245 = vtanh.f32 %v2614_v0 }
 0x7d3   :  { %v5240_v12 = vpop.eup %5239 }
 0x7d4   :  { %v5242_v5 = vpop.eup %5241  ;;  %v2621_v59 = vadd.f32 1.0, %v5240_v12 }
 0x7d5   :  { %v2627_v42 = vadd.f32 1.0, %v5242_v5  ;;  %v5244_v61 = vpop.eup %5243 }
 0x7d6   :  { %5247 = vrcp.f32 %v2621_v59  ;;  %v5246_v7 = vpop.eup %5245  ;;  %v2634_v49 = vadd.f32 1.0, %v5244_v61 }
 0x7d7   :  { %5249 = vrcp.f32 %v2627_v42 }
 0x7d8   :  { %5251 = vrcp.f32 %v2634_v49 }
 0x7e0   :  { %v5248_v34 = vpop.eup %5247 }
 0x7e1   :  { %v5250_v21 = vpop.eup %5249  ;;  %v2638_v38 = vmul.f32 %v5248_v34, %v5246_v7  ;;  %v7891_v7 = vld [vmem:[#allocation63_spill] sm:$0xff] }
 0x7e2   :  { %v2637_v24 = vmul.f32 %v5250_v21, %v7078_v11  ;;  %v5252_v11 = vpop.eup %5251 }
 0x7e4   :  { %v2713_v51 = vpop.f32.mrb[12].mxu0  ;;  %v2784_v8 = vpop.f32.mrb[12].mxu1  ;;  %v7192_v3 = vadd.f32 %v2638_v38, %v2637_v24 }
 0x7e5   :  { %v5010_v12 = vadd.f32 %v2713_v51, %v7890_v43  ;;  %v2715_v30 = vpop.f32.mrb[13].mxu0  ;;  %v2786_v0 = vpop.f32.mrb[13].mxu1  ;;  %v5026_v38 = vadd.f32 %v2784_v8, %v6495_v41 }
 0x7e6   :  { %v5011_v5 = vadd.f32 %v2715_v30, %v7590_v45  ;;  %5253 = vtanh.f32 %v7192_v3  ;;  %v5027_v61 = vadd.f32 %v2786_v0, %v7891_v7 }
 0x7e7   :  { %v3384_v42 = vmul.f32 -1.442695, %v5010_v12 }
 0x7e8   :  { %v3385_v59 = vmul.f32 -1.442695, %v5011_v5  ;;  %v3386_v21 = vmul.f32 -1.442695, %v5027_v61 }
 0x7e9   :  { %5255 = vpow2.f32 %v3384_v42 }
 0x7ea   :  { %5257 = vpow2.f32 %v3385_v59 }
 0x7eb   :  { %5259 = vpow2.f32 %v3386_v21 }
 0x7ec   :  { %5261 = vtanh.f32 %v5026_v38  ;;  %v7936_v38 = vld [vmem:[#allocation50_spill] sm:$0xff] }
 0x7f0   :  { %v5254_v34 = vpop.eup %5253 }
 0x7f1   :  { %v2641_v49 = vmul.f32 %v5254_v34, %v5252_v11 }
 0x7f3   :  { %v5256_v24 = vpop.eup %5255  ;;  %2881 = vmatprep.mubr.f32.mxu0 %v2641_v49  ;;  %2952 = vmatprep.mubr.f32.mxu1 %v2641_v49  ;;  %v7937_v49 = vld [vmem:[#allocation51_spill] sm:$0xff] }
 0x7f4   :  { %v5258_v51 = vpop.eup %5257  ;;  %v2796_v43 = vadd.f32 1.0, %v5256_v24  ;;  %v7938_v24 = vld [vmem:[#allocation52_spill] sm:$0xff] }
 0x7f5   :  { %v2802_v30 = vadd.f32 1.0, %v5258_v51  ;;  %v5260_v12 = vpop.eup %5259  ;;  %v7939_v51 = vld [vmem:[#allocation53_spill] sm:$0xff] }
 0x7f6   :  { %5263 = vrcp.f32 %v2796_v43  ;;  %v5262_v5 = vpop.eup %5261  ;;  %v2809_v7 = vadd.f32 1.0, %v5260_v12  ;;  %v7934_v43 = vld [vmem:[#allocation48_spill] sm:$0xff]  ;;  %v7941_v12 = vld [vmem:[#allocation55_spill] sm:$0xff] }
 0x7f7   :  { %5265 = vrcp.f32 %v2802_v30  ;;  %v7940_v30 = vld [vmem:[#allocation54_spill] sm:$0xff] }
 0x7f8   :  { %5267 = vrcp.f32 %v2809_v7  ;;  %v7935_v7 = vld [vmem:[#allocation49_spill] sm:$0xff] }
 0x800   :  { %v5264_v42 = vpop.eup %5263 }
 0x801   :  { %v5266_v0 = vpop.eup %5265  ;;  %v2813_v59 = vmul.f32 %v5264_v42, %v5262_v5  ;;  %v7942_v5 = vld [vmem:[#allocation56_spill] sm:$0xff]  ;;  %v7943_v42 = vld [vmem:[#allocation57_spill] sm:$0xff] }
 0x802   :  { %v2812_v61 = vmul.f32 %v5266_v0, %v7086_v37  ;;  %v5268_v11 = vpop.eup %5267  ;;  %v7933_v37 = vld [vmem:[#allocation47_spill] sm:$0xff]  ;;  %v7944_v0 = vld [vmem:[#allocation58_spill] sm:$0xff] }
 0x804   :  { %v7200_v8 = vadd.f32 %v2813_v59, %v2812_v61  ;;  %v7945_v59 = vld [vmem:[#allocation59_spill] sm:$0xff] }
 0x806   :  { %5269 = vtanh.f32 %v7200_v8 }
 0x810   :  { %v5270_v34 = vpop.eup %5269 }
 0x811   :  { %v2816_v21 = vmul.f32 %v5270_v34, %v5268_v11  ;;  %v7946_v34 = vld [vmem:[#allocation60_spill] sm:$0xff] }
 0x813   :  { %2882 = vmatmul.mubr.f32.vlgmr.msra.gmra.mrb[28].mxu0 %v2816_v21  ;;  %2953 = vmatmul.mubr.f32.vlgmr.msra.gmra.mrb[28].mxu1 %v2816_v21 }
 0x814   :  { %4809 = vmatpush1.bf16.msra.mxu0 %v5596_v47  ;;  %4841 = vmatpush1.bf16.msra.mxu1 %v5605_v50  ;;  %v7892_v47 = vld [vmem:[#allocation6_spill] sm:$0xff]  ;;  %v7893_v50 = vld [vmem:[#allocation7_spill] sm:$0xff] }
 0x815   :  { %4811 = vmatprep.subr.bf16.mxu0 %v5614_v53  ;;  %4843 = vmatprep.subr.bf16.mxu1 %v5622_v56  ;;  %v7894_v53 = vld [vmem:[#allocation8_spill] sm:$0xff]  ;;  %v7895_v56 = vld [vmem:[#allocation9_spill] sm:$0xff] }
 0x816   :  { %3052 = vmatprep.mubr.f32.mxu0 %v7529_v31  ;;  %3123 = vmatprep.mubr.f32.mxu1 %v7529_v31  ;;  %v7932_v31 = vld [vmem:[#allocation46_spill] sm:$0xff] }
 0x818   :  { %4813 = vmatpush1.bf16.msra.mxu0 %v5634_v60  ;;  %4845 = vmatpush1.bf16.msra.mxu1 %v5644_v63  ;;  %v7896_v60 = vld [vmem:[#allocation10_spill] sm:$0xff]  ;;  %v7897_v63 = vld [vmem:[#allocation11_spill] sm:$0xff] }
 0x819   :  { %4815 = vmatprep.subr.bf16.mxu0 %v5654_v2  ;;  %4847 = vmatprep.subr.bf16.mxu1 %v5663_v6  ;;  %v7898_v2 = vld [vmem:[#allocation12_spill] sm:$0xff]  ;;  %v7899_v6 = vld [vmem:[#allocation13_spill] sm:$0xff] }
 0x81c   :  { %4817 = vmatpush1.bf16.msra.mxu0 %v5675_v10  ;;  %4849 = vmatpush1.bf16.msra.mxu1 %v5685_v13  ;;  %v7900_v10 = vld [vmem:[#allocation14_spill] sm:$0xff]  ;;  %v7901_v13 = vld [vmem:[#allocation15_spill] sm:$0xff] }
 0x81d   :  { %4819 = vmatprep.subr.bf16.mxu0 %v5695_v16  ;;  %4851 = vmatprep.subr.bf16.mxu1 %v5704_v19  ;;  %v7902_v16 = vld [vmem:[#allocation16_spill] sm:$0xff]  ;;  %v7903_v19 = vld [vmem:[#allocation17_spill] sm:$0xff] }
 0x820   :  { %4821 = vmatpush1.bf16.msra.mxu0 %v5716_v23  ;;  %4853 = vmatpush1.bf16.msra.mxu1 %v5726_v26  ;;  %v7904_v23 = vld [vmem:[#allocation18_spill] sm:$0xff]  ;;  %v7905_v26 = vld [vmem:[#allocation19_spill] sm:$0xff] }
 0x821   :  { %4823 = vmatprep.subr.bf16.mxu0 %v5736_v29  ;;  %4855 = vmatprep.subr.bf16.mxu1 %v5745_v32  ;;  %v7906_v29 = vld [vmem:[#allocation20_spill] sm:$0xff]  ;;  %v7907_v32 = vld [vmem:[#allocation21_spill] sm:$0xff] }
 0x824   :  { %4825 = vmatpush1.bf16.msra.mxu0 %v5757_v36  ;;  %4857 = vmatpush1.bf16.msra.mxu1 %v5767_v40  ;;  %v7908_v36 = vld [vmem:[#allocation22_spill] sm:$0xff]  ;;  %v7909_v40 = vld [vmem:[#allocation23_spill] sm:$0xff] }
 0x825   :  { %4827 = vmatprep.subr.bf16.mxu0 %v5777_v44  ;;  %4859 = vmatprep.subr.bf16.mxu1 %v5786_v48  ;;  %v7910_v44 = vld [vmem:[#allocation24_spill] sm:$0xff]  ;;  %v7911_v48 = vld [vmem:[#allocation25_spill] sm:$0xff] }
 0x828   :  { %4829 = vmatpush1.bf16.msra.mxu0 %v5798_v54  ;;  %4861 = vmatpush1.bf16.msra.mxu1 %v5808_v58  ;;  %v7912_v54 = vld [vmem:[#allocation26_spill] sm:$0xff]  ;;  %v7913_v58 = vld [vmem:[#allocation27_spill] sm:$0xff] }
 0x829   :  { %4831 = vmatprep.subr.bf16.mxu0 %v5818_v62  ;;  %4863 = vmatprep.subr.bf16.mxu1 %v5827_v4  ;;  %v7914_v62 = vld [vmem:[#allocation28_spill] sm:$0xff]  ;;  %v7915_v4 = vld [vmem:[#allocation29_spill] sm:$0xff] }
 0x82c   :  { %4833 = vmatpush1.bf16.msra.mxu0 %v5839_v9  ;;  %4865 = vmatpush1.bf16.msra.mxu1 %v5849_v14  ;;  %v7916_v9 = vld [vmem:[#allocation30_spill] sm:$0xff]  ;;  %v7917_v14 = vld [vmem:[#allocation31_spill] sm:$0xff] }
 0x82d   :  { %4835 = vmatprep.subr.bf16.mxu0 %v5859_v18  ;;  %4867 = vmatprep.subr.bf16.mxu1 %v5868_v22  ;;  %v7918_v18 = vld [vmem:[#allocation32_spill] sm:$0xff]  ;;  %v7919_v22 = vld [vmem:[#allocation33_spill] sm:$0xff] }
 0x830   :  { %4837 = vmatpush1.bf16.msra.mxu0 %v5880_v28  ;;  %4869 = vmatpush1.bf16.msra.mxu1 %v5890_v33  ;;  %v7920_v28 = vld [vmem:[#allocation34_spill] sm:$0xff]  ;;  %v7921_v33 = vld [vmem:[#allocation35_spill] sm:$0xff] }
 0x831   :  { %4871 = vmatprep.subr.bf16.mxu0 %v5903_v39  ;;  %4935 = vmatprep.subr.bf16.mxu1 %v5915_v46  ;;  %v7922_v39 = vld [vmem:[#allocation36_spill] sm:$0xff]  ;;  %v7923_v46 = vld [vmem:[#allocation37_spill] sm:$0xff] }
 0x833   :  { %3053 = vmatmul.mubr.f32.vlgmr.msra.gmra.mrb[14].mxu0 %v2816_v21  ;;  %3124 = vmatmul.mubr.f32.vlgmr.msra.gmra.mrb[14].mxu1 %v2816_v21 }
 0x834   :  { %4873 = vmatpush1.bf16.msra.mxu0 %v5924_v52  ;;  %4937 = vmatpush1.bf16.msra.mxu1 %v5928_v55  ;;  %v7924_v52 = vld [vmem:[#allocation38_spill] sm:$0xff]  ;;  %v7925_v55 = vld [vmem:[#allocation39_spill] sm:$0xff] }
 0x835   :  { %4875 = vmatprep.subr.bf16.mxu0 %v5930_v57  ;;  %4939 = vmatprep.subr.bf16.mxu1 %v5943_v1  ;;  %v7926_v57 = vld [vmem:[#allocation40_spill] sm:$0xff]  ;;  %v7927_v1 = vld [vmem:[#allocation41_spill] sm:$0xff] }
 0x838   :  { %4877 = vmatpush1.bf16.msra.mxu0 %v5964_v15  ;;  %4941 = vmatpush1.bf16.msra.mxu1 %v5968_v17  ;;  %v7928_v15 = vld [vmem:[#allocation42_spill] sm:$0xff]  ;;  %v7929_v17 = vld [vmem:[#allocation43_spill] sm:$0xff] }
 0x839   :  { %4879 = vmatprep.subr.bf16.mxu0 %v5970_v20  ;;  %4943 = vmatprep.subr.bf16.mxu1 %v5982_v27  ;;  %v7930_v20 = vld [vmem:[#allocation44_spill] sm:$0xff]  ;;  %v7931_v27 = vld [vmem:[#allocation45_spill] sm:$0xff] }
 0x83c   :  { %4881 = vmatpush1.bf16.msra.mxu0 %v7892_v47  ;;  %4945 = vmatpush1.bf16.msra.mxu1 %v7893_v50 }
 0x83d   :  { %4883 = vmatprep.subr.bf16.mxu0 %v7894_v53  ;;  %4947 = vmatprep.subr.bf16.mxu1 %v7895_v56 }
 0x840   :  { %4885 = vmatpush1.bf16.msra.mxu0 %v7896_v60  ;;  %4949 = vmatpush1.bf16.msra.mxu1 %v7897_v63  ;;  %v7947_v63 = vld [vmem:[#allocation65_spill] sm:$0xff] }
 0x841   :  { %4887 = vmatprep.subr.bf16.mxu0 %v7898_v2  ;;  %4951 = vmatprep.subr.bf16.mxu1 %v7899_v6 }
 0x844   :  { %4889 = vmatpush1.bf16.msra.mxu0 %v7900_v10  ;;  %4953 = vmatpush1.bf16.msra.mxu1 %v7901_v13 }
 0x845   :  { %4891 = vmatprep.subr.bf16.mxu0 %v7902_v16  ;;  %4955 = vmatprep.subr.bf16.mxu1 %v7903_v19 }
 0x848   :  { %4893 = vmatpush1.bf16.msra.mxu0 %v7904_v23  ;;  %4957 = vmatpush1.bf16.msra.mxu1 %v7905_v26 }
 0x849   :  { %4895 = vmatprep.subr.bf16.mxu0 %v7906_v29  ;;  %4959 = vmatprep.subr.bf16.mxu1 %v7907_v32 }
 0x84c   :  { %4897 = vmatpush1.bf16.msra.mxu0 %v7908_v36  ;;  %4961 = vmatpush1.bf16.msra.mxu1 %v7909_v40 }
 0x84d   :  { %4899 = vmatprep.subr.bf16.mxu0 %v7910_v44  ;;  %4963 = vmatprep.subr.bf16.mxu1 %v7911_v48 }
 0x850   :  { %4901 = vmatpush1.bf16.msra.mxu0 %v7912_v54  ;;  %4965 = vmatpush1.bf16.msra.mxu1 %v7913_v58 }
 0x851   :  { %4903 = vmatprep.subr.bf16.mxu0 %v7914_v62  ;;  %4967 = vmatprep.subr.bf16.mxu1 %v7915_v4  ;;  %v7948_v4 = vld [vmem:[#allocation61_spill] sm:$0xff] }
 0x854   :  { %4905 = vmatpush1.bf16.msra.mxu0 %v7916_v9  ;;  %4969 = vmatpush1.bf16.msra.mxu1 %v7917_v14 }
 0x855   :  { %4907 = vmatprep.subr.bf16.mxu0 %v7918_v18  ;;  %4971 = vmatprep.subr.bf16.mxu1 %v7919_v22 }
 0x858   :  { %4909 = vmatpush1.bf16.msra.mxu0 %v7920_v28  ;;  %4973 = vmatpush1.bf16.msra.mxu1 %v7921_v33 }
 0x859   :  { %4911 = vmatprep.subr.bf16.mxu0 %v7922_v39  ;;  %4975 = vmatprep.subr.bf16.mxu1 %v7923_v46  ;;  %v7949_v39 = vld [vmem:[#allocation63_spill] sm:$0xff] }
 0x85c   :  { %4913 = vmatpush1.bf16.msra.mxu0 %v7924_v52  ;;  %4977 = vmatpush1.bf16.msra.mxu1 %v7925_v55 }
 0x85d   :  { %4915 = vmatprep.subr.bf16.mxu0 %v7926_v57  ;;  %4979 = vmatprep.subr.bf16.mxu1 %v7927_v1 }
 0x860   :  { %4917 = vmatpush1.bf16.msra.mxu0 %v7928_v15  ;;  %4981 = vmatpush1.bf16.msra.mxu1 %v7929_v17 }
 0x861   :  { %4919 = vmatprep.subr.bf16.mxu0 %v7930_v20  ;;  %4983 = vmatprep.subr.bf16.mxu1 %v7931_v27 }
 0x864   :  { %4921 = vmatpush1.bf16.msra.mxu0 %v7932_v31  ;;  %4985 = vmatpush1.bf16.msra.mxu1 %v7933_v37 }
 0x865   :  { %4923 = vmatprep.subr.bf16.mxu0 %v7934_v43  ;;  %4987 = vmatprep.subr.bf16.mxu1 %v7935_v7 }
 0x868   :  { %4925 = vmatpush1.bf16.msra.mxu0 %v7936_v38  ;;  %4989 = vmatpush1.bf16.msra.mxu1 %v7937_v49 }
 0x869   :  { %4927 = vmatprep.subr.bf16.mxu0 %v7938_v24  ;;  %4991 = vmatprep.subr.bf16.mxu1 %v7939_v51 }
 0x86c   :  { %4929 = vmatpush1.bf16.msra.mxu0 %v7940_v30  ;;  %4993 = vmatpush1.bf16.msra.mxu1 %v7941_v12  ;;  %v13_v12 = vstv %s7332_s7 }
 0x86d   :  { %4931 = vmatprep.subr.bf16.mxu0 %v7942_v5  ;;  %4995 = vmatprep.subr.bf16.mxu1 %v7943_v42  ;;  %14 = vst [vmem:[#allocation3] sm:$0x1] %v13_v12 }
 0x870   :  { %4933 = vmatpush1.bf16.msra.mxu0 %v7944_v0  ;;  %4997 = vmatpush1.bf16.msra.mxu1 %v7945_v59 }
 0x8e6   :  { %v2883_v61 = vpop.f32.mrb[28].mxu0  ;;  %v2954_v11 = vpop.f32.mrb[28].mxu1 }
 0x8e7   :  { %v2884_v21 = vadd.f32 %v2883_v61, %v7946_v34  ;;  %v2885_v47 = vpop.f32.mrb[29].mxu0  ;;  %v2956_v50 = vpop.f32.mrb[29].mxu1  ;;  %v2955_v10 = vadd.f32 %v2954_v11, %v7649_v25 }
 0x8e8   :  { %v2886_v53 = vadd.f32 %v2885_v47, %v7647_v35  ;;  %v2957_v2 = vadd.f32 %v2956_v50, %v7947_v63 }
 0x8e9   :  { %v3387_v56 = vmul.f32 -1.442695, %v2884_v21 }
 0x8ea   :  { %v3388_v60 = vmul.f32 -1.442695, %v2886_v53  ;;  %v3389_v6 = vmul.f32 -1.442695, %v2957_v2 }
 0x8eb   :  { %5271 = vpow2.f32 %v3387_v56 }
 0x8ec   :  { %5273 = vpow2.f32 %v3388_v60 }
 0x8ed   :  { %5275 = vpow2.f32 %v3389_v6 }
 0x8ee   :  { %5277 = vtanh.f32 %v2955_v10 }
 0x8f5   :  { %v5272_v13 = vpop.eup %5271 }
 0x8f6   :  { %v5274_v16 = vpop.eup %5273  ;;  %v2962_v19 = vadd.f32 1.0, %v5272_v13 }
 0x8f7   :  { %v2968_v23 = vadd.f32 1.0, %v5274_v16  ;;  %v5276_v26 = vpop.eup %5275 }
 0x8f8   :  { %5279 = vrcp.f32 %v2962_v19  ;;  %v5278_v29 = vpop.eup %5277  ;;  %v2975_v44 = vadd.f32 1.0, %v5276_v26 }
 0x8f9   :  { %5281 = vrcp.f32 %v2968_v23 }
 0x8fa   :  { %5283 = vrcp.f32 %v2975_v44 }
 0x902   :  { %v5280_v32 = vpop.eup %5279 }
 0x903   :  { %v5282_v36 = vpop.eup %5281  ;;  %v2979_v40 = vmul.f32 %v5280_v32, %v5278_v29  ;;  %v3396_v29 = vld [vmem:[%s7333_s6] ss:$0 sm:$0xff] }
 0x904   :  { %v2978_v48 = vmul.f32 %v5282_v36, %v7192_v3  ;;  %v5284_v3 = vpop.eup %5283 }
 0x906   :  { %v3054_v54 = vpop.f32.mrb[14].mxu0  ;;  %v3125_v58 = vpop.f32.mrb[14].mxu1  ;;  %v7304_v62 = vadd.f32 %v2979_v40, %v2978_v48  ;;  %v3397_v40 = vld [vmem:[#allocation3] ss:$0 sm:$0xff] }
 0x907   :  { %v5012_v9 = vadd.f32 %v3054_v54, %v7948_v4  ;;  %v3056_v14 = vpop.f32.mrb[15].mxu0  ;;  %v3127_v18 = vpop.f32.mrb[15].mxu1  ;;  %v5028_v57 = vadd.f32 %v3125_v58, %v6495_v41 }
 0x908   :  { %v5013_v22 = vadd.f32 %v3056_v14, %v7590_v45  ;;  %5285 = vtanh.f32 %v7304_v62  ;;  %v5029_v46 = vadd.f32 %v3127_v18, %v7949_v39 }
 0x909   :  { %v3390_v28 = vmul.f32 -1.442695, %v5012_v9 }
 0x90a   :  { %v3391_v33 = vmul.f32 -1.442695, %v5013_v22  ;;  %v3392_v55 = vmul.f32 -1.442695, %v5029_v46 }
 0x90b   :  { %5287 = vpow2.f32 %v3390_v28 }
 0x90c   :  { %5289 = vpow2.f32 %v3391_v33 }
 0x90d   :  { %5291 = vpow2.f32 %v3392_v55 }
 0x90e   :  { %5293 = vtanh.f32 %v5028_v57 }
 0x912   :  { %v5286_v52 = vpop.eup %5285 }
 0x913   :  { %v2982_v1 = vmul.f32 %v5286_v52, %v5284_v3 }
 0x915   :  { %v5288_v15 = vpop.eup %5287  ;;  %3222 = vmatprep.mubr.f32.mxu0 %v2982_v1  ;;  %3293 = vmatprep.mubr.f32.mxu1 %v2982_v1 }
 0x916   :  { %v5290_v17 = vpop.eup %5289  ;;  %v3137_v20 = vadd.f32 1.0, %v5288_v15 }
 0x917   :  { %v3143_v45 = vadd.f32 1.0, %v5290_v17  ;;  %v5292_v27 = vpop.eup %5291 }
 0x918   :  { %5295 = vrcp.f32 %v3137_v20  ;;  %v5294_v31 = vpop.eup %5293  ;;  %v3150_v38 = vadd.f32 1.0, %v5292_v27 }
 0x919   :  { %5297 = vrcp.f32 %v3143_v45 }
 0x91a   :  { %5299 = vrcp.f32 %v3150_v38 }
 0x922   :  { %v5296_v37 = vpop.eup %5295 }
 0x923   :  { %v5298_v43 = vpop.eup %5297  ;;  %v3154_v7 = vmul.f32 %v5296_v37, %v5294_v31 }
 0x924   :  { %v3153_v49 = vmul.f32 %v5298_v43, %v7200_v8  ;;  %v5300_v24 = vpop.eup %5299 }
 0x926   :  { %v3155_v41 = vadd.f32 %v3154_v7, %v3153_v49 }
 0x928   :  { %5301 = vtanh.f32 %v3155_v41 }
 0x932   :  { %v5302_v51 = vpop.eup %5301 }
 0x933   :  { %v3157_v30 = vmul.f32 %v5302_v51, %v5300_v24 }
 0x935   :  { %3223 = vmatmul.mubr.f32.vlgmr.msra.gmra.mrb[30].mxu0 %v3157_v30  ;;  %3294 = vmatmul.mubr.f32.vlgmr.msra.gmra.mrb[30].mxu1 %v3157_v30 }
 0xa08   :  { %v3224_v5 = vpop.f32.mrb[30].mxu0  ;;  %v3295_v42 = vpop.f32.mrb[30].mxu1 }
 0xa09   :  { %v3225_v0 = vadd.f32 %v3224_v5, %v7946_v34  ;;  %v3226_v59 = vpop.f32.mrb[31].mxu0  ;;  %v3297_v61 = vpop.f32.mrb[31].mxu1  ;;  %v3296_v53 = vadd.f32 %v3295_v42, %v7649_v25 }
 0xa0a   :  { %v3227_v8 = vadd.f32 %v3226_v59, %v7647_v35  ;;  %v3298_v47 = vadd.f32 %v3297_v61, %v7947_v63 }
 0xa0b   :  { %v3393_v11 = vmul.f32 -1.442695, %v3225_v0 }
 0xa0c   :  { %v3394_v21 = vmul.f32 -1.442695, %v3227_v8  ;;  %v3395_v50 = vmul.f32 -1.442695, %v3298_v47 }
 0xa0d   :  { %5303 = vpow2.f32 %v3393_v11 }
 0xa0e   :  { %5305 = vpow2.f32 %v3394_v21 }
 0xa0f   :  { %5307 = vpow2.f32 %v3395_v50 }
 0xa10   :  { %5309 = vtanh.f32 %v3296_v53 }
 0xa17   :  { %v5304_v56 = vpop.eup %5303 }
 0xa18   :  { %v5306_v60 = vpop.eup %5305  ;;  %v3303_v2 = vadd.f32 1.0, %v5304_v56 }
 0xa19   :  { %v3309_v6 = vadd.f32 1.0, %v5306_v60  ;;  %v5308_v34 = vpop.eup %5307 }
 0xa1a   :  { %5311 = vrcp.f32 %v3303_v2  ;;  %v5310_v10 = vpop.eup %5309  ;;  %v3316_v19 = vadd.f32 1.0, %v5308_v34 }
 0xa1b   :  { %5313 = vrcp.f32 %v3309_v6 }
 0xa1c   :  { %5315 = vrcp.f32 %v3316_v19 }
 0xa24   :  { %v5312_v35 = vpop.eup %5311 }
 0xa25   :  { %v5314_v13 = vpop.eup %5313  ;;  %v3320_v16 = vmul.f32 %v5312_v35, %v5310_v10 }
 0xa26   :  { %v3319_v23 = vmul.f32 %v5314_v13, %v7304_v62  ;;  %v5316_v25 = vpop.eup %5315 }
 0xa28   :  { %v3321_v63 = vadd.f32 %v3320_v16, %v3319_v23 }
 0xa2a   :  { %5317 = vtanh.f32 %v3321_v63 }
 0xa34   :  { %v5318_v26 = vpop.eup %5317 }
 0xa35   :  { %v3323_v32 = vmul.f32 %v5318_v26, %v5316_v25 }
 0xa37   :  { %v3331_v36 = vmul.f32 %v3396_v29, %v3323_v32 }
 0xa39   :  { %3332 = vadd.xlane.f32.xlu0 %v3331_v36 }
 0xac6   :  { %v3333_v44 = vpop.xlane.xlu0 %3332 }
 0xac7   :  { %v3341_v48 = vadd.f32 %v3397_v40, %v3333_v44 }
 0xac9   :  { %3343 = vst.msk [vmem:[%s7334_s8] sm:$0xff] %vm3342_vm0, %v3341_v48 }

</bundles_post_ra>
